<compile_context>
chip_gen: v7x
topology: tpu7x:2x2x1
jax: 0.10.0
libtpu: 0.0.40
codegen_flags: <defaults>
</compile_context>

<pallas_src>
import math

import jax
import jax.numpy as jnp
from jax import lax
from jax.experimental import pallas as pl
from jax.experimental.pallas import tpu as pltpu

EMB_SIZE = 300
HIDDEN = 256
FC_OUT = 128
LN_EPS = 1e-5


def _round_up(x, m):
    return ((x + m - 1) // m) * m


# ----------------------------------------------------------------------------
# Fused GRU + FC/LayerNorm + classifier kernel (one N-tile per grid step)
# ----------------------------------------------------------------------------
def gru_lang_kernel(tmax_ref, len_ref, x_ref, wih_ref, bih_ref, whh_ref, bhh_ref,
                    fcw_ref, fcb_ref, lng_ref, lnb_ref, clsw_ref, clsb_ref,
                    fea_ref, hlast_ref, scores_ref,
                    gi_ref, hs_ref):
    """Per N-tile fused kernel.

    tmax_ref:  (num_tiles,) int32 SMEM (scalar prefetch) per-tile max valid length
    len_ref:   (TN, 1)   int32  sequence lengths
    x_ref:     (T, TN, E) bf16  time-major inputs (E unpadded; lane pad in VMEM only)
    wih_ref:   (E, 3H) bf16, bih_ref: (1, 3H) f32   gate order r, z, n (pre-transposed)
    whh_ref:   (H, 3H) bf16, bhh_ref: (1, 3H) f32
    fcw_ref:   (H, 128) bf16, fcb_ref/lng_ref/lnb_ref: (1, 128) f32
    clsw_ref:  (H, Cpad) bf16, clsb_ref: (1, Cpad) f32
    fea_ref:   (T, TN, 128)  LayerNorm(ReLU(fc(gru_out)))   (zero-masked gru_out)
    hlast_ref: (TN, H)       hidden at last valid step
    scores_ref:(TN, Cpad)    classifier logits (lane-padded)
    gi_ref:    (T, TN, 3H) bf16  scratch: hoisted input projection
    hs_ref:    (T, TN, H)  bf16  scratch: masked per-step hidden states
    """
    T, TN, E = x_ref.shape
    H = whh_ref.shape[0]
    G = 3 * H

    tmax = tmax_ref[pl.program_id(0)]            # per-tile max valid length (SMEM)

    # Padded / skipped timesteps must contribute zeros to the fc epilogue.
    hs_ref[...] = jnp.zeros_like(hs_ref)

    # -- hoisted input projection: chunked MXU matmuls, skipped past tmax --------
    TC = 8 if T >= 8 else T
    for c0 in range(0, T, TC):
        c1 = min(c0 + TC, T)
        rows = (c1 - c0) * TN

        @pl.when(c0 < tmax)
        def _(c0=c0, c1=c1, rows=rows):
            xc = x_ref[c0:c1].reshape(rows, E)                      # bf16
            gi = jnp.dot(xc, wih_ref[...], preferred_element_type=jnp.float32)
            gi = gi + bih_ref[...]
            gi_ref[c0:c1] = gi.astype(jnp.bfloat16).reshape(c1 - c0, TN, G)

    # hoist loads out of the serial loop (biases broadcast implicitly in the add)
    lens = len_ref[...]                                   # (TN, 1) int32
    whh = whh_ref[...]                                    # (H, 3H) bf16
    bhh = bhh_ref[...]                                    # (1, 3H) f32
    h0 = jnp.zeros((TN, H), jnp.float32)

    def step(t, h):
        gi = gi_ref[t]                                    # (TN, 3H) bf16
        gh = jnp.dot(h.astype(jnp.bfloat16), whh,
                     preferred_element_type=jnp.float32) + bhh
        r = jax.nn.sigmoid(gi[:, :H] + gh[:, :H])         # gate math in f32
        z = jax.nn.sigmoid(gi[:, H:2 * H] + gh[:, H:2 * H])
        n = jnp.tanh(gi[:, 2 * H:] + r * gh[:, 2 * H:])
        h_new = n + z * (h - n)                           # == (1-z)*n + z*h
        valid = lens > t                                  # (TN, 1)
        hs_ref[t] = jnp.where(valid, h_new, 0.0).astype(jnp.bfloat16)  # pad -> 0
        return jnp.where(valid, h_new, h)                 # freeze past length (f32)

    # Serial recurrence bounded by the tile's longest sequence (dynamic trip count,
    # so no unroll hint — skipping dead timesteps is the bigger win).
    h_last = lax.fori_loop(0, tmax, step, h0)

    # -- epilogue: lang_emb, lang_scores, fused fc + ReLU + LayerNorm ----------
    hlast_ref[...] = h_last
    scores_ref[...] = (jnp.dot(h_last.astype(jnp.bfloat16), clsw_ref[...],
                               preferred_element_type=jnp.float32) + clsb_ref[...])

    hs_all = hs_ref[...].reshape(T * TN, H)               # bf16
    y = (jnp.dot(hs_all, fcw_ref[...], preferred_element_type=jnp.float32)
         + fcb_ref[...])
    y = jnp.maximum(y, 0.0)                               # ReLU (dropout = identity)
    mu = jnp.mean(y, axis=-1, keepdims=True)
    d = y - mu
    var = jnp.mean(d * d, axis=-1, keepdims=True)         # centered variance
    y = d * lax.rsqrt(var + LN_EPS)
    y = y * lng_ref[...] + lnb_ref[...]
    fea_ref[...] = y.reshape(T, TN, FC_OUT)


# ----------------------------------------------------------------------------
# pallas_call wrapper (grid over N tiles, parallel semantics, scalar prefetch)
# ----------------------------------------------------------------------------
def _vmem_budget_bytes(T, tn, e, c_pad):
    e_lane = _round_up(e, 128)
    bf, f4 = 2, 4
    x_tile = T * tn * e_lane * bf * 2                     # double-buffered input
    gi = T * tn * 3 * HIDDEN * bf                          # scratch
    hs = T * tn * HIDDEN * bf                              # scratch
    fea = T * tn * FC_OUT * f4 * 2                         # double-buffered output
    small_out = tn * (HIDDEN + c_pad) * f4 * 2
    weights = (e_lane * 3 * HIDDEN + HIDDEN * 3 * HIDDEN
               + HIDDEN * FC_OUT + HIDDEN * c_pad) * bf * 2
    return x_tile + gi + hs + fea + small_out + weights + (4 << 20)


def run_gru_fused(tmax_tiles, lens_col, x_tm, w_ih, b_ih, w_hh, b_hh,
                  fc_w, fc_b, ln_g, ln_b, cls_w_p, cls_b_p, *, tn, vmem_limit):
    T, n_pad, e = x_tm.shape
    H = w_hh.shape[0]
    G = w_hh.shape[1]            # 3H
    c_pad = cls_w_p.shape[1]
    num_tiles = n_pad // tn

    def whole(arr):
        nd = arr.ndim
        return pl.BlockSpec(arr.shape, lambda i, tm, nd=nd: (0,) * nd)

    in_specs = [
        pl.BlockSpec((tn, 1), lambda i, tm: (i, 0)),             # lens
        pl.BlockSpec((T, tn, e), lambda i, tm: (0, i, 0)),       # x (time-major)
        whole(w_ih), whole(b_ih), whole(w_hh), whole(b_hh),
        whole(fc_w), whole(fc_b), whole(ln_g), whole(ln_b),
        whole(cls_w_p), whole(cls_b_p),
    ]
    out_specs = (
        pl.BlockSpec((T, tn, FC_OUT), lambda i, tm: (0, i, 0)),  # lang_fea
        pl.BlockSpec((tn, H), lambda i, tm: (i, 0)),             # h_last
        pl.BlockSpec((tn, c_pad), lambda i, tm: (i, 0)),         # scores (lane-padded)
    )
    out_shape = (
        jax.ShapeDtypeStruct((T, n_pad, FC_OUT), jnp.float32),
        jax.ShapeDtypeStruct((n_pad, H), jnp.float32),
        jax.ShapeDtypeStruct((n_pad, c_pad), jnp.float32),
    )
    scratch_shapes = [
        pltpu.VMEM((T, tn, G), jnp.bfloat16),   # hoisted input projection
        pltpu.VMEM((T, tn, H), jnp.bfloat16),   # masked hidden-state history
    ]
    grid_spec = pltpu.PrefetchScalarGridSpec(
        num_scalar_prefetch=1,
        grid=(num_tiles,),
        in_specs=in_specs,
        out_specs=out_specs,
        scratch_shapes=scratch_shapes,
    )
    return pl.pallas_call(
        gru_lang_kernel,
        grid_spec=grid_spec,
        out_shape=out_shape,
        compiler_params=pltpu.CompilerParams(
            dimension_semantics=("parallel",),
            vmem_limit_bytes=vmem_limit,
        ),
    )(tmax_tiles, lens_col, x_tm, w_ih, b_ih, w_hh, b_hh,
      fc_w, fc_b, ln_g, ln_b, cls_w_p, cls_b_p)


# ----------------------------------------------------------------------------
# Module forward (glue in plain JAX; no host syncs, static shapes)
# ----------------------------------------------------------------------------
def lang_module_forward(data_dict, params):
    word_embs = data_dict['ground_lang_feat_list']        # (B, L, T, E)
    lang_len = data_dict['ground_lang_len_list']          # (B, L)
    B, L, T, E = word_embs.shape
    N = B * L

    # TODO(synk): training-time augmentation (random 'unk' masking and main-lang
    # shuffling driven by host `random`) has no Pallas equivalent; only the eval
    # path (istrain == 0) is implemented.

    x = word_embs.reshape(N, T, E)
    lens = lang_len.reshape(N).astype(jnp.int32)

    # N tile: multiple of 16 (bf16 sublane packing); >=2 tiles when N allows
    # (v7x has 2 TensorCores); 256-row tiles for large N (fills v6e's 256x256 MXU).
    if N >= 512:
        tn = 256
    elif N >= 256:
        tn = 128
    elif N > 16:
        tn = min(128, _round_up(-(-N // 2), 16))
    else:
        tn = _round_up(max(N, 16), 16)
    n_pad = _round_up(N, tn)
    num_tiles = n_pad // tn

    C = params['cls_w'].shape[1]
    c_pad = _round_up(C, 128)                              # lane-dense classifier out

    # time-major bf16 input; E stays 300 (full-dim block, lane padding in VMEM only)
    x_tm = jnp.transpose(x, (1, 0, 2)).astype(jnp.bfloat16)
    x_tm = jnp.pad(x_tm, ((0, 0), (0, n_pad - N), (0, 0)))
    lens_pad = jnp.pad(lens, (0, n_pad - N))
    lens_col = lens_pad[:, None]                           # (n_pad, 1)

    # per-tile max valid length -> scalar prefetch bounds the serial recurrence
    tmax_tiles = jnp.minimum(jnp.max(lens_pad.reshape(num_tiles, tn), axis=1),
                             jnp.int32(T)).astype(jnp.int32)

    # bf16 matmul operands (weights); biases / LN params stay f32
    w_ih = params['w_ih'].astype(jnp.bfloat16)
    w_hh = params['w_hh'].astype(jnp.bfloat16)
    fc_w = params['fc_w'].astype(jnp.bfloat16)
    cls_w_p = jnp.pad(params['cls_w'], ((0, 0), (0, c_pad - C))).astype(jnp.bfloat16)
    cls_b_p = jnp.pad(params['cls_b'], ((0, 0), (0, c_pad - C)))

    vmem_limit = int(min(max(_vmem_budget_bytes(T, tn, E, c_pad), 32 << 20), 100 << 20))

    fea_tm, h_last, scores_p = run_gru_fused(
        tmax_tiles, lens_col, x_tm, w_ih, params['b_ih'], w_hh, params['b_hh'],
        fc_w, params['fc_b'], params['ln_g'], params['ln_b'],
        cls_w_p, cls_b_p, tn=tn, vmem_limit=vmem_limit)

    # Static T everywhere (no device->host max(lens) sync); padded time steps are
    # already zero-masked before the fc, matching pad_packed_sequence semantics.
    lang_fea = jnp.transpose(fea_tm, (1, 0, 2))[:N]        # (N, T, 128)
    lang_emb = h_last[:N]                                  # (N, 256)
    lang_scores = scores_p[:N, :C]                         # (N, num_text_classes)

    tids = jnp.arange(T, dtype=jnp.int32)[None, :]
    mask_queries = (tids < lens[:, None]).astype(jnp.int32)     # (N, T)
    attention_mask = (mask_queries == 0)[:, None, None, :]      # (N, 1, 1, T) bool

    out = dict(data_dict)
    out['attention_mask'] = attention_mask
    out['lang_fea'] = lang_fea
    out['lang_emb'] = lang_emb
    out['lang_scores'] = lang_scores
    return out


def init_params(key, num_text_classes, emb=EMB_SIZE, hidden=HIDDEN):
    ks = jax.random.split(key, 8)
    u = lambda k, shape, b: jax.random.uniform(k, shape, jnp.float32, -b, b)
    s_gru = 1.0 / math.sqrt(hidden)
    s_fc = 1.0 / math.sqrt(hidden)
    return {
        # GRU weights stored pre-transposed: (in, 3H), gate order r, z, n
        'w_ih': u(ks[0], (emb, 3 * hidden), s_gru),
        'b_ih': u(ks[1], (1, 3 * hidden), s_gru),
        'w_hh': u(ks[2], (hidden, 3 * hidden), s_gru),
        'b_hh': u(ks[3], (1, 3 * hidden), s_gru),
        'fc_w': u(ks[4], (hidden, FC_OUT), s_fc),
        'fc_b': u(ks[5], (1, FC_OUT), s_fc),
        'ln_g': jnp.ones((1, FC_OUT), jnp.float32),
        'ln_b': jnp.zeros((1, FC_OUT), jnp.float32),
        'cls_w': u(ks[6], (hidden, num_text_classes), s_fc),
        'cls_b': u(ks[7], (1, num_text_classes), s_fc),
    }


if __name__ == "__main__":
    key = jax.random.PRNGKey(0)
    kx, kp = jax.random.split(key, 2)

    B, L, T = 2, 2, 8
    num_text_classes = 18

    word_embs = jax.random.normal(kx, (B, L, T, EMB_SIZE), jnp.float32)
    lang_len = jnp.array([[8, 5], [3, 6]], dtype=jnp.int32)

    data_dict = {
        'ground_lang_feat_list': word_embs,
        'ground_lang_len_list': lang_len,
        'ground_first_obj_list': jnp.zeros((B, L), jnp.int32),
        'unk': jnp.zeros((1, EMB_SIZE), jnp.float32),
        'istrain': jnp.array([0], jnp.int32),          # eval path
    }

    params = init_params(kp, num_text_classes)
    out = lang_module_forward(data_dict, params)

    jax.block_until_ready((out['lang_fea'], out['lang_emb'],
                           out['lang_scores'], out['attention_mask']))
    assert out['lang_fea'].shape == (B * L, T, FC_OUT)
    assert out['lang_emb'].shape == (B * L, HIDDEN)
    assert out['lang_scores'].shape == (B * L, num_text_classes)
    assert out['attention_mask'].shape == (B * L, 1, 1, T)
    assert bool(jnp.all(jnp.isfinite(out['lang_fea'])))
    assert bool(jnp.all(jnp.isfinite(out['lang_scores'])))
    print("KERNEL_OK")
</pallas_src>

<mosaic_0001>
module attributes {stable_mosaic.version = 11 : i64} {
  func.func @gru_lang_kernel(%arg0: i32, %arg1: memref<1xi32, #tpu.memory_space<smem>>, %arg2: memref<16x1xi32, #tpu.memory_space<vmem>>, %arg3: memref<8x16x300xbf16, #tpu.memory_space<vmem>>, %arg4: memref<300x768xbf16, #tpu.memory_space<vmem>>, %arg5: memref<1x768xf32, #tpu.memory_space<vmem>>, %arg6: memref<256x768xbf16, #tpu.memory_space<vmem>>, %arg7: memref<1x768xf32, #tpu.memory_space<vmem>>, %arg8: memref<256x128xbf16, #tpu.memory_space<vmem>>, %arg9: memref<1x128xf32, #tpu.memory_space<vmem>>, %arg10: memref<1x128xf32, #tpu.memory_space<vmem>>, %arg11: memref<1x128xf32, #tpu.memory_space<vmem>>, %arg12: memref<256x128xbf16, #tpu.memory_space<vmem>>, %arg13: memref<1x128xf32, #tpu.memory_space<vmem>>, %arg14: memref<8x16x128xf32, #tpu.memory_space<vmem>>, %arg15: memref<16x256xf32, #tpu.memory_space<vmem>>, %arg16: memref<16x128xf32, #tpu.memory_space<vmem>>, %arg17: memref<8x16x768xbf16, #tpu.memory_space<vmem>>, %arg18: memref<8x16x256xbf16, #tpu.memory_space<vmem>>) attributes {dimension_semantics = [#tpu.dimension_semantics<parallel>], iteration_bounds = array<i64: 1>, scalar_prefetch = 1 : i64, scratch_operands = 2 : i64, tpu.core_type = #tpu.core_type<tc>, window_params = [{transform_indices = @transform_0, window_bounds = array<i64: 16, 1>}, {transform_indices = @transform_1, window_bounds = array<i64: 8, 16, 300>}, {pipeline_mode = #tpu.pipeline_mode<synchronous>, transform_indices = @transform_2, window_bounds = array<i64: 300, 768>}, {pipeline_mode = #tpu.pipeline_mode<synchronous>, transform_indices = @transform_3, window_bounds = array<i64: 1, 768>}, {pipeline_mode = #tpu.pipeline_mode<synchronous>, transform_indices = @transform_4, window_bounds = array<i64: 256, 768>}, {pipeline_mode = #tpu.pipeline_mode<synchronous>, transform_indices = @transform_5, window_bounds = array<i64: 1, 768>}, {pipeline_mode = #tpu.pipeline_mode<synchronous>, transform_indices = @transform_6, window_bounds = array<i64: 256, 128>}, {pipeline_mode = #tpu.pipeline_mode<synchronous>, transform_indices = @transform_7, window_bounds = array<i64: 1, 128>}, {pipeline_mode = #tpu.pipeline_mode<synchronous>, transform_indices = @transform_8, window_bounds = array<i64: 1, 128>}, {pipeline_mode = #tpu.pipeline_mode<synchronous>, transform_indices = @transform_9, window_bounds = array<i64: 1, 128>}, {pipeline_mode = #tpu.pipeline_mode<synchronous>, transform_indices = @transform_10, window_bounds = array<i64: 256, 128>}, {pipeline_mode = #tpu.pipeline_mode<synchronous>, transform_indices = @transform_11, window_bounds = array<i64: 1, 128>}, {transform_indices = @transform_12, window_bounds = array<i64: 8, 16, 128>}, {transform_indices = @transform_13, window_bounds = array<i64: 16, 256>}, {transform_indices = @transform_14, window_bounds = array<i64: 16, 128>}]} {
    %0 = arith.index_cast %arg0 : i32 to index
    %1 = memref.load %arg1[%0] : memref<1xi32, #tpu.memory_space<smem>>
    %cst = arith.constant 0.000000e+00 : bf16
    %2 = vector.broadcast %cst : bf16 to vector<8x16x256xbf16>
    %c0 = arith.constant 0 : index
    %c0_0 = arith.constant 0 : index
    %c0_1 = arith.constant 0 : index
    %3 = vector.load %arg18[%c0, %c0_0, %c0_1] : memref<8x16x256xbf16, #tpu.memory_space<vmem>>, vector<8x16x256xbf16>
    tpu.vector_store %arg18[%c0, %c0_0, %c0_1], %2 {strides = array<i32>} : memref<8x16x256xbf16, #tpu.memory_space<vmem>>, vector<8x16x256xbf16>,
    %c0_i32 = arith.constant 0 : i32
    %4 = arith.cmpi sgt, %1, %c0_i32 : i32
    %5 = arith.extui %4 : i1 to i32
    %c0_i32_2 = arith.constant 0 : i32
    %6 = arith.cmpi ne, %5, %c0_i32_2 : i32
    scf.if %6 {
      %c0_41 = arith.constant 0 : index
      %c0_42 = arith.constant 0 : index
      %c0_43 = arith.constant 0 : index
      %55 = vector.load %arg3[%c0_41, %c0_42, %c0_43] : memref<8x16x300xbf16, #tpu.memory_space<vmem>>, vector<8x16x300xbf16>
      %56 = vector.shape_cast %55 : vector<8x16x300xbf16> to vector<128x300xbf16>
      %c0_44 = arith.constant 0 : index
      %c0_45 = arith.constant 0 : index
      %57 = vector.load %arg4[%c0_44, %c0_45] : memref<300x768xbf16, #tpu.memory_space<vmem>>, vector<300x768xbf16>
      %cst_46 = arith.constant dense<0.000000e+00> : vector<128x768xf32>
      %58 = tpu.matmul %56, %57, %cst_46 {dimension_numbers = #tpu.dot_dimension_numbers<[1], [0], [0], [1], [0, 0, 1, 1], [], []>} : vector<128x300xbf16>, vector<300x768xbf16>, vector<128x768xf32> -> vector<128x768xf32>
      %c0_47 = arith.constant 0 : index
      %c0_48 = arith.constant 0 : index
      %59 = vector.load %arg5[%c0_47, %c0_48] : memref<1x768xf32, #tpu.memory_space<vmem>>, vector<1x768xf32>
      %60 = vector.broadcast %59 : vector<1x768xf32> to vector<128x768xf32>
      %61 = arith.addf %58, %60 : vector<128x768xf32>
      %62 = arith.truncf %61 : vector<128x768xf32> to vector<128x768xbf16>
      %63 = vector.shape_cast %62 : vector<128x768xbf16> to vector<8x16x768xbf16>
      %c0_49 = arith.constant 0 : index
      %c0_50 = arith.constant 0 : index
      %c0_51 = arith.constant 0 : index
      %64 = vector.load %arg17[%c0_49, %c0_50, %c0_51] : memref<8x16x768xbf16, #tpu.memory_space<vmem>>, vector<8x16x768xbf16>
      tpu.vector_store %arg17[%c0_49, %c0_50, %c0_51], %63 {strides = array<i32>} : memref<8x16x768xbf16, #tpu.memory_space<vmem>>, vector<8x16x768xbf16>,
    } else {
    }
    %c0_3 = arith.constant 0 : index
    %c0_4 = arith.constant 0 : index
    %7 = vector.load %arg2[%c0_3, %c0_4] : memref<16x1xi32, #tpu.memory_space<vmem>>, vector<16x1xi32>
    %c0_5 = arith.constant 0 : index
    %c0_6 = arith.constant 0 : index
    %8 = vector.load %arg6[%c0_5, %c0_6] : memref<256x768xbf16, #tpu.memory_space<vmem>>, vector<256x768xbf16>
    %c0_7 = arith.constant 0 : index
    %c0_8 = arith.constant 0 : index
    %9 = vector.load %arg7[%c0_7, %c0_8] : memref<1x768xf32, #tpu.memory_space<vmem>>, vector<1x768xf32>
    %cst_9 = arith.constant 0.000000e+00 : f32
    %10 = vector.broadcast %cst_9 : f32 to vector<16x256xf32>
    %c0_i32_10 = arith.constant 0 : i32
    %11 = arith.subi %1, %c0_i32_10 : i32
    %12 = arith.addi %c0_i32_10, %11 : i32
    %c1_i32 = arith.constant 1 : i32
    %13 = scf.for %arg19 = %c0_i32_10 to %12 step %c1_i32 iter_args(%arg20 = %10) -> (vector<16x256xf32>)  : i32 {
      %55 = arith.index_cast %arg19 : i32 to index
      %c0_41 = arith.constant 0 : index
      %c0_42 = arith.constant 0 : index
      %56 = vector.load %arg17[%55, %c0_41, %c0_42] : memref<8x16x768xbf16, #tpu.memory_space<vmem>>, vector<1x16x768xbf16>
      %57 = vector.shape_cast %56 : vector<1x16x768xbf16> to vector<16x768xbf16>
      %58 = arith.truncf %arg20 : vector<16x256xf32> to vector<16x256xbf16>
      %cst_43 = arith.constant dense<0.000000e+00> : vector<16x768xf32>
      %59 = tpu.matmul %58, %8, %cst_43 {dimension_numbers = #tpu.dot_dimension_numbers<[1], [0], [0], [1], [0, 0, 1, 1], [], []>} : vector<16x256xbf16>, vector<256x768xbf16>, vector<16x768xf32> -> vector<16x768xf32>
      %60 = vector.broadcast %9 : vector<1x768xf32> to vector<16x768xf32>
      %61 = arith.addf %59, %60 : vector<16x768xf32>
      %62 = vector.extract_strided_slice %57 {offsets = [0, 0], sizes = [16, 256], strides = [1, 1]} : vector<16x768xbf16> to vector<16x256xbf16>
      %63 = vector.extract_strided_slice %61 {offsets = [0, 0], sizes = [16, 256], strides = [1, 1]} : vector<16x768xf32> to vector<16x256xf32>
      %64 = arith.extf %62 : vector<16x256xbf16> to vector<16x256xf32>
      %65 = arith.addf %64, %63 : vector<16x256xf32>
      %66 = arith.negf %65 : vector<16x256xf32>
      %67 = math.exp %66 : vector<16x256xf32>
      %cst_44 = arith.constant 1.000000e+00 : f32
      %68 = vector.broadcast %cst_44 : f32 to vector<16x256xf32>
      %69 = arith.addf %68, %67 : vector<16x256xf32>
      %70 = arith.divf %68, %69 : vector<16x256xf32>
      %71 = vector.extract_strided_slice %57 {offsets = [0, 256], sizes = [16, 256], strides = [1, 1]} : vector<16x768xbf16> to vector<16x256xbf16>
      %72 = vector.extract_strided_slice %61 {offsets = [0, 256], sizes = [16, 256], strides = [1, 1]} : vector<16x768xf32> to vector<16x256xf32>
      %73 = arith.extf %71 : vector<16x256xbf16> to vector<16x256xf32>
      %74 = arith.addf %73, %72 : vector<16x256xf32>
      %75 = arith.negf %74 : vector<16x256xf32>
      %76 = math.exp %75 : vector<16x256xf32>
      %cst_45 = arith.constant 1.000000e+00 : f32
      %77 = vector.broadcast %cst_45 : f32 to vector<16x256xf32>
      %78 = arith.addf %77, %76 : vector<16x256xf32>
      %79 = arith.divf %77, %78 : vector<16x256xf32>
      %80 = vector.extract_strided_slice %57 {offsets = [0, 512], sizes = [16, 256], strides = [1, 1]} : vector<16x768xbf16> to vector<16x256xbf16>
      %81 = vector.extract_strided_slice %61 {offsets = [0, 512], sizes = [16, 256], strides = [1, 1]} : vector<16x768xf32> to vector<16x256xf32>
      %82 = arith.mulf %70, %81 : vector<16x256xf32>
      %83 = arith.extf %80 : vector<16x256xbf16> to vector<16x256xf32>
      %84 = arith.addf %83, %82 : vector<16x256xf32>
      %85 = math.tanh %84 : vector<16x256xf32>
      %86 = arith.subf %arg20, %85 : vector<16x256xf32>
      %87 = arith.mulf %79, %86 : vector<16x256xf32>
      %88 = arith.addf %85, %87 : vector<16x256xf32>
      %89 = vector.broadcast %arg19 : i32 to vector<16x1xi32>
      %90 = arith.cmpi sgt, %7, %89 : vector<16x1xi32>
      %cst_46 = arith.constant 0.000000e+00 : f32
      %91 = vector.shape_cast %90 : vector<16x1xi1> to vector<16x1xi1>
      %92 = vector.broadcast %91 : vector<16x1xi1> to vector<16x256xi1>
      %93 = vector.broadcast %cst_46 : f32 to vector<16x256xf32>
      %94 = arith.select %92, %88, %93 : vector<16x256xi1>, vector<16x256xf32>
      %95 = arith.truncf %94 : vector<16x256xf32> to vector<16x256xbf16>
      %96 = arith.index_cast %arg19 : i32 to index
      %c0_47 = arith.constant 0 : index
      %c0_48 = arith.constant 0 : index
      %97 = vector.load %arg18[%96, %c0_47, %c0_48] : memref<8x16x256xbf16, #tpu.memory_space<vmem>>, vector<1x16x256xbf16>
      %98 = vector.shape_cast %97 : vector<1x16x256xbf16> to vector<16x256xbf16>
      %99 = vector.shape_cast %95 : vector<16x256xbf16> to vector<1x16x256xbf16>
      tpu.vector_store %arg18[%96, %c0_47, %c0_48], %99 {strides = array<i32>} : memref<8x16x256xbf16, #tpu.memory_space<vmem>>, vector<1x16x256xbf16>,
      %100 = vector.shape_cast %90 : vector<16x1xi1> to vector<16x1xi1>
      %101 = vector.broadcast %100 : vector<16x1xi1> to vector<16x256xi1>
      %102 = arith.select %101, %88, %arg20 : vector<16x256xi1>, vector<16x256xf32>
      scf.yield %102 : vector<16x256xf32>
    }
    %c0_11 = arith.constant 0 : index
    %c0_12 = arith.constant 0 : index
    %14 = vector.load %arg15[%c0_11, %c0_12] : memref<16x256xf32, #tpu.memory_space<vmem>>, vector<16x256xf32>
    tpu.vector_store %arg15[%c0_11, %c0_12], %13 {strides = array<i32>} : memref<16x256xf32, #tpu.memory_space<vmem>>, vector<16x256xf32>,
    %15 = arith.truncf %13 : vector<16x256xf32> to vector<16x256xbf16>
    %c0_13 = arith.constant 0 : index
    %c0_14 = arith.constant 0 : index
    %16 = vector.load %arg12[%c0_13, %c0_14] : memref<256x128xbf16, #tpu.memory_space<vmem>>, vector<256x128xbf16>
    %cst_15 = arith.constant dense<0.000000e+00> : vector<16x128xf32>
    %17 = tpu.matmul %15, %16, %cst_15 {dimension_numbers = #tpu.dot_dimension_numbers<[1], [0], [0], [1], [0, 0, 1, 1], [], []>} : vector<16x256xbf16>, vector<256x128xbf16>, vector<16x128xf32> -> vector<16x128xf32>
    %c0_16 = arith.constant 0 : index
    %c0_17 = arith.constant 0 : index
    %18 = vector.load %arg13[%c0_16, %c0_17] : memref<1x128xf32, #tpu.memory_space<vmem>>, vector<1x128xf32>
    %19 = vector.broadcast %18 : vector<1x128xf32> to vector<16x128xf32>
    %20 = arith.addf %17, %19 : vector<16x128xf32>
    %c0_18 = arith.constant 0 : index
    %c0_19 = arith.constant 0 : index
    %21 = vector.load %arg16[%c0_18, %c0_19] : memref<16x128xf32, #tpu.memory_space<vmem>>, vector<16x128xf32>
    tpu.vector_store %arg16[%c0_18, %c0_19], %20 {strides = array<i32>} : memref<16x128xf32, #tpu.memory_space<vmem>>, vector<16x128xf32>,
    %c0_20 = arith.constant 0 : index
    %c0_21 = arith.constant 0 : index
    %c0_22 = arith.constant 0 : index
    %22 = vector.load %arg18[%c0_20, %c0_21, %c0_22] : memref<8x16x256xbf16, #tpu.memory_space<vmem>>, vector<8x16x256xbf16>
    %23 = vector.shape_cast %22 : vector<8x16x256xbf16> to vector<128x256xbf16>
    %c0_23 = arith.constant 0 : index
    %c0_24 = arith.constant 0 : index
    %24 = vector.load %arg8[%c0_23, %c0_24] : memref<256x128xbf16, #tpu.memory_space<vmem>>, vector<256x128xbf16>
    %cst_25 = arith.constant dense<0.000000e+00> : vector<128x128xf32>
    %25 = tpu.matmul %23, %24, %cst_25 {dimension_numbers = #tpu.dot_dimension_numbers<[1], [0], [0], [1], [0, 0, 1, 1], [], []>} : vector<128x256xbf16>, vector<256x128xbf16>, vector<128x128xf32> -> vector<128x128xf32>
    %c0_26 = arith.constant 0 : index
    %c0_27 = arith.constant 0 : index
    %26 = vector.load %arg9[%c0_26, %c0_27] : memref<1x128xf32, #tpu.memory_space<vmem>>, vector<1x128xf32>
    %27 = vector.broadcast %26 : vector<1x128xf32> to vector<128x128xf32>
    %28 = arith.addf %25, %27 : vector<128x128xf32>
    %cst_28 = arith.constant 0.000000e+00 : f32
    %29 = vector.broadcast %cst_28 : f32 to vector<128x128xf32>
    %30 = arith.maximumf %28, %29 : vector<128x128xf32>
    %cst_29 = arith.constant dense<0.000000e+00> : vector<128xf32>
    %31 = vector.multi_reduction <add>, %30, %cst_29 [1] : vector<128x128xf32> to vector<128xf32>
    %32 = vector.shape_cast %31 : vector<128xf32> to vector<128x1xf32>
    %cst_30 = arith.constant 1.280000e+02 : f32
    %33 = vector.broadcast %cst_30 : f32 to vector<128x1xf32>
    %34 = arith.divf %32, %33 : vector<128x1xf32>
    %35 = vector.broadcast %34 : vector<128x1xf32> to vector<128x128xf32>
    %36 = arith.subf %30, %35 : vector<128x128xf32>
    %37 = arith.mulf %36, %36 : vector<128x128xf32>
    %cst_31 = arith.constant dense<0.000000e+00> : vector<128xf32>
    %38 = vector.multi_reduction <add>, %37, %cst_31 [1] : vector<128x128xf32> to vector<128xf32>
    %39 = vector.shape_cast %38 : vector<128xf32> to vector<128x1xf32>
    %cst_32 = arith.constant 1.280000e+02 : f32
    %40 = vector.broadcast %cst_32 : f32 to vector<128x1xf32>
    %41 = arith.divf %39, %40 : vector<128x1xf32>
    %cst_33 = arith.constant 9.99999974E-6 : f32
    %42 = vector.broadcast %cst_33 : f32 to vector<128x1xf32>
    %43 = arith.addf %41, %42 : vector<128x1xf32>
    %44 = math.rsqrt %43 : vector<128x1xf32>
    %45 = vector.broadcast %44 : vector<128x1xf32> to vector<128x128xf32>
    %46 = arith.mulf %36, %45 : vector<128x128xf32>
    %c0_34 = arith.constant 0 : index
    %c0_35 = arith.constant 0 : index
    %47 = vector.load %arg10[%c0_34, %c0_35] : memref<1x128xf32, #tpu.memory_space<vmem>>, vector<1x128xf32>
    %48 = vector.broadcast %47 : vector<1x128xf32> to vector<128x128xf32>
    %49 = arith.mulf %46, %48 : vector<128x128xf32>
    %c0_36 = arith.constant 0 : index
    %c0_37 = arith.constant 0 : index
    %50 = vector.load %arg11[%c0_36, %c0_37] : memref<1x128xf32, #tpu.memory_space<vmem>>, vector<1x128xf32>
    %51 = vector.broadcast %50 : vector<1x128xf32> to vector<128x128xf32>
    %52 = arith.addf %49, %51 : vector<128x128xf32>
    %53 = vector.shape_cast %52 : vector<128x128xf32> to vector<8x16x128xf32>
    %c0_38 = arith.constant 0 : index
    %c0_39 = arith.constant 0 : index
    %c0_40 = arith.constant 0 : index
    %54 = vector.load %arg14[%c0_38, %c0_39, %c0_40] : memref<8x16x128xf32, #tpu.memory_space<vmem>>, vector<8x16x128xf32>
    tpu.vector_store %arg14[%c0_38, %c0_39, %c0_40], %53 {strides = array<i32>} : memref<8x16x128xf32, #tpu.memory_space<vmem>>, vector<8x16x128xf32>,
    return
  }
  func.func @transform_0(%arg0: i32, %arg1: memref<1xi32, #tpu.memory_space<smem>>) -> (i32, i32) {
    %c0_i32 = arith.constant 0 : i32
    %c0_i32_0 = arith.constant 0 : i32
    return %arg0, %c0_i32 : i32, i32
  }
  func.func @transform_1(%arg0: i32, %arg1: memref<1xi32, #tpu.memory_space<smem>>) -> (i32, i32, i32) {
    %c0_i32 = arith.constant 0 : i32
    %c0_i32_0 = arith.constant 0 : i32
    %c0_i32_1 = arith.constant 0 : i32
    return %c0_i32, %arg0, %c0_i32_0 : i32, i32, i32
  }
  func.func @transform_2(%arg0: i32, %arg1: memref<1xi32, #tpu.memory_space<smem>>) -> (i32, i32) {
    %c0_i32 = arith.constant 0 : i32
    %c0_i32_0 = arith.constant 0 : i32
    %c0_i32_1 = arith.constant 0 : i32
    return %c0_i32, %c0_i32_0 : i32, i32
  }
  func.func @transform_3(%arg0: i32, %arg1: memref<1xi32, #tpu.memory_space<smem>>) -> (i32, i32) {
    %c0_i32 = arith.constant 0 : i32
    %c0_i32_0 = arith.constant 0 : i32
    %c0_i32_1 = arith.constant 0 : i32
    return %c0_i32, %c0_i32_0 : i32, i32
  }
  func.func @transform_4(%arg0: i32, %arg1: memref<1xi32, #tpu.memory_space<smem>>) -> (i32, i32) {
    %c0_i32 = arith.constant 0 : i32
    %c0_i32_0 = arith.constant 0 : i32
    %c0_i32_1 = arith.constant 0 : i32
    return %c0_i32, %c0_i32_0 : i32, i32
  }
  func.func @transform_5(%arg0: i32, %arg1: memref<1xi32, #tpu.memory_space<smem>>) -> (i32, i32) {
    %c0_i32 = arith.constant 0 : i32
    %c0_i32_0 = arith.constant 0 : i32
    %c0_i32_1 = arith.constant 0 : i32
    return %c0_i32, %c0_i32_0 : i32, i32
  }
  func.func @transform_6(%arg0: i32, %arg1: memref<1xi32, #tpu.memory_space<smem>>) -> (i32, i32) {
    %c0_i32 = arith.constant 0 : i32
    %c0_i32_0 = arith.constant 0 : i32
    %c0_i32_1 = arith.constant 0 : i32
    return %c0_i32, %c0_i32_0 : i32, i32
  }
  func.func @transform_7(%arg0: i32, %arg1: memref<1xi32, #tpu.memory_space<smem>>) -> (i32, i32) {
    %c0_i32 = arith.constant 0 : i32
    %c0_i32_0 = arith.constant 0 : i32
    %c0_i32_1 = arith.constant 0 : i32
    return %c0_i32, %c0_i32_0 : i32, i32
  }
  func.func @transform_8(%arg0: i32, %arg1: memref<1xi32, #tpu.memory_space<smem>>) -> (i32, i32) {
    %c0_i32 = arith.constant 0 : i32
    %c0_i32_0 = arith.constant 0 : i32
    %c0_i32_1 = arith.constant 0 : i32
    return %c0_i32, %c0_i32_0 : i32, i32
  }
  func.func @transform_9(%arg0: i32, %arg1: memref<1xi32, #tpu.memory_space<smem>>) -> (i32, i32) {
    %c0_i32 = arith.constant 0 : i32
    %c0_i32_0 = arith.constant 0 : i32
    %c0_i32_1 = arith.constant 0 : i32
    return %c0_i32, %c0_i32_0 : i32, i32
  }
  func.func @transform_10(%arg0: i32, %arg1: memref<1xi32, #tpu.memory_space<smem>>) -> (i32, i32) {
    %c0_i32 = arith.constant 0 : i32
    %c0_i32_0 = arith.constant 0 : i32
    %c0_i32_1 = arith.constant 0 : i32
    return %c0_i32, %c0_i32_0 : i32, i32
  }
  func.func @transform_11(%arg0: i32, %arg1: memref<1xi32, #tpu.memory_space<smem>>) -> (i32, i32) {
    %c0_i32 = arith.constant 0 : i32
    %c0_i32_0 = arith.constant 0 : i32
    %c0_i32_1 = arith.constant 0 : i32
    return %c0_i32, %c0_i32_0 : i32, i32
  }
  func.func @transform_12(%arg0: i32, %arg1: memref<1xi32, #tpu.memory_space<smem>>) -> (i32, i32, i32) {
    %c0_i32 = arith.constant 0 : i32
    %c0_i32_0 = arith.constant 0 : i32
    %c0_i32_1 = arith.constant 0 : i32
    return %c0_i32, %arg0, %c0_i32_0 : i32, i32, i32
  }
  func.func @transform_13(%arg0: i32, %arg1: memref<1xi32, #tpu.memory_space<smem>>) -> (i32, i32) {
    %c0_i32 = arith.constant 0 : i32
    %c0_i32_0 = arith.constant 0 : i32
    return %arg0, %c0_i32 : i32, i32
  }
  func.func @transform_14(%arg0: i32, %arg1: memref<1xi32, #tpu.memory_space<smem>>) -> (i32, i32) {
    %c0_i32 = arith.constant 0 : i32
    %c0_i32_0 = arith.constant 0 : i32
    return %arg0, %c0_i32 : i32, i32
  }
}

</mosaic_0001>

<bundles_post_ra>
// kernel: tpu_custom_call.1
= control target key start
LH: loop header
LB: loop body
LE: loop exit
PB: predicated region body
PF: predicated region fallthrough
CT: control target
= control target key end

     0   :  { %22 = vsyncpa [#allocation7], 0  ;;  %s6103_s0 = inlined_call_operand.<no memory space> [shape: s32[1], index: 0, kind: input, shape index: {}]   ;;  %s6104_s1 = inlined_call_operand.vmem [shape: s32[16,1], index: 1, kind: input, shape index: {}]   ;;  %s6105_s2 = inlined_call_operand.hbm [shape: bf16[8,16,300], index: 2, kind: input, shape index: {}]   ;;  %s6106_s3 = inlined_call_operand.hbm [shape: bf16[300,768], index: 3, kind: input, shape index: {}]   ;;  %s6107_s4 = inlined_call_operand.vmem [shape: f32[1,768], index: 4, kind: input, shape index: {}]   ;;  %s6108_s5 = inlined_call_operand.hbm [shape: bf16[256,768], index: 5, kind: input, shape index: {}]   ;;  %s6109_s6 = inlined_call_operand.vmem [shape: f32[1,768], index: 6, kind: input, shape index: {}]   ;;  %s6110_s7 = inlined_call_operand.hbm [shape: bf16[256,128], index: 7, kind: input, shape index: {}]   ;;  %s6111_s8 = inlined_call_operand.vmem [shape: f32[1,128], index: 8, kind: input, shape index: {}]   ;;  %s6112_s9 = inlined_call_operand.vmem [shape: f32[1,128], index: 9, kind: input, shape index: {}]   ;;  %s6113_s10 = inlined_call_operand.vmem [shape: f32[1,128], index: 10, kind: input, shape index: {}]   ;;  %s6114_s11 = inlined_call_operand.hbm [shape: bf16[256,128], index: 11, kind: input, shape index: {}]   ;;  %s6115_s12 = inlined_call_operand.vmem [shape: f32[1,128], index: 12, kind: input, shape index: {}]   ;;  %s6116_s13 = inlined_call_operand.hbm [shape: f32[8,16,128], index: 13, kind: output, shape index: {0}]   ;;  %s6117_s14 = inlined_call_operand.hbm [shape: f32[16,256], index: 14, kind: output, shape index: {1}]   ;;  %s6118_s15 = inlined_call_operand.hbm [shape: f32[16,128], index: 15, kind: output, shape index: {2}]  }
   0x1   :  { %23 = vsyncpa [#allocation10], 0 }
   0x2   :  { %24 = vsyncpa [#allocation13], 0 }
   0x3   :  { %25 = vsyncpa [#allocation8], 0 }
   0x4   :  { %26 = vsyncpa [#allocation17], 0  ;;  %s4721_s18 = smov [#allocation9]   ;;  %s4463_s22 = scalar_lea.hbm %s6106_s3, 14592 }
   0x5   :  { %s46_s19 = sshll.u32 %s4721_s18, 4  ;;  %p4464_p0 = scmp.ne.s32.totalorder %s6106_s3, %s4463_s22  ;;  %s47_s19 = int_to_ptr.vmem [resolvable:$true] %s46_s19 }
   0x6   :  { %p4467_p1 = scmp.lt.u32.totalorder %s4463_s22, %s6106_s3 }
   0x8   :  { %p4469_p2 = pnand %p4467_p1, %p4464_p0 }
   0xa   :  { %4472 = shalt.err (!%p4469_p2)
}
   0xb   :  { %s4473_s27 = scalar_lea.vmem %s47_s19, 14592  ;;  %p4478_p4 = scmp.lt.s32.totalorder %s47_s19, %s47_s19 }
   0xc   :  { %p4474_p3 = scmp.ne.s32.totalorder %s47_s19, %s4473_s27  ;;  %p4479_p5 = scmp.lt.s32.totalorder %s4473_s27, %s4473_s27 }
   0xe   :  { %p4480_p6 = por %p4479_p5, %p4478_p4 }
  0x10   :  { %p4481_p7 = pnand %p4480_p6, %p4474_p3 }
  0x12   :  { %4484 = shalt.err (!%p4481_p7)
}
  0x13   :  { %s6119_s28 = smov 384   ;;  %s4723_s29 = smov 24  }
  0x14   :  { %52 = dma.hbm_to_vmem [thread:$0]  %s6106_s3, 14592, %s47_s19, [#allocation10], %s6119_s28, %s6119_s28, %s4723_s29  }
  0x15   :  { %s4724_s17 = smov [#allocation12]   ;;  %s4485_s22 = scalar_lea.hbm %s6110_s7, 2048 }
  0x16   :  { %s74_s18 = sshll.u32 %s4724_s17, 4  ;;  %p4486_p8 = scmp.ne.s32.totalorder %s6110_s7, %s4485_s22  ;;  %s75_s18 = int_to_ptr.vmem [resolvable:$true] %s74_s18 }
  0x17   :  { %p4489_p9 = scmp.lt.u32.totalorder %s4485_s22, %s6110_s7 }
  0x19   :  { %p4491_p10 = pnand %p4489_p9, %p4486_p8 }
  0x1b   :  { %4494 = shalt.err (!%p4491_p10)
}
  0x1c   :  { %s4495_s27 = scalar_lea.vmem %s75_s18, 2048  ;;  %p4500_p12 = scmp.lt.s32.totalorder %s75_s18, %s75_s18 }
  0x1d   :  { %p4496_p11 = scmp.ne.s32.totalorder %s75_s18, %s4495_s27  ;;  %p4501_p13 = scmp.lt.s32.totalorder %s4495_s27, %s4495_s27 }
  0x1f   :  { %p4502_p0 = por %p4501_p13, %p4500_p12 }
  0x21   :  { %p4503_p1 = pnand %p4502_p0, %p4496_p11 }
  0x23   :  { %4506 = shalt.err (!%p4503_p1)
}
  0x24   :  { %s6120_s3 = smov 64   ;;  %s6121_s19 = smov 4  }
  0x25   :  { %80 = dma.hbm_to_vmem [thread:$0]  %s6110_s7, 2048, %s75_s18, [#allocation13], %s6120_s3, %s6120_s3, %s6121_s19  }
  0x26   :  { %s4727_s17 = smov [#allocation6]   ;;  %s4507_s23 = scalar_lea.hbm %s6105_s2, 3072 }
  0x27   :  { %s34_s20 = sshll.u32 %s4727_s17, 4  ;;  %p4508_p2 = scmp.ne.s32.totalorder %s6105_s2, %s4507_s23  ;;  %s35_s20 = int_to_ptr.vmem [resolvable:$true] %s34_s20 }
  0x28   :  { %p4511_p3 = scmp.lt.u32.totalorder %s4507_s23, %s6105_s2 }
  0x2a   :  { %p4513_p4 = pnand %p4511_p3, %p4508_p2 }
  0x2c   :  { %4516 = shalt.err (!%p4513_p4)
}
  0x2d   :  { %s4517_s28 = scalar_lea.vmem %s35_s20, 3072  ;;  %p4522_p6 = scmp.lt.s32.totalorder %s35_s20, %s35_s20 }
  0x2e   :  { %p4518_p5 = scmp.ne.s32.totalorder %s35_s20, %s4517_s28  ;;  %p4523_p7 = scmp.lt.s32.totalorder %s4517_s28, %s4517_s28 }
  0x30   :  { %p4524_p8 = por %p4523_p7, %p4522_p6 }
  0x32   :  { %p4525_p9 = pnand %p4524_p8, %p4518_p5 }
  0x34   :  { %4528 = shalt.err (!%p4525_p9)
}
  0x35   :  { %s4728_s7 = smov 192   ;;  %s4729_s18 = smov 12  }
  0x36   :  { %40 = dma.hbm_to_vmem [thread:$0]  %s6105_s2, 3072, %s35_s20, [#allocation7], %s4728_s7, %s4728_s7, %s4729_s18  }
  0x37   :  { %s4730_s17 = smov [#allocation11]   ;;  %s4731_s22 = smov [#allocation14]  }
  0x38   :  { %s60_s21 = sshll.u32 %s4730_s17, 4  ;;  %s92_s23 = sshll.u32 %s4731_s22, 4  ;;  %s61_s21 = int_to_ptr.vmem [resolvable:$true] %s60_s21  ;;  %s93_s23 = int_to_ptr.vmem [resolvable:$true] %s92_s23 }
  0x39   :  { %s4529_s26 = scalar_lea.hbm %s6108_s5, 12288 }
  0x3a   :  { %p4530_p10 = scmp.ne.s32.totalorder %s6108_s5, %s4529_s26  ;;  %p4533_p11 = scmp.lt.u32.totalorder %s4529_s26, %s6108_s5 }
  0x3c   :  { %p4535_p12 = pnand %p4533_p11, %p4530_p10 }
  0x3e   :  { %4538 = shalt.err (!%p4535_p12)
}
  0x3f   :  { %s4539_s2 = scalar_lea.vmem %s61_s21, 12288  ;;  %p4544_p0 = scmp.lt.s32.totalorder %s61_s21, %s61_s21 }
  0x40   :  { %p4540_p13 = scmp.ne.s32.totalorder %s61_s21, %s4539_s2  ;;  %p4545_p1 = scmp.lt.s32.totalorder %s4539_s2, %s4539_s2 }
  0x42   :  { %p4546_p2 = por %p4545_p1, %p4544_p0 }
  0x44   :  { %p4547_p3 = pnand %p4546_p2, %p4540_p13 }
  0x46   :  { %4550 = shalt.err (!%p4547_p3)
}
  0x47   :  { %s6238_s20 = smov 384   ;;  %s4551_s19 = scalar_lea.hbm %s6114_s11, 2048 }
  0x48   :  { %66 = dma.hbm_to_vmem [thread:$0]  %s6108_s5, 12288, %s61_s21, [#allocation10], %s6238_s20, %s6238_s20, %s4723_s29  }
  0x49   :  { %p4552_p4 = scmp.ne.s32.totalorder %s6114_s11, %s4551_s19  ;;  %p4555_p5 = scmp.lt.u32.totalorder %s4551_s19, %s6114_s11 }
  0x4b   :  { %p4557_p6 = pnand %p4555_p5, %p4552_p4 }
  0x4d   :  { %4560 = shalt.err (!%p4557_p6)
}
  0x4e   :  { %s4561_s25 = scalar_lea.vmem %s93_s23, 2048  ;;  %p4566_p8 = scmp.lt.s32.totalorder %s93_s23, %s93_s23 }
  0x4f   :  { %p4562_p7 = scmp.ne.s32.totalorder %s93_s23, %s4561_s25  ;;  %p4567_p9 = scmp.lt.s32.totalorder %s4561_s25, %s4561_s25 }
  0x51   :  { %p4568_p10 = por %p4567_p9, %p4566_p8 }
  0x53   :  { %p4569_p11 = pnand %p4568_p10, %p4562_p7 }
  0x55   :  { %4572 = shalt.err (!%p4569_p11)
}
  0x56   :  { %s6239_s5 = smov 4   ;;  %s6240_s29 = smov 64  }
  0x57   :  { %98 = dma.hbm_to_vmem [thread:$0]  %s6114_s11, 2048, %s93_s23, [#allocation13], %s6240_s29, %s6240_s29, %s6239_s5  }
  0x58   :  { %4675 = dma.done.wait [#allocation7], 3072  }
  0x59   :  { %4676 = vsyncadd [#allocation7], 4294964224 }
  0x5a   :  { %4677 = dma.done.wait [#allocation10], 26880  }
  0x5b   :  { %4678 = vsyncadd [#allocation10], 4294940416 }
  0x5c   :  { %4679 = dma.done.wait [#allocation13], 4096  }
  0x5d   :  { %4680 = vsyncadd [#allocation13], 4294963200  ;;  %v4732_v0 = vmov 0   ;;  %p3456_p12 = scmp.le.s32.totalorder %s6103_s0, 0 }
  0x5e   :  { %118 = vst [vmem:[#allocation3] sm:$0xff] %v4732_v0  ;;  %119 = vst [vmem:[#allocation3 + $0x8] sm:$0xff] %v4732_v0  ;;  %v4155_v1 = vld [vmem:[#allocation9 + $0x4] ss:$24 sps:$4 sm:$0xff] (!%p3456_p12)   ;;  %v4733_v3 = vmov (!%p3456_p12), 0   ;;  %vm1025_vm0 = vcmask (!%p3456_p12), 1045504  }
  0x5f   :  { %120 = vst [vmem:[#allocation3 + $0x10] sm:$0xff] %v4732_v0  ;;  %121 = vst [vmem:[#allocation3 + $0x18] sm:$0xff] %v4732_v0  ;;  %137 = sbr.rel (%p3456_p12) target bundleno = 564 (0x234), region = 73  ;;  %v4157_v2 = vld [vmem:[#allocation9 + $0x304] ss:$24 sps:$4 sm:$0xff] (!%p3456_p12)   ;;  %1189 = vmatprep.mubr.bf16.mxu0 (!%p3456_p12), %v4733_v3  ;;  %1044 = vmatprep.subr.bf16.mxu1 (!%p3456_p12), %v4155_v1  ;;  %vm1000_vm1 = vcmask (!%p3456_p12), 359424  }
  0x60   :  { %122 = vst [vmem:[#allocation3 + $0x20] sm:$0xff] %v4732_v0  ;;  %123 = vst [vmem:[#allocation3 + $0x28] sm:$0xff] %v4732_v0  ;;  %v4159_v4 = vld [vmem:[#allocation9] ss:$24 sps:$4 sm:$0xff] (!%p3456_p12)   ;;  %1157 = vmatprep.subr.bf16.mxu0 (!%p3456_p12), %v4157_v2  ;;  %v4161_v6 = vld [vmem:[#allocation9 + $0x34] ss:$24 sps:$4 sm:$0xff] (!%p3456_p12)  }
  0x61   :  { %124 = vst [vmem:[#allocation3 + $0x30] sm:$0xff] %v4732_v0  ;;  %125 = vst [vmem:[#allocation3 + $0x38] sm:$0xff] %v4732_v0  ;;  %v4160_v5 = vld [vmem:[#allocation9 + $0x300] ss:$24 sps:$4 sm:$0xff] (!%p3456_p12)   ;;  %1045 = vmatpush1.bf16.msra.mxu1 (!%p3456_p12), %v4159_v4  ;;  %v4163_v7 = vld [vmem:[#allocation9 + $0x334] ss:$24 sps:$4 sm:$0xff] (!%p3456_p12)  }
  0x62   :  { %126 = vst [vmem:[#allocation3 + $0x40] sm:$0xff] %v4732_v0  ;;  %127 = vst [vmem:[#allocation3 + $0x48] sm:$0xff] %v4732_v0  ;;  %1158 = vmatpush1.bf16.msra.mxu0 (!%p3456_p12), %v4160_v5  ;;  %v4165_v8 = vld [vmem:[#allocation9 + $0x30] ss:$24 sps:$4 sm:$0xff] (!%p3456_p12)   ;;  %1046 = vmatprep.subr.bf16.mxu1 (!%p3456_p12), %v4161_v6  ;;  %v4167_v10 = vld [vmem:[#allocation9 + $0x64] ss:$24 sps:$4 sm:$0xff] (!%p3456_p12)  }
  0x63   :  { %128 = vst [vmem:[#allocation3 + $0x50] sm:$0xff] %v4732_v0  ;;  %129 = vst [vmem:[#allocation3 + $0x58] sm:$0xff] %v4732_v0  ;;  %v4166_v9 = vld [vmem:[#allocation9 + $0x330] ss:$24 sps:$4 sm:$0xff] (!%p3456_p12)   ;;  %1159 = vmatprep.subr.bf16.mxu0 (!%p3456_p12), %v4163_v7  ;;  %v4171_v12 = vld [vmem:[#allocation9 + $0x60] ss:$24 sps:$4 sm:$0xff] (!%p3456_p12)  }
  0x64   :  { %130 = vst [vmem:[#allocation3 + $0x60] sm:$0xff] %v4732_v0  ;;  %131 = vst [vmem:[#allocation3 + $0x68] sm:$0xff] %v4732_v0  ;;  %v4169_v11 = vld [vmem:[#allocation9 + $0x364] ss:$24 sps:$4 sm:$0x3f] (!%p3456_p12)  }
  0x65   :  { %132 = vst [vmem:[#allocation3 + $0x70] sm:$0xff] %v4732_v0  ;;  %133 = vst [vmem:[#allocation3 + $0x78] sm:$0xff] %v4732_v0  ;;  %1047 = vmatpush1.bf16.msra.mxu1 (!%p3456_p12), %v4165_v8  ;;  %v4172_v13 = vld [vmem:[#allocation9 + $0x360] ss:$24 sps:$4 sm:$0x3f] (!%p3456_p12)  }
  0x66   :  { %1160 = vmatpush1.bf16.msra.mxu0 %v4166_v9  ;;  %1048 = vmatprep.subr.bf16.mxu1 %v4167_v10  ;;  %v4173_v14 = vld [vmem:[#allocation9 + $0x94] ss:$24 sps:$4 sm:$0xff]   ;;  %v1027_v15 = vsel %vm1025_vm0, %v4172_v13, 0  ;;  %v4176_v17 = vld [vmem:[#allocation9 + $0x10] ss:$24 sps:$4 sm:$0xff]  }
  0x67   :  { %3595 = vmatprep.subr.msk.bf16.mxu0 %vm1025_vm0, %v4169_v11  ;;  %v4904_v16 = vld [vmem:[#allocation6 + $0x8] ss:$12 sps:$4 sm:$0xff]   ;;  %v4180_v20 = vld [vmem:[#allocation9 + $0xc4] ss:$24 sps:$4 sm:$0xff]   ;;  %v4182_v22 = vld [vmem:[#allocation9 + $0x40] ss:$24 sps:$4 sm:$0xff]  }
  0x68   :  { %v4178_v18 = vld [vmem:[#allocation9 + $0x14] ss:$24 sps:$4 sm:$0xff]   ;;  %v4179_v19 = vld [vmem:[#allocation9 + $0x90] ss:$24 sps:$4 sm:$0xff]   ;;  %v4184_v21 = vld [vmem:[#allocation9 + $0x44] ss:$24 sps:$4 sm:$0xff]  }
  0x69   :  { %1049 = vmatpush1.bf16.msra.mxu1 %v4171_v12  ;;  %v4185_v23 = vld [vmem:[#allocation9 + $0xc0] ss:$24 sps:$4 sm:$0xff]   ;;  %v4186_v24 = vld [vmem:[#allocation9 + $0xf4] ss:$24 sps:$4 sm:$0xff]   ;;  %v4189_v27 = vld [vmem:[#allocation9 + $0x70] ss:$24 sps:$4 sm:$0xff]  }
  0x6a   :  { %1162 = vmatpush1.bf16.msra.mxu0 %v1027_v15  ;;  %1050 = vmatprep.subr.bf16.mxu1 %v4173_v14  ;;  %v4191_v25 = vld [vmem:[#allocation9 + $0x74] ss:$24 sps:$4 sm:$0xff]   ;;  %v4192_v28 = vld [vmem:[#allocation9 + $0xf0] ss:$24 sps:$4 sm:$0xff]   ;;  %v4193_v29 = vld [vmem:[#allocation9 + $0x124] ss:$24 sps:$4 sm:$0xff]  }
  0x6b   :  { %1496 = vmatprep.subr.bf16.mxu0 %v4178_v18  ;;  %v4909_v26 = vld [vmem:[#allocation6 + $0x20] ss:$12 sps:$4 sm:$0xff]   ;;  %v4197_v30 = vld [vmem:[#allocation9 + $0xa4] ss:$24 sps:$4 sm:$0xff]   ;;  %v4202_v36 = vld [vmem:[#allocation9 + $0xd0] ss:$24 sps:$4 sm:$0xff]  }
  0x6c   :  { %v4195_v31 = vld [vmem:[#allocation9 + $0xa0] ss:$24 sps:$4 sm:$0xff]   ;;  %v4199_v33 = vld [vmem:[#allocation9 + $0x154] ss:$24 sps:$4 sm:$0xff]   ;;  %v4205_v37 = vld [vmem:[#allocation9 + $0x150] ss:$24 sps:$4 sm:$0xff]  }
  0x6d   :  { %3596 = vmatmul.mubr.msk.bf16.vlgmr.msra.gmra.mrb[0].mxu0 %vm1000_vm1, %v4904_v16  ;;  %1051 = vmatpush1.bf16.msra.mxu1 %v4179_v19  ;;  %v4198_v32 = vld [vmem:[#allocation9 + $0x120] ss:$24 sps:$4 sm:$0xff]   ;;  %v4204_v34 = vld [vmem:[#allocation9 + $0xd4] ss:$24 sps:$4 sm:$0xff]   ;;  %v4206_v38 = vld [vmem:[#allocation9 + $0x184] ss:$24 sps:$4 sm:$0xff]  }
  0x6e   :  { %1497 = vmatpush1.bf16.msra.mxu0 %v4176_v17  ;;  %1052 = vmatprep.subr.bf16.mxu1 %v4180_v20  ;;  %v4914_v35 = vld [vmem:[#allocation6 + $0x38] ss:$12 sps:$4 sm:$0xff]   ;;  %v4212_v42 = vld [vmem:[#allocation9 + $0x1b4] ss:$24 sps:$4 sm:$0xff]   ;;  %v4919_v44 = vld [vmem:[#allocation6 + $0x50] ss:$12 sps:$4 sm:$0xff]  }
  0x6f   :  { %1498 = vmatprep.subr.bf16.mxu0 %v4184_v21  ;;  %1199 = vmatprep.mubr.bf16.mxu0 %v4733_v3  ;;  %v4210_v39 = vld [vmem:[#allocation9 + $0x104] ss:$24 sps:$4 sm:$0xff]   ;;  %v4208_v40 = vld [vmem:[#allocation9 + $0x100] ss:$24 sps:$4 sm:$0xff]   ;;  %v4217_v43 = vld [vmem:[#allocation9 + $0x134] ss:$24 sps:$4 sm:$0xff]  }
  0x70   :  { %v4211_v41 = vld [vmem:[#allocation9 + $0x180] ss:$24 sps:$4 sm:$0xff]   ;;  %v4215_v45 = vld [vmem:[#allocation9 + $0x130] ss:$24 sps:$4 sm:$0xff]   ;;  %v4219_v47 = vld [vmem:[#allocation9 + $0x1e4] ss:$24 sps:$4 sm:$0xff]  }
  0x71   :  { %1053 = vmatpush1.bf16.msra.mxu1 %v4185_v23  ;;  %v4218_v46 = vld [vmem:[#allocation9 + $0x1b0] ss:$24 sps:$4 sm:$0xff]   ;;  %v4223_v48 = vld [vmem:[#allocation9 + $0x164] ss:$24 sps:$4 sm:$0xff]   ;;  %v4221_v49 = vld [vmem:[#allocation9 + $0x160] ss:$24 sps:$4 sm:$0xff]  }
  0x72   :  { %1499 = vmatpush1.bf16.msra.mxu0 %v4182_v22  ;;  %1054 = vmatprep.subr.bf16.mxu1 %v4186_v24  ;;  %v4224_v50 = vld [vmem:[#allocation9 + $0x1e0] ss:$24 sps:$4 sm:$0xff]   ;;  %v4225_v51 = vld [vmem:[#allocation9 + $0x214] ss:$24 sps:$4 sm:$0xff]   ;;  %v4228_v54 = vld [vmem:[#allocation9 + $0x190] ss:$24 sps:$4 sm:$0xff]  }
  0x73   :  { %1500 = vmatprep.subr.bf16.mxu0 %v4191_v25  ;;  %v4230_v52 = vld [vmem:[#allocation9 + $0x194] ss:$24 sps:$4 sm:$0xff]   ;;  %v4231_v55 = vld [vmem:[#allocation9 + $0x210] ss:$24 sps:$4 sm:$0xff]   ;;  %v4232_v56 = vld [vmem:[#allocation9 + $0x244] ss:$24 sps:$4 sm:$0xff]  }
  0x74   :  { %v4924_v53 = vld [vmem:[#allocation6 + $0x68] ss:$12 sps:$4 sm:$0xff]   ;;  %v4236_v57 = vld [vmem:[#allocation9 + $0x1c4] ss:$24 sps:$4 sm:$0xff]   ;;  %v4234_v58 = vld [vmem:[#allocation9 + $0x1c0] ss:$24 sps:$4 sm:$0xff]  }
  0x75   :  { %3597 = vmatmul.mubr.msk.bf16.gmra.mrb[4].mxu0 %vm1000_vm1, %v4909_v26  ;;  %1055 = vmatpush1.bf16.msra.mxu1 %v4192_v28  ;;  %v4237_v59 = vld [vmem:[#allocation9 + $0x240] ss:$24 sps:$4 sm:$0xff]   ;;  %v4238_v60 = vld [vmem:[#allocation9 + $0x274] ss:$24 sps:$4 sm:$0xff]   ;;  %v4931_v63 = vld [vmem:[#allocation6 + $0x4] ss:$12 sps:$4 sm:$0xff]  }
  0x76   :  { %1501 = vmatpush1.bf16.msra.mxu0 %v4189_v27  ;;  %1056 = vmatprep.subr.bf16.mxu1 %v4193_v29  ;;  %v4243_v61 = vld [vmem:[#allocation9 + $0x1f4] ss:$24 sps:$4 sm:$0xff]   ;;  %v4241_v0 = vld [vmem:[#allocation9 + $0x1f0] ss:$24 sps:$4 sm:$0xff]   ;;  %v4245_v2 = vld [vmem:[#allocation9 + $0x2a4] ss:$24 sps:$4 sm:$0xff]  }
  0x77   :  { %1502 = vmatprep.subr.bf16.mxu0 %v4197_v30  ;;  %1209 = vmatprep.mubr.bf16.mxu0 %v4733_v3  ;;  %v4929_v62 = vld [vmem:[#allocation6 + $0x80] ss:$12 sps:$4 sm:$0xff]   ;;  %v4244_v1 = vld [vmem:[#allocation9 + $0x270] ss:$24 sps:$4 sm:$0xff]   ;;  %v4249_v4 = vld [vmem:[#allocation9 + $0x224] ss:$24 sps:$4 sm:$0xff]  }
  0x78   :  { %1076 = vmatprep.mubr.bf16.mxu1 %v4931_v63  ;;  %v4247_v5 = vld [vmem:[#allocation9 + $0x220] ss:$24 sps:$4 sm:$0xff]   ;;  %v4251_v7 = vld [vmem:[#allocation9 + $0x2d4] ss:$24 sps:$4 sm:$0xff]   ;;  %v4254_v10 = vld [vmem:[#allocation9 + $0x250] ss:$24 sps:$4 sm:$0xff]  }
  0x79   :  { %1057 = vmatpush1.bf16.msra.mxu1 %v4198_v32  ;;  %v4250_v6 = vld [vmem:[#allocation9 + $0x2a0] ss:$24 sps:$4 sm:$0xff]   ;;  %v4256_v8 = vld [vmem:[#allocation9 + $0x254] ss:$24 sps:$4 sm:$0xff]   ;;  %v4257_v11 = vld [vmem:[#allocation9 + $0x2d0] ss:$24 sps:$4 sm:$0xff]  }
  0x7a   :  { %1503 = vmatpush1.bf16.msra.mxu0 %v4195_v31  ;;  %1058 = vmatprep.subr.bf16.mxu1 %v4199_v33  ;;  %v4937_v9 = vld [vmem:[#allocation6 + $0x98] ss:$12 sps:$4 sm:$0xff]   ;;  %v4939_v14 = vld [vmem:[#allocation6] ss:$12 sps:$4 sm:$0xff]   ;;  %v4270_v18 = vld [vmem:[#allocation9 + $0x3c] ss:$24 sps:$4 sm:$0xff]  }
  0x7b   :  { %1504 = vmatprep.subr.bf16.mxu0 %v4204_v34  ;;  %v4263_v12 = vld [vmem:[#allocation9 + $0xc] ss:$24 sps:$4 sm:$0xff]   ;;  %v4261_v15 = vld [vmem:[#allocation9 + $0x8] ss:$24 sps:$4 sm:$0xff]   ;;  %v4944_v20 = vld [vmem:[#allocation6 + $0xb0] ss:$12 sps:$4 sm:$0xff]  }
  0x7c   :  { %v4266_v13 = vld [vmem:[#allocation9 + $0x284] ss:$24 sps:$4 sm:$0xff]   ;;  %v4264_v17 = vld [vmem:[#allocation9 + $0x280] ss:$24 sps:$4 sm:$0xff]   ;;  %v4273_v19 = vld [vmem:[#allocation9 + $0x2b4] ss:$24 sps:$4 sm:$0xff]  }
  0x7d   :  { %3598 = vmatmul.mubr.msk.bf16.gmra.mrb[8].mxu0 %vm1000_vm1, %v4914_v35  ;;  %1059 = vmatpush1.bf16.msra.mxu1 %v4205_v37  ;;  %v4946_v21 = vld [vmem:[#allocation6 + $0x1c] ss:$12 sps:$4 sm:$0xff]   ;;  %v4268_v22 = vld [vmem:[#allocation9 + $0x38] ss:$24 sps:$4 sm:$0xff]   ;;  %v4279_v24 = vld [vmem:[#allocation9 + $0x6c] ss:$24 sps:$4 sm:$0xff]  }
  0x7e   :  { %1505 = vmatpush1.bf16.msra.mxu0 %v4202_v36  ;;  %1060 = vmatprep.subr.bf16.mxu1 %v4206_v38  ;;  %v4271_v23 = vld [vmem:[#allocation9 + $0x2b0] ss:$24 sps:$4 sm:$0xff]   ;;  %v4282_v25 = vld [vmem:[#allocation9 + $0x2e4] ss:$24 sps:$4 sm:$0xff]   ;;  %v4280_v29 = vld [vmem:[#allocation9 + $0x2e0] ss:$24 sps:$4 sm:$0xff]  }
  0x7f   :  { %1506 = vmatprep.subr.bf16.mxu0 %v4210_v39  ;;  %1219 = vmatprep.mubr.bf16.mxu0 %v4733_v3  ;;  %v4950_v27 = vld [vmem:[#allocation6 + $0x18] ss:$12 sps:$4 sm:$0xff]   ;;  %v4277_v28 = vld [vmem:[#allocation9 + $0x68] ss:$24 sps:$4 sm:$0xff]   ;;  %v4285_v30 = vld [vmem:[#allocation9 + $0x9c] ss:$24 sps:$4 sm:$0xff]  }
  0x80   :  { %v4954_v31 = vld [vmem:[#allocation6 + $0x34] ss:$12 sps:$4 sm:$0xff]   ;;  %v4283_v32 = vld [vmem:[#allocation9 + $0x98] ss:$24 sps:$4 sm:$0xff]   ;;  %v4291_v33 = vld [vmem:[#allocation9 + $0xcc] ss:$24 sps:$4 sm:$0xff]  }
  0x81   :  { %1061 = vmatpush1.bf16.msra.mxu1 %v4211_v41  ;;  %v4960_v34 = vld [vmem:[#allocation6 + $0x30] ss:$12 sps:$4 sm:$0xff]   ;;  %v4289_v36 = vld [vmem:[#allocation9 + $0xc8] ss:$24 sps:$4 sm:$0xff]   ;;  %v4963_v37 = vld [vmem:[#allocation6 + $0x4c] ss:$12 sps:$4 sm:$0xff]  }
  0x82   :  { %1507 = vmatpush1.bf16.msra.mxu0 %v4208_v40  ;;  %1062 = vmatprep.subr.bf16.mxu1 %v4212_v42  ;;  %v4294_v38 = vld [vmem:[#allocation9 + $0xfc] ss:$24 sps:$4 sm:$0xff]   ;;  %v4292_v39 = vld [vmem:[#allocation9 + $0xf8] ss:$24 sps:$4 sm:$0xff]   ;;  %v4300_v40 = vld [vmem:[#allocation9 + $0x12c] ss:$24 sps:$4 sm:$0xff]  }
  0x83   :  { %1508 = vmatprep.subr.bf16.mxu0 %v4217_v43  ;;  %v4967_v41 = vld [vmem:[#allocation6 + $0x48] ss:$12 sps:$4 sm:$0xff]  }
  0x84   :  { %v4298_v42 = vld [vmem:[#allocation9 + $0x128] ss:$24 sps:$4 sm:$0xff]   ;;  %v4303_v43 = vld [vmem:[#allocation9 + $0x15c] ss:$24 sps:$4 sm:$0xff]  }
  0x85   :  { %3599 = vmatmul.mubr.msk.bf16.gmra.mrb[12].mxu0 %vm1000_vm1, %v4919_v44  ;;  %1063 = vmatpush1.bf16.msra.mxu1 %v4218_v46  ;;  %v4343_v46 = vld [vmem:[#allocation9 + $0x310] ss:$24 sps:$4 sm:$0xff]  }
  0x86   :  { %1509 = vmatpush1.bf16.msra.mxu0 %v4215_v45  ;;  %1064 = vmatprep.subr.bf16.mxu1 %v4219_v47  ;;  %v4970_v45 = vld [vmem:[#allocation6 + $0x64] ss:$12 sps:$4 sm:$0xff]   ;;  %v4345_v47 = vld [vmem:[#allocation9 + $0x314] ss:$24 sps:$4 sm:$0xff]  }
  0x87   :  { %1510 = vmatprep.subr.bf16.mxu0 %v4223_v48  ;;  %1229 = vmatprep.mubr.bf16.mxu0 %v4733_v3  ;;  %v4348_v48 = vld [vmem:[#allocation9 + $0x344] ss:$24 sps:$4 sm:$0xff]  }
  0x89   :  { %1065 = vmatpush1.bf16.msra.mxu1 %v4224_v50  ;;  %v4309_v50 = vld [vmem:[#allocation9 + $0x18c] ss:$24 sps:$4 sm:$0xff]  }
  0x8a   :  { %1511 = vmatpush1.bf16.msra.mxu0 %v4221_v49  ;;  %1066 = vmatprep.subr.bf16.mxu1 %v4225_v51  ;;  %v4301_v49 = vld [vmem:[#allocation9 + $0x158] ss:$24 sps:$4 sm:$0xff]  }
  0x8b   :  { %1512 = vmatprep.subr.bf16.mxu0 %v4230_v52  ;;  %v4346_v51 = vld [vmem:[#allocation9 + $0x340] ss:$24 sps:$4 sm:$0xff]   ;;  %v4349_v52 = vld [vmem:[#allocation9 + $0x374] ss:$24 sps:$4 sm:$0x3f]  }
  0x8d   :  { %3600 = vmatmul.mubr.msk.bf16.gmra.mrb[16].mxu0 %vm1000_vm1, %v4924_v53  ;;  %1067 = vmatpush1.bf16.msra.mxu1 %v4231_v55  ;;  %v4976_v55 = vld [vmem:[#allocation6 + $0x60] ss:$12 sps:$4 sm:$0xff]  }
  0x8e   :  { %1513 = vmatpush1.bf16.msra.mxu0 %v4228_v54  ;;  %1068 = vmatprep.subr.bf16.mxu1 %v4232_v56  ;;  %v4351_v54 = vld [vmem:[#allocation9 + $0x370] ss:$24 sps:$4 sm:$0x3f]  }
  0x8f   :  { %1514 = vmatprep.subr.bf16.mxu0 %v4236_v57  ;;  %1239 = vmatprep.mubr.bf16.mxu0 %v4733_v3  ;;  %v4307_v56 = vld [vmem:[#allocation9 + $0x188] ss:$24 sps:$4 sm:$0xff]  }
  0x90   :  { %v4979_v57 = vld [vmem:[#allocation6 + $0x7c] ss:$12 sps:$4 sm:$0xff]  }
  0x91   :  { %1069 = vmatpush1.bf16.msra.mxu1 %v4237_v59  ;;  %v1039_v59 = vsel %vm1025_vm0, %v4351_v54, 0 }
  0x92   :  { %1515 = vmatpush1.bf16.msra.mxu0 %v4234_v58  ;;  %1070 = vmatprep.subr.bf16.mxu1 %v4238_v60  ;;  %v4312_v58 = vld [vmem:[#allocation9 + $0x1bc] ss:$24 sps:$4 sm:$0xff]   ;;  %v4310_v60 = vld [vmem:[#allocation9 + $0x1b8] ss:$24 sps:$4 sm:$0xff]  }
  0x93   :  { %1516 = vmatprep.subr.bf16.mxu0 %v4243_v61  ;;  %v4318_v61 = vld [vmem:[#allocation9 + $0x1ec] ss:$24 sps:$4 sm:$0xff]  }
  0x95   :  { %3601 = vmatmul.mubr.msk.bf16.gmra.mrb[20].mxu0 %vm1000_vm1, %v4929_v62  ;;  %1071 = vmatpush1.bf16.msra.mxu1 %v4244_v1  ;;  %v4316_v1 = vld [vmem:[#allocation9 + $0x1e8] ss:$24 sps:$4 sm:$0xff]  }
  0x96   :  { %1517 = vmatpush1.bf16.msra.mxu0 %v4241_v0  ;;  %1072 = vmatprep.subr.bf16.mxu1 %v4245_v2  ;;  %v4986_v0 = vld [vmem:[#allocation6 + $0x78] ss:$12 sps:$4 sm:$0xff]   ;;  %v4989_v2 = vld [vmem:[#allocation6 + $0x94] ss:$12 sps:$4 sm:$0xff]  }
  0x97   :  { %1518 = vmatprep.subr.bf16.mxu0 %v4249_v4  ;;  %1249 = vmatprep.mubr.bf16.mxu0 %v4733_v3  ;;  %v4321_v4 = vld [vmem:[#allocation9 + $0x21c] ss:$24 sps:$4 sm:$0xff]  }
  0x99   :  { %1073 = vmatpush1.bf16.msra.mxu1 %v4250_v6  ;;  %v4327_v6 = vld [vmem:[#allocation9 + $0x24c] ss:$24 sps:$4 sm:$0xff]  }
  0x9a   :  { %1519 = vmatpush1.bf16.msra.mxu0 %v4247_v5  ;;  %1074 = vmatprep.subr.bf16.mxu1 %v4251_v7  ;;  %v4319_v5 = vld [vmem:[#allocation9 + $0x218] ss:$24 sps:$4 sm:$0xff]  }
  0x9b   :  { %1520 = vmatprep.subr.bf16.mxu0 %v4256_v8  ;;  %v4994_v7 = vld [vmem:[#allocation6 + $0x90] ss:$12 sps:$4 sm:$0xff]   ;;  %v4325_v8 = vld [vmem:[#allocation9 + $0x248] ss:$24 sps:$4 sm:$0xff]  }
  0x9d   :  { %3602 = vmatmul.mubr.msk.bf16.gmra.mrb[24].mxu0 %vm1000_vm1, %v4937_v9  ;;  %1075 = vmatpush1.bf16.msra.mxu1 %v4257_v11  ;;  %v4330_v11 = vld [vmem:[#allocation9 + $0x27c] ss:$24 sps:$4 sm:$0xff]  }
  0x9e   :  { %1521 = vmatpush1.bf16.msra.mxu0 %v4254_v10  ;;  %1270 = vmatprep.subr.bf16.mxu1 %v4263_v12  ;;  %v4331_v10 = vld [vmem:[#allocation6 + $0xac] ss:$12 sps:$4 sm:$0xff]  }
  0x9f   :  { %1522 = vmatprep.subr.bf16.mxu0 %v4266_v13  ;;  %1259 = vmatprep.mubr.bf16.mxu0 %v4733_v3  ;;  %v4328_v12 = vld [vmem:[#allocation9 + $0x278] ss:$24 sps:$4 sm:$0xff]   ;;  %v4336_v13 = vld [vmem:[#allocation9 + $0x2ac] ss:$24 sps:$4 sm:$0xff]  }
  0xa0   :  { %1077 = vmatmul.mubr.bf16.vlgmr.msra.gmra.mrb[0].mxu1 %v4939_v14 }
  0xa1   :  { %1271 = vmatpush1.bf16.msra.mxu1 %v4261_v15  ;;  %1086 = vmatprep.mubr.bf16.mxu1 %v4946_v21  ;;  %v4333_v15 = vld [vmem:[#allocation6 + $0xa8] ss:$12 sps:$4 sm:$0xff]  }
  0xa2   :  { %1523 = vmatpush1.bf16.msra.mxu0 %v4264_v17  ;;  %1272 = vmatprep.subr.bf16.mxu1 %v4270_v18  ;;  %v4334_v17 = vld [vmem:[#allocation9 + $0x2a8] ss:$24 sps:$4 sm:$0xff]   ;;  %v4339_v18 = vld [vmem:[#allocation9 + $0x2dc] ss:$24 sps:$4 sm:$0xff]  }
  0xa3   :  { %1524 = vmatprep.subr.bf16.mxu0 %v4273_v19  ;;  %v4337_v19 = vld [vmem:[#allocation9 + $0x2d8] ss:$24 sps:$4 sm:$0xff]  }
  0xa5   :  { %3603 = vmatmul.mubr.msk.bf16.gmra.mrb[28].mxu0 %vm1000_vm1, %v4944_v20  ;;  %1273 = vmatpush1.bf16.msra.mxu1 %v4268_v22  ;;  %v4342_v22 = vld [vmem:[#allocation9 + $0x30c] ss:$24 sps:$4 sm:$0xff]  }
  0xa6   :  { %1525 = vmatpush1.bf16.msra.mxu0 %v4271_v23  ;;  %1274 = vmatprep.subr.bf16.mxu1 %v4279_v24  ;;  %v4340_v23 = vld [vmem:[#allocation9 + $0x308] ss:$24 sps:$4 sm:$0xff]   ;;  %v4354_v24 = vld [vmem:[#allocation9 + $0x33c] ss:$24 sps:$4 sm:$0xff]  }
  0xa7   :  { %1526 = vmatprep.subr.bf16.mxu0 %v4282_v25  ;;  %1528 = vmatprep.mubr.bf16.mxu0 %v4931_v63  ;;  %v4352_v25 = vld [vmem:[#allocation9 + $0x338] ss:$24 sps:$4 sm:$0xff]  }
  0xa8   :  { %1087 = vmatmul.mubr.bf16.gmra.mrb[4].mxu1 %v4950_v27 }
  0xa9   :  { %1275 = vmatpush1.bf16.msra.mxu1 %v4277_v28  ;;  %1096 = vmatprep.mubr.bf16.mxu1 %v4954_v31  ;;  %v4355_v28 = vld [vmem:[#allocation9 + $0x36c] ss:$24 sps:$4 sm:$0x3f]  }
  0xaa   :  { %1527 = vmatpush1.bf16.msra.mxu0 %v4280_v29  ;;  %1276 = vmatprep.subr.bf16.mxu1 %v4285_v30  ;;  %v4357_v29 = vld [vmem:[#allocation9 + $0x368] ss:$24 sps:$4 sm:$0x3f]  }
  0xab   :  { %1609 = vmatprep.subr.bf16.mxu0 %v4345_v47  ;;  %v5103_v47 = vld [vmem:[%s6107_s4] sm:$0x3f] }
  0xad   :  { %1529 = vmatmul.mubr.bf16.vlgmr.msra.gmra.mrb[32].mxu0 %v4939_v14  ;;  %1277 = vmatpush1.bf16.msra.mxu1 %v4283_v32 }
  0xae   :  { %1538 = vmatprep.mubr.bf16.mxu0 %v4946_v21  ;;  %1278 = vmatprep.subr.bf16.mxu1 %v4291_v33 }
  0xaf   :  { %1610 = vmatpush1.bf16.msra.mxu0 %v4343_v46 }
  0xb0   :  { %1097 = vmatmul.mubr.bf16.gmra.mrb[8].mxu1 %v4960_v34  ;;  %1611 = vmatprep.subr.bf16.mxu0 %v4348_v48 }
  0xb1   :  { %1279 = vmatpush1.bf16.msra.mxu1 %v4289_v36  ;;  %1106 = vmatprep.mubr.bf16.mxu1 %v4963_v37 }
  0xb2   :  { %1280 = vmatprep.subr.bf16.mxu1 %v4294_v38 }
  0xb3   :  { %1612 = vmatpush1.bf16.msra.mxu0 %v4346_v51 }
  0xb4   :  { %3613 = vmatprep.subr.msk.bf16.mxu0 %vm1025_vm0, %v4349_v52 }
  0xb5   :  { %1539 = vmatmul.mubr.bf16.gmra.mrb[36].mxu0 %v4950_v27  ;;  %1281 = vmatpush1.bf16.msra.mxu1 %v4292_v39 }
  0xb6   :  { %1548 = vmatprep.mubr.bf16.mxu0 %v4954_v31  ;;  %1282 = vmatprep.subr.bf16.mxu1 %v4300_v40  ;;  %v286_v40 = vlaneseq }
  0xb7   :  { %1614 = vmatpush1.bf16.msra.mxu0 %v1039_v59 }
  0xb8   :  { %1107 = vmatmul.mubr.bf16.gmra.mrb[12].mxu1 %v4967_v41 }
  0xb9   :  { %1283 = vmatpush1.bf16.msra.mxu1 %v4298_v42  ;;  %1116 = vmatprep.mubr.bf16.mxu1 %v4970_v45  ;;  %v5091_v42 = vshrl.u32 %v286_v40, 7 }
  0xba   :  { %1284 = vmatprep.subr.bf16.mxu1 %v4303_v43 }
  0xbb   :  { %v288_v46 = vsub.s32 0, %v5091_v42  ;;  %v292_v48 = vsub.s32 1, %v5091_v42 }
  0xbd   :  { %1549 = vmatmul.mubr.bf16.gmra.mrb[40].mxu0 %v4960_v34  ;;  %1285 = vmatpush1.bf16.msra.mxu1 %v4301_v49  ;;  %v5114_v52 = vrot.slane %v5103_v47, %v292_v48 }
  0xbe   :  { %1558 = vmatprep.mubr.bf16.mxu0 %v4963_v37  ;;  %1286 = vmatprep.subr.bf16.mxu1 %v4309_v50  ;;  %v5109_v50 = vrot.slane %v5103_v47, %v288_v46 }
  0xc0   :  { %1117 = vmatmul.mubr.bf16.gmra.mrb[16].mxu1 %v4976_v55 }
  0xc1   :  { %1287 = vmatpush1.bf16.msra.mxu1 %v4307_v56  ;;  %1126 = vmatprep.mubr.bf16.mxu1 %v4979_v57 }
  0xc2   :  { %1288 = vmatprep.subr.bf16.mxu1 %v4312_v58 }
  0xc5   :  { %1559 = vmatmul.mubr.bf16.gmra.mrb[44].mxu0 %v4967_v41  ;;  %1289 = vmatpush1.bf16.msra.mxu1 %v4310_v60 }
  0xc6   :  { %1568 = vmatprep.mubr.bf16.mxu0 %v4970_v45  ;;  %1290 = vmatprep.subr.bf16.mxu1 %v4318_v61 }
  0xc8   :  { %1127 = vmatmul.mubr.bf16.gmra.mrb[20].mxu1 %v4986_v0 }
  0xc9   :  { %1291 = vmatpush1.bf16.msra.mxu1 %v4316_v1  ;;  %1136 = vmatprep.mubr.bf16.mxu1 %v4989_v2 }
  0xca   :  { %1292 = vmatprep.subr.bf16.mxu1 %v4321_v4 }
  0xcd   :  { %1569 = vmatmul.mubr.bf16.gmra.mrb[48].mxu0 %v4976_v55  ;;  %1293 = vmatpush1.bf16.msra.mxu1 %v4319_v5 }
  0xce   :  { %1578 = vmatprep.mubr.bf16.mxu0 %v4979_v57  ;;  %1294 = vmatprep.subr.bf16.mxu1 %v4327_v6 }
  0xd0   :  { %1137 = vmatmul.mubr.bf16.gmra.mrb[24].mxu1 %v4994_v7 }
  0xd1   :  { %1295 = vmatpush1.bf16.msra.mxu1 %v4325_v8  ;;  %1146 = vmatprep.mubr.bf16.mxu1 %v4331_v10 }
  0xd2   :  { %1296 = vmatprep.subr.bf16.mxu1 %v4330_v11 }
  0xd5   :  { %1579 = vmatmul.mubr.bf16.gmra.mrb[52].mxu0 %v4986_v0  ;;  %1297 = vmatpush1.bf16.msra.mxu1 %v4328_v12 }
  0xd6   :  { %1588 = vmatprep.mubr.bf16.mxu0 %v4989_v2  ;;  %1298 = vmatprep.subr.bf16.mxu1 %v4336_v13 }
  0xd8   :  { %1147 = vmatmul.mubr.bf16.gmra.mrb[28].mxu1 %v4333_v15 }
  0xd9   :  { %1299 = vmatpush1.bf16.msra.mxu1 %v4334_v17  ;;  %1302 = vmatprep.mubr.bf16.mxu1 %v4931_v63  ;;  %v1033_v63 = vsel %vm1025_vm0, %v4357_v29, 0 }
  0xda   :  { %1300 = vmatprep.subr.bf16.mxu1 %v4339_v18 }
  0xdd   :  { %1589 = vmatmul.mubr.bf16.gmra.mrb[56].mxu0 %v4994_v7  ;;  %1301 = vmatpush1.bf16.msra.mxu1 %v4337_v19 }
  0xde   :  { %1598 = vmatprep.mubr.bf16.mxu0 %v4331_v10  ;;  %1383 = vmatprep.subr.bf16.mxu1 %v4342_v22 }
  0xe0   :  { %1303 = vmatmul.mubr.bf16.vlgmr.msra.gmra.mrb[32].mxu1 %v4939_v14 }
  0xe1   :  { %1384 = vmatpush1.bf16.msra.mxu1 %v4340_v23  ;;  %1312 = vmatprep.mubr.bf16.mxu1 %v4946_v21 }
  0xe2   :  { %1385 = vmatprep.subr.bf16.mxu1 %v4354_v24 }
  0xe5   :  { %1599 = vmatmul.mubr.bf16.gmra.mrb[60].mxu0 %v4333_v15  ;;  %1386 = vmatpush1.bf16.msra.mxu1 %v4352_v25 }
  0xe6   :  { %1641 = vmatprep.mubr.bf16.mxu0 %v4733_v3  ;;  %3604 = vmatprep.subr.msk.bf16.mxu1 %vm1025_vm0, %v4355_v28 }
  0xe8   :  { %1313 = vmatmul.mubr.bf16.gmra.mrb[36].mxu1 %v4950_v27 }
  0xe9   :  { %1322 = vmatprep.mubr.bf16.mxu1 %v4954_v31  ;;  %1388 = vmatpush1.bf16.msra.mxu1 %v1033_v63 }
  0xed   :  { %3614 = vmatmul.mubr.msk.bf16.vlgmr.msra.gmra.mrb[32].mxu0 %vm1000_vm1, %v4904_v16 }
  0xee   :  { %1651 = vmatprep.mubr.bf16.mxu0 %v4733_v3 }
  0xf0   :  { %1323 = vmatmul.mubr.bf16.gmra.mrb[40].mxu1 %v4960_v34 }
  0xf1   :  { %1332 = vmatprep.mubr.bf16.mxu1 %v4963_v37 }
  0xf5   :  { %3615 = vmatmul.mubr.msk.bf16.gmra.mrb[36].mxu0 %vm1000_vm1, %v4909_v26 }
  0xf6   :  { %1661 = vmatprep.mubr.bf16.mxu0 %v4733_v3 }
  0xf8   :  { %1333 = vmatmul.mubr.bf16.gmra.mrb[44].mxu1 %v4967_v41 }
  0xf9   :  { %1342 = vmatprep.mubr.bf16.mxu1 %v4970_v45 }
  0xfd   :  { %3616 = vmatmul.mubr.msk.bf16.gmra.mrb[40].mxu0 %vm1000_vm1, %v4914_v35 }
  0xfe   :  { %1671 = vmatprep.mubr.bf16.mxu0 %v4733_v3 }
 0x100   :  { %1343 = vmatmul.mubr.bf16.gmra.mrb[48].mxu1 %v4976_v55 }
 0x101   :  { %1352 = vmatprep.mubr.bf16.mxu1 %v4979_v57 }
 0x105   :  { %3617 = vmatmul.mubr.msk.bf16.gmra.mrb[44].mxu0 %vm1000_vm1, %v4919_v44 }
 0x106   :  { %1681 = vmatprep.mubr.bf16.mxu0 %v4733_v3 }
 0x108   :  { %1353 = vmatmul.mubr.bf16.gmra.mrb[52].mxu1 %v4986_v0 }
 0x109   :  { %1362 = vmatprep.mubr.bf16.mxu1 %v4989_v2 }
 0x10d   :  { %3618 = vmatmul.mubr.msk.bf16.gmra.mrb[48].mxu0 %vm1000_vm1, %v4924_v53 }
 0x10e   :  { %1691 = vmatprep.mubr.bf16.mxu0 %v4733_v3 }
 0x110   :  { %1363 = vmatmul.mubr.bf16.gmra.mrb[56].mxu1 %v4994_v7 }
 0x111   :  { %1372 = vmatprep.mubr.bf16.mxu1 %v4331_v10 }
 0x115   :  { %3619 = vmatmul.mubr.msk.bf16.gmra.mrb[52].mxu0 %vm1000_vm1, %v4929_v62 }
 0x116   :  { %1701 = vmatprep.mubr.bf16.mxu0 %v4733_v3 }
 0x118   :  { %1373 = vmatmul.mubr.bf16.gmra.mrb[60].mxu1 %v4333_v15 }
 0x119   :  { %1415 = vmatprep.mubr.bf16.mxu1 %v4733_v3 }
 0x11d   :  { %3620 = vmatmul.mubr.msk.bf16.gmra.mrb[56].mxu0 %vm1000_vm1, %v4937_v9 }
 0x11e   :  { %1711 = vmatprep.mubr.bf16.mxu0 %v4733_v3 }
 0x120   :  { %3605 = vmatmul.mubr.msk.bf16.vlgmr.msra.gmra.mrb[32].mxu1 %vm1000_vm1, %v4904_v16 }
 0x121   :  { %1425 = vmatprep.mubr.bf16.mxu1 %v4733_v3 }
 0x125   :  { %3621 = vmatmul.mubr.msk.bf16.gmra.mrb[60].mxu0 %vm1000_vm1, %v4944_v20 }
 0x128   :  { %3606 = vmatmul.mubr.msk.bf16.gmra.mrb[36].mxu1 %vm1000_vm1, %v4909_v26 }
 0x129   :  { %1435 = vmatprep.mubr.bf16.mxu1 %v4733_v3 }
 0x130   :  { %3607 = vmatmul.mubr.msk.bf16.gmra.mrb[40].mxu1 %vm1000_vm1, %v4914_v35 }
 0x131   :  { %1445 = vmatprep.mubr.bf16.mxu1 %v4733_v3 }
 0x138   :  { %3608 = vmatmul.mubr.msk.bf16.gmra.mrb[44].mxu1 %vm1000_vm1, %v4919_v44 }
 0x139   :  { %1455 = vmatprep.mubr.bf16.mxu1 %v4733_v3 }
 0x140   :  { %v1191_v16 = vpop.f32.mrb[0].mxu0  ;;  %3609 = vmatmul.mubr.msk.bf16.gmra.mrb[48].mxu1 %vm1000_vm1, %v4924_v53 }
 0x141   :  { %v1193_v14 = vpop.f32.mrb[1].mxu0  ;;  %1465 = vmatprep.mubr.bf16.mxu1 %v4733_v3 }
 0x142   :  { %v1195_v26 = vpop.f32.mrb[2].mxu0 }
 0x143   :  { %v1197_v21 = vpop.f32.mrb[3].mxu0 }
 0x148   :  { %v1201_v27 = vpop.f32.mrb[4].mxu0  ;;  %3610 = vmatmul.mubr.msk.bf16.gmra.mrb[52].mxu1 %vm1000_vm1, %v4929_v62 }
 0x149   :  { %v1203_v35 = vpop.f32.mrb[5].mxu0  ;;  %1475 = vmatprep.mubr.bf16.mxu1 %v4733_v3 }
 0x14a   :  { %v1205_v30 = vpop.f32.mrb[6].mxu0 }
 0x14b   :  { %v1207_v44 = vpop.f32.mrb[7].mxu0 }
 0x150   :  { %v5060_v31 = vpop.f32.mrb[8].mxu0  ;;  %3611 = vmatmul.mubr.msk.bf16.gmra.mrb[56].mxu1 %vm1000_vm1, %v4937_v9 }
 0x151   :  { %v5064_v53 = vpop.f32.mrb[9].mxu0  ;;  %1485 = vmatprep.mubr.bf16.mxu1 %v4733_v3 }
 0x152   :  { %v5067_v32 = vpop.f32.mrb[10].mxu0 }
 0x153   :  { %v5069_v33 = vpop.f32.mrb[11].mxu0 }
 0x158   :  { %v5071_v34 = vpop.f32.mrb[12].mxu0  ;;  %3612 = vmatmul.mubr.msk.bf16.gmra.mrb[60].mxu1 %vm1000_vm1, %v4944_v20 }
 0x159   :  { %v5075_v62 = vpop.f32.mrb[13].mxu0 }
 0x15a   :  { %v5077_v36 = vpop.f32.mrb[14].mxu0 }
 0x15b   :  { %v5079_v37 = vpop.f32.mrb[15].mxu0 }
 0x160   :  { %v5081_v9 = vpop.f32.mrb[16].mxu0 }
 0x161   :  { %v5083_v38 = vpop.f32.mrb[17].mxu0 }
 0x162   :  { %v5085_v3 = vpop.f32.mrb[18].mxu0 }
 0x163   :  { %v5087_v39 = vpop.f32.mrb[19].mxu0 }
 0x168   :  { %v5089_v41 = vpop.f32.mrb[20].mxu0 }
 0x169   :  { %v5093_v20 = vpop.f32.mrb[21].mxu0 }
 0x16a   :  { %v5095_v43 = vpop.f32.mrb[22].mxu0 }
 0x16b   :  { %v5097_v45 = vpop.f32.mrb[23].mxu0 }
 0x170   :  { %v5106_v49 = vpop.f32.mrb[24].mxu0 }
 0x171   :  { %v5111_v51 = vpop.f32.mrb[25].mxu0 }
 0x172   :  { %v5116_v54 = vpop.f32.mrb[26].mxu0 }
 0x173   :  { %v5118_v55 = vpop.f32.mrb[27].mxu0  ;;  %v1078_v56 = vpop.f32.mrb[0].mxu1 }
 0x174   :  { %v1079_v57 = vadd.f32 %v1078_v56, %v5109_v50  ;;  %v1080_v58 = vpop.f32.mrb[1].mxu1 }
 0x175   :  { %v1081_v59 = vadd.f32 %v1080_v58, %v5114_v52  ;;  %v1082_v60 = vpop.f32.mrb[2].mxu1 }
 0x176   :  { %v1192_v61 = vadd.f32 %v1191_v16, %v1079_v57  ;;  %v1083_v0 = vadd.f32 %v1082_v60, %v5109_v50  ;;  %v1084_v1 = vpop.f32.mrb[3].mxu1 }
 0x177   :  { %v1194_v2 = vadd.f32 %v1193_v14, %v1081_v59  ;;  %v1085_v4 = vadd.f32 %v1084_v1, %v5114_v52 }
 0x178   :  { %v5124_v5 = vpop.f32.mrb[28].mxu0  ;;  %v1196_v6 = vadd.f32 %v1195_v26, %v1083_v0 }
 0x179   :  { %v5126_v7 = vpop.f32.mrb[29].mxu0  ;;  %v1198_v8 = vadd.f32 %v1197_v21, %v1085_v4 }
 0x17a   :  { %v5128_v10 = vpop.f32.mrb[30].mxu0  ;;  %v1722_v11 = vpack.c.bf16 %v1196_v6, %v1192_v61 }
 0x17b   :  { %v5130_v12 = vpop.f32.mrb[31].mxu0  ;;  %v1723_v13 = vpack.c.bf16 %v1198_v8, %v1194_v2  ;;  %v1088_v15 = vpop.f32.mrb[4].mxu1 }
 0x17c   :  { %1770 = vst [vmem:[#allocation2] sm:$0xff] %v1722_v11  ;;  %v1089_v17 = vadd.f32 %v1088_v15, %v5109_v50  ;;  %v1090_v18 = vpop.f32.mrb[5].mxu1 }
 0x17d   :  { %1771 = vst [vmem:[#allocation2 + $0x8] sm:$0xff] %v1723_v13  ;;  %v1091_v19 = vadd.f32 %v1090_v18, %v5114_v52  ;;  %v1092_v22 = vpop.f32.mrb[6].mxu1 }
 0x17e   :  { %v1202_v23 = vadd.f32 %v1201_v27, %v1089_v17  ;;  %v1093_v24 = vadd.f32 %v1092_v22, %v5109_v50  ;;  %v1094_v25 = vpop.f32.mrb[7].mxu1 }
 0x17f   :  { %v1204_v28 = vadd.f32 %v1203_v35, %v1091_v19  ;;  %v1095_v29 = vadd.f32 %v1094_v25, %v5114_v52 }
 0x180   :  { %v1206_v63 = vadd.f32 %v1205_v30, %v1093_v24 }
 0x181   :  { %v1208_v16 = vadd.f32 %v1207_v44, %v1095_v29 }
 0x182   :  { %v1728_v14 = vpack.c.bf16 %v1206_v63, %v1202_v23 }
 0x183   :  { %v1729_v26 = vpack.c.bf16 %v1208_v16, %v1204_v28  ;;  %v1098_v21 = vpop.f32.mrb[8].mxu1 }
 0x184   :  { %1776 = vst [vmem:[#allocation2 + $0x30] sm:$0xff] %v1728_v14  ;;  %v1099_v40 = vadd.f32 %v1098_v21, %v5109_v50  ;;  %v1100_v46 = vpop.f32.mrb[9].mxu1 }
 0x185   :  { %1777 = vst [vmem:[#allocation2 + $0x38] sm:$0xff] %v1729_v26  ;;  %v1101_v48 = vadd.f32 %v1100_v46, %v5114_v52  ;;  %v1102_v56 = vpop.f32.mrb[10].mxu1 }
 0x186   :  { %v1212_v27 = vadd.f32 %v5060_v31, %v1099_v40  ;;  %v1103_v57 = vadd.f32 %v1102_v56, %v5109_v50  ;;  %v1104_v35 = vpop.f32.mrb[11].mxu1 }
 0x187   :  { %v1214_v58 = vadd.f32 %v5064_v53, %v1101_v48  ;;  %v1105_v30 = vadd.f32 %v1104_v35, %v5114_v52 }
 0x188   :  { %v1216_v44 = vadd.f32 %v5067_v32, %v1103_v57 }
 0x189   :  { %v1218_v59 = vadd.f32 %v5069_v33, %v1105_v30 }
 0x18a   :  { %v1734_v60 = vpack.c.bf16 %v1216_v44, %v1212_v27 }
 0x18b   :  { %v1735_v61 = vpack.c.bf16 %v1218_v59, %v1214_v58  ;;  %v1108_v0 = vpop.f32.mrb[12].mxu1 }
 0x18c   :  { %1782 = vst [vmem:[#allocation2 + $0x60] sm:$0xff] %v1734_v60  ;;  %v1109_v1 = vadd.f32 %v1108_v0, %v5109_v50  ;;  %v1110_v2 = vpop.f32.mrb[13].mxu1 }
 0x18d   :  { %1783 = vst [vmem:[#allocation2 + $0x68] sm:$0xff] %v1735_v61  ;;  %v1111_v31 = vadd.f32 %v1110_v2, %v5114_v52  ;;  %v1112_v4 = vpop.f32.mrb[14].mxu1 }
 0x18e   :  { %v1222_v6 = vadd.f32 %v5071_v34, %v1109_v1  ;;  %v1113_v53 = vadd.f32 %v1112_v4, %v5109_v50  ;;  %v1114_v8 = vpop.f32.mrb[15].mxu1 }
 0x18f   :  { %v1224_v32 = vadd.f32 %v5075_v62, %v1111_v31  ;;  %v1115_v33 = vadd.f32 %v1114_v8, %v5114_v52 }
 0x190   :  { %v1226_v11 = vadd.f32 %v5077_v36, %v1113_v53 }
 0x191   :  { %v1228_v13 = vadd.f32 %v5079_v37, %v1115_v33 }
 0x192   :  { %v1740_v15 = vpack.c.bf16 %v1226_v11, %v1222_v6 }
 0x193   :  { %v1741_v17 = vpack.c.bf16 %v1228_v13, %v1224_v32  ;;  %v1118_v18 = vpop.f32.mrb[16].mxu1 }
 0x194   :  { %1788 = vst [vmem:[#allocation2 + $0x90] sm:$0xff] %v1740_v15  ;;  %v1119_v19 = vadd.f32 %v1118_v18, %v5109_v50  ;;  %v1120_v22 = vpop.f32.mrb[17].mxu1  ;;  %v304_v18 = vsub.s32 4, %v5091_v42 }
 0x195   :  { %1789 = vst [vmem:[#allocation2 + $0x98] sm:$0xff] %v1741_v17  ;;  %v1121_v34 = vadd.f32 %v1120_v22, %v5114_v52  ;;  %v1122_v23 = vpop.f32.mrb[18].mxu1 }
 0x196   :  { %v1232_v24 = vadd.f32 %v5081_v9, %v1119_v19  ;;  %v1123_v62 = vadd.f32 %v1122_v23, %v5109_v50  ;;  %v1124_v25 = vpop.f32.mrb[19].mxu1  ;;  %v308_v19 = vsub.s32 5, %v5091_v42 }
 0x197   :  { %v1234_v36 = vadd.f32 %v5083_v38, %v1121_v34  ;;  %v1125_v37 = vadd.f32 %v1124_v25, %v5114_v52 }
 0x198   :  { %v1236_v28 = vadd.f32 %v5085_v3, %v1123_v62 }
 0x199   :  { %v1238_v29 = vadd.f32 %v5087_v39, %v1125_v37 }
 0x19a   :  { %v1746_v63 = vpack.c.bf16 %v1236_v28, %v1232_v24 }
 0x19b   :  { %v1747_v16 = vpack.c.bf16 %v1238_v29, %v1234_v36  ;;  %v1128_v14 = vpop.f32.mrb[20].mxu1 }
 0x19c   :  { %1794 = vst [vmem:[#allocation2 + $0xc0] sm:$0xff] %v1746_v63  ;;  %v1129_v26 = vadd.f32 %v1128_v14, %v5109_v50  ;;  %v1130_v21 = vpop.f32.mrb[21].mxu1 }
 0x19d   :  { %1795 = vst [vmem:[#allocation2 + $0xc8] sm:$0xff] %v1747_v16  ;;  %v1131_v9 = vadd.f32 %v1130_v21, %v5114_v52  ;;  %v1132_v40 = vpop.f32.mrb[22].mxu1 }
 0x19e   :  { %v1242_v46 = vadd.f32 %v5089_v41, %v1129_v26  ;;  %v1133_v38 = vadd.f32 %v1132_v40, %v5109_v50  ;;  %v1134_v48 = vpop.f32.mrb[23].mxu1 }
 0x19f   :  { %v1244_v3 = vadd.f32 %v5093_v20, %v1131_v9  ;;  %v1135_v39 = vadd.f32 %v1134_v48, %v5114_v52 }
 0x1a0   :  { %v1246_v56 = vadd.f32 %v5095_v43, %v1133_v38 }
 0x1a1   :  { %v1248_v27 = vadd.f32 %v5097_v45, %v1135_v39 }
 0x1a2   :  { %v1752_v57 = vpack.c.bf16 %v1246_v56, %v1242_v46 }
 0x1a3   :  { %v1753_v35 = vpack.c.bf16 %v1248_v27, %v1244_v3  ;;  %v1138_v58 = vpop.f32.mrb[24].mxu1 }
 0x1a4   :  { %1800 = vst [vmem:[#allocation2 + $0xf0] sm:$0xff] %v1752_v57  ;;  %v1139_v30 = vadd.f32 %v1138_v58, %v5109_v50  ;;  %v1140_v44 = vpop.f32.mrb[25].mxu1 }
 0x1a5   :  { %1801 = vst [vmem:[#allocation2 + $0xf8] sm:$0xff] %v1753_v35  ;;  %v1141_v41 = vadd.f32 %v1140_v44, %v5114_v52  ;;  %v1142_v59 = vpop.f32.mrb[26].mxu1 }
 0x1a6   :  { %v1252_v60 = vadd.f32 %v5106_v49, %v1139_v30  ;;  %v1143_v20 = vadd.f32 %v1142_v59, %v5109_v50  ;;  %v1144_v61 = vpop.f32.mrb[27].mxu1 }
 0x1a7   :  { %v1254_v43 = vadd.f32 %v5111_v51, %v1141_v41  ;;  %v1145_v45 = vadd.f32 %v1144_v61, %v5114_v52 }
 0x1a8   :  { %v1256_v0 = vadd.f32 %v5116_v54, %v1143_v20 }
 0x1a9   :  { %v1258_v1 = vadd.f32 %v5118_v55, %v1145_v45 }
 0x1aa   :  { %v1758_v2 = vpack.c.bf16 %v1256_v0, %v1252_v60 }
 0x1ab   :  { %v1759_v31 = vpack.c.bf16 %v1258_v1, %v1254_v43  ;;  %v1148_v4 = vpop.f32.mrb[28].mxu1 }
 0x1ac   :  { %1806 = vst [vmem:[#allocation2 + $0x120] sm:$0xff] %v1758_v2  ;;  %v1149_v6 = vadd.f32 %v1148_v4, %v5109_v50  ;;  %v1150_v53 = vpop.f32.mrb[29].mxu1 }
 0x1ad   :  { %1807 = vst [vmem:[#allocation2 + $0x128] sm:$0xff] %v1759_v31  ;;  %v1151_v49 = vadd.f32 %v1150_v53, %v5114_v52  ;;  %v1152_v8 = vpop.f32.mrb[30].mxu1 }
 0x1ae   :  { %v1262_v32 = vadd.f32 %v5124_v5, %v1149_v6  ;;  %v1153_v51 = vadd.f32 %v1152_v8, %v5109_v50  ;;  %v1154_v33 = vpop.f32.mrb[31].mxu1  ;;  %v5187_v5 = vrot.slane %v5103_v47, %v304_v18 }
 0x1af   :  { %v1264_v54 = vadd.f32 %v5126_v7, %v1151_v49  ;;  %v1155_v55 = vadd.f32 %v1154_v33, %v5114_v52  ;;  %v5190_v7 = vrot.slane %v5103_v47, %v308_v19 }
 0x1b0   :  { %v1266_v11 = vadd.f32 %v5128_v10, %v1153_v51 }
 0x1b1   :  { %v1268_v13 = vadd.f32 %v5130_v12, %v1155_v55 }
 0x1b2   :  { %v1764_v15 = vpack.c.bf16 %v1266_v11, %v1262_v32 }
 0x1b3   :  { %v1765_v17 = vpack.c.bf16 %v1268_v13, %v1264_v54 }
 0x1b4   :  { %1812 = vst [vmem:[#allocation2 + $0x150] sm:$0xff] %v1764_v15 }
 0x1b5   :  { %1813 = vst [vmem:[#allocation2 + $0x158] sm:$0xff] %v1765_v17 }
 0x1c0   :  { %v1643_v50 = vpop.f32.mrb[32].mxu0 }
 0x1c1   :  { %v1645_v52 = vpop.f32.mrb[33].mxu0  ;;  %v3950_v10 = vadd.f32 %v1643_v50, %v5187_v5  ;;  %v296_v50 = vsub.s32 2, %v5091_v42 }
 0x1c2   :  { %v1647_v22 = vpop.f32.mrb[34].mxu0  ;;  %v3951_v23 = vadd.f32 %v1645_v52, %v5190_v7 }
 0x1c3   :  { %v3952_v12 = vadd.f32 %v1647_v22, %v5187_v5  ;;  %v1649_v34 = vpop.f32.mrb[35].mxu0  ;;  %v300_v22 = vsub.s32 3, %v5091_v42 }
 0x1c4   :  { %v3953_v24 = vadd.f32 %v1649_v34, %v5190_v7 }
 0x1c5   :  { %v1726_v62 = vpack.c.bf16 %v3952_v12, %v3950_v10 }
 0x1c6   :  { %v1727_v25 = vpack.c.bf16 %v3953_v24, %v3951_v23 }
 0x1c7   :  { %1774 = vst [vmem:[#allocation2 + $0x20] sm:$0xff] %v1726_v62  ;;  %v5221_v62 = vrot.slane %v5103_v47, %v296_v50 }
 0x1c8   :  { %1775 = vst [vmem:[#allocation2 + $0x28] sm:$0xff] %v1727_v25  ;;  %v1653_v36 = vpop.f32.mrb[36].mxu0 }
 0x1c9   :  { %v1655_v37 = vpop.f32.mrb[37].mxu0  ;;  %v3954_v29 = vadd.f32 %v1653_v36, %v5187_v5 }
 0x1ca   :  { %v1657_v28 = vpop.f32.mrb[38].mxu0  ;;  %v3955_v14 = vadd.f32 %v1655_v37, %v5190_v7 }
 0x1cb   :  { %v3956_v63 = vadd.f32 %v1657_v28, %v5187_v5  ;;  %v1659_v16 = vpop.f32.mrb[39].mxu0  ;;  %v5226_v28 = vrot.slane %v5103_v47, %v300_v22 }
 0x1cc   :  { %v3957_v26 = vadd.f32 %v1659_v16, %v5190_v7 }
 0x1cd   :  { %v1732_v21 = vpack.c.bf16 %v3956_v63, %v3954_v29 }
 0x1ce   :  { %v1733_v9 = vpack.c.bf16 %v3957_v26, %v3955_v14 }
 0x1cf   :  { %1780 = vst [vmem:[#allocation2 + $0x50] sm:$0xff] %v1732_v21 }
 0x1d0   :  { %1781 = vst [vmem:[#allocation2 + $0x58] sm:$0xff] %v1733_v9  ;;  %v1663_v40 = vpop.f32.mrb[40].mxu0 }
 0x1d1   :  { %v1665_v46 = vpop.f32.mrb[41].mxu0  ;;  %v3958_v48 = vadd.f32 %v1663_v40, %v5187_v5 }
 0x1d2   :  { %v1667_v38 = vpop.f32.mrb[42].mxu0  ;;  %v3959_v56 = vadd.f32 %v1665_v46, %v5190_v7 }
 0x1d3   :  { %v3960_v3 = vadd.f32 %v1667_v38, %v5187_v5  ;;  %v1669_v39 = vpop.f32.mrb[43].mxu0 }
 0x1d4   :  { %v3961_v27 = vadd.f32 %v1669_v39, %v5190_v7 }
 0x1d5   :  { %v1738_v57 = vpack.c.bf16 %v3960_v3, %v3958_v48 }
 0x1d6   :  { %v1739_v35 = vpack.c.bf16 %v3961_v27, %v3959_v56 }
 0x1d7   :  { %1786 = vst [vmem:[#allocation2 + $0x80] sm:$0xff] %v1738_v57 }
 0x1d8   :  { %1787 = vst [vmem:[#allocation2 + $0x88] sm:$0xff] %v1739_v35  ;;  %v1673_v58 = vpop.f32.mrb[44].mxu0 }
 0x1d9   :  { %v1675_v30 = vpop.f32.mrb[45].mxu0  ;;  %v3962_v41 = vadd.f32 %v1673_v58, %v5187_v5 }
 0x1da   :  { %v1677_v44 = vpop.f32.mrb[46].mxu0  ;;  %v3963_v20 = vadd.f32 %v1675_v30, %v5190_v7 }
 0x1db   :  { %v3964_v59 = vadd.f32 %v1677_v44, %v5187_v5  ;;  %v1679_v60 = vpop.f32.mrb[47].mxu0 }
 0x1dc   :  { %v3965_v61 = vadd.f32 %v1679_v60, %v5190_v7 }
 0x1dd   :  { %v1744_v43 = vpack.c.bf16 %v3964_v59, %v3962_v41 }
 0x1de   :  { %v1745_v45 = vpack.c.bf16 %v3965_v61, %v3963_v20 }
 0x1df   :  { %1792 = vst [vmem:[#allocation2 + $0xb0] sm:$0xff] %v1744_v43 }
 0x1e0   :  { %1793 = vst [vmem:[#allocation2 + $0xb8] sm:$0xff] %v1745_v45  ;;  %v1683_v0 = vpop.f32.mrb[48].mxu0 }
 0x1e1   :  { %v1685_v1 = vpop.f32.mrb[49].mxu0  ;;  %v3966_v31 = vadd.f32 %v1683_v0, %v5187_v5 }
 0x1e2   :  { %v1687_v2 = vpop.f32.mrb[50].mxu0  ;;  %v3967_v53 = vadd.f32 %v1685_v1, %v5190_v7 }
 0x1e3   :  { %v3968_v4 = vadd.f32 %v1687_v2, %v5187_v5  ;;  %v1689_v6 = vpop.f32.mrb[51].mxu0 }
 0x1e4   :  { %v3969_v49 = vadd.f32 %v1689_v6, %v5190_v7 }
 0x1e5   :  { %v1750_v8 = vpack.c.bf16 %v3968_v4, %v3966_v31 }
 0x1e6   :  { %v1751_v32 = vpack.c.bf16 %v3969_v49, %v3967_v53 }
 0x1e7   :  { %1798 = vst [vmem:[#allocation2 + $0xe0] sm:$0xff] %v1750_v8 }
 0x1e8   :  { %1799 = vst [vmem:[#allocation2 + $0xe8] sm:$0xff] %v1751_v32  ;;  %v1693_v51 = vpop.f32.mrb[52].mxu0 }
 0x1e9   :  { %v1695_v33 = vpop.f32.mrb[53].mxu0  ;;  %v3970_v55 = vadd.f32 %v1693_v51, %v5187_v5 }
 0x1ea   :  { %v1697_v54 = vpop.f32.mrb[54].mxu0  ;;  %v3971_v15 = vadd.f32 %v1695_v33, %v5190_v7 }
 0x1eb   :  { %v3972_v11 = vadd.f32 %v1697_v54, %v5187_v5  ;;  %v1699_v13 = vpop.f32.mrb[55].mxu0 }
 0x1ec   :  { %v3973_v17 = vadd.f32 %v1699_v13, %v5190_v7 }
 0x1ed   :  { %v1756_v18 = vpack.c.bf16 %v3972_v11, %v3970_v55 }
 0x1ee   :  { %v1757_v19 = vpack.c.bf16 %v3973_v17, %v3971_v15 }
 0x1ef   :  { %1804 = vst [vmem:[#allocation2 + $0x110] sm:$0xff] %v1756_v18 }
 0x1f0   :  { %1805 = vst [vmem:[#allocation2 + $0x118] sm:$0xff] %v1757_v19  ;;  %v1703_v52 = vpop.f32.mrb[56].mxu0 }
 0x1f1   :  { %v1705_v10 = vpop.f32.mrb[57].mxu0  ;;  %v3974_v34 = vadd.f32 %v1703_v52, %v5187_v5 }
 0x1f2   :  { %v1707_v12 = vpop.f32.mrb[58].mxu0  ;;  %v3975_v25 = vadd.f32 %v1705_v10, %v5190_v7 }
 0x1f3   :  { %v3976_v23 = vadd.f32 %v1707_v12, %v5187_v5  ;;  %v1709_v24 = vpop.f32.mrb[59].mxu0  ;;  %v1417_v37 = vpop.f32.mrb[32].mxu1 }
 0x1f4   :  { %v3977_v36 = vadd.f32 %v1709_v24, %v5190_v7  ;;  %v1419_v42 = vpop.f32.mrb[33].mxu1  ;;  %v3918_v14 = vadd.f32 %v1417_v37, %v5221_v62 }
 0x1f5   :  { %v1762_v29 = vpack.c.bf16 %v3976_v23, %v3974_v34  ;;  %v1421_v16 = vpop.f32.mrb[34].mxu1  ;;  %v3919_v9 = vadd.f32 %v1419_v42, %v5226_v28 }
 0x1f6   :  { %v1763_v63 = vpack.c.bf16 %v3977_v36, %v3975_v25  ;;  %v3920_v26 = vadd.f32 %v1421_v16, %v5221_v62  ;;  %v1423_v21 = vpop.f32.mrb[35].mxu1 }
 0x1f7   :  { %1810 = vst [vmem:[#allocation2 + $0x140] sm:$0xff] %v1762_v29  ;;  %v3921_v40 = vadd.f32 %v1423_v21, %v5226_v28 }
 0x1f8   :  { %1811 = vst [vmem:[#allocation2 + $0x148] sm:$0xff] %v1763_v63  ;;  %v1713_v46 = vpop.f32.mrb[60].mxu0  ;;  %v1724_v38 = vpack.c.bf16 %v3920_v26, %v3918_v14 }
 0x1f9   :  { %v1715_v48 = vpop.f32.mrb[61].mxu0  ;;  %v1725_v47 = vpack.c.bf16 %v3921_v40, %v3919_v9  ;;  %v3978_v39 = vadd.f32 %v1713_v46, %v5187_v5 }
 0x1fa   :  { %v1717_v3 = vpop.f32.mrb[62].mxu0  ;;  %1772 = vst [vmem:[#allocation2 + $0x10] sm:$0xff] %v1724_v38  ;;  %v3979_v57 = vadd.f32 %v1715_v48, %v5190_v7 }
 0x1fb   :  { %v3980_v56 = vadd.f32 %v1717_v3, %v5187_v5  ;;  %v1719_v27 = vpop.f32.mrb[63].mxu0  ;;  %1773 = vst [vmem:[#allocation2 + $0x18] sm:$0xff] %v1725_v47  ;;  %v1427_v58 = vpop.f32.mrb[36].mxu1 }
 0x1fc   :  { %v3981_v35 = vadd.f32 %v1719_v27, %v5190_v7  ;;  %v1429_v44 = vpop.f32.mrb[37].mxu1  ;;  %v3922_v60 = vadd.f32 %v1427_v58, %v5221_v62 }
 0x1fd   :  { %v1768_v30 = vpack.c.bf16 %v3980_v56, %v3978_v39  ;;  %v1431_v59 = vpop.f32.mrb[38].mxu1  ;;  %v3923_v5 = vadd.f32 %v1429_v44, %v5226_v28 }
 0x1fe   :  { %v1769_v41 = vpack.c.bf16 %v3981_v35, %v3979_v57  ;;  %v3924_v20 = vadd.f32 %v1431_v59, %v5221_v62  ;;  %v1433_v61 = vpop.f32.mrb[39].mxu1 }
 0x1ff   :  { %1816 = vst [vmem:[#allocation2 + $0x170] sm:$0xff] %v1768_v30  ;;  %v3925_v43 = vadd.f32 %v1433_v61, %v5226_v28 }
 0x200   :  { %1817 = vst [vmem:[#allocation2 + $0x178] sm:$0xff] %v1769_v41  ;;  %v1730_v45 = vpack.c.bf16 %v3924_v20, %v3922_v60 }
 0x201   :  { %v1731_v0 = vpack.c.bf16 %v3925_v43, %v3923_v5 }
 0x202   :  { %1778 = vst [vmem:[#allocation2 + $0x40] sm:$0xff] %v1730_v45 }
 0x203   :  { %1779 = vst [vmem:[#allocation2 + $0x48] sm:$0xff] %v1731_v0  ;;  %v1437_v7 = vpop.f32.mrb[40].mxu1 }
 0x204   :  { %v1439_v1 = vpop.f32.mrb[41].mxu1  ;;  %v3926_v31 = vadd.f32 %v1437_v7, %v5221_v62 }
 0x205   :  { %v1441_v2 = vpop.f32.mrb[42].mxu1  ;;  %v3927_v53 = vadd.f32 %v1439_v1, %v5226_v28 }
 0x206   :  { %v3928_v4 = vadd.f32 %v1441_v2, %v5221_v62  ;;  %v1443_v6 = vpop.f32.mrb[43].mxu1 }
 0x207   :  { %v3929_v49 = vadd.f32 %v1443_v6, %v5226_v28 }
 0x208   :  { %v1736_v8 = vpack.c.bf16 %v3928_v4, %v3926_v31 }
 0x209   :  { %v1737_v32 = vpack.c.bf16 %v3929_v49, %v3927_v53 }
 0x20a   :  { %1784 = vst [vmem:[#allocation2 + $0x70] sm:$0xff] %v1736_v8 }
 0x20b   :  { %1785 = vst [vmem:[#allocation2 + $0x78] sm:$0xff] %v1737_v32  ;;  %v1447_v51 = vpop.f32.mrb[44].mxu1 }
 0x20c   :  { %v1449_v33 = vpop.f32.mrb[45].mxu1  ;;  %v3930_v55 = vadd.f32 %v1447_v51, %v5221_v62 }
 0x20d   :  { %v1451_v54 = vpop.f32.mrb[46].mxu1  ;;  %v3931_v15 = vadd.f32 %v1449_v33, %v5226_v28 }
 0x20e   :  { %v3932_v11 = vadd.f32 %v1451_v54, %v5221_v62  ;;  %v1453_v13 = vpop.f32.mrb[47].mxu1 }
 0x20f   :  { %v3933_v17 = vadd.f32 %v1453_v13, %v5226_v28 }
 0x210   :  { %v1742_v18 = vpack.c.bf16 %v3932_v11, %v3930_v55 }
 0x211   :  { %v1743_v19 = vpack.c.bf16 %v3933_v17, %v3931_v15 }
 0x212   :  { %1790 = vst [vmem:[#allocation2 + $0xa0] sm:$0xff] %v1742_v18 }
 0x213   :  { %1791 = vst [vmem:[#allocation2 + $0xa8] sm:$0xff] %v1743_v19  ;;  %v1457_v50 = vpop.f32.mrb[48].mxu1 }
 0x214   :  { %v1459_v52 = vpop.f32.mrb[49].mxu1  ;;  %v3934_v10 = vadd.f32 %v1457_v50, %v5221_v62 }
 0x215   :  { %v1461_v22 = vpop.f32.mrb[50].mxu1  ;;  %v3935_v23 = vadd.f32 %v1459_v52, %v5226_v28 }
 0x216   :  { %v3936_v12 = vadd.f32 %v1461_v22, %v5221_v62  ;;  %v1463_v34 = vpop.f32.mrb[51].mxu1 }
 0x217   :  { %v3937_v24 = vadd.f32 %v1463_v34, %v5226_v28 }
 0x218   :  { %v1748_v25 = vpack.c.bf16 %v3936_v12, %v3934_v10 }
 0x219   :  { %v1749_v36 = vpack.c.bf16 %v3937_v24, %v3935_v23 }
 0x21a   :  { %1796 = vst [vmem:[#allocation2 + $0xd0] sm:$0xff] %v1748_v25 }
 0x21b   :  { %1797 = vst [vmem:[#allocation2 + $0xd8] sm:$0xff] %v1749_v36  ;;  %v1467_v37 = vpop.f32.mrb[52].mxu1 }
 0x21c   :  { %v1469_v29 = vpop.f32.mrb[53].mxu1  ;;  %v3938_v63 = vadd.f32 %v1467_v37, %v5221_v62 }
 0x21d   :  { %v1471_v42 = vpop.f32.mrb[54].mxu1  ;;  %v3939_v26 = vadd.f32 %v1469_v29, %v5226_v28 }
 0x21e   :  { %v3940_v16 = vadd.f32 %v1471_v42, %v5221_v62  ;;  %v1473_v14 = vpop.f32.mrb[55].mxu1 }
 0x21f   :  { %v3941_v21 = vadd.f32 %v1473_v14, %v5226_v28 }
 0x220   :  { %v1754_v9 = vpack.c.bf16 %v3940_v16, %v3938_v63 }
 0x221   :  { %v1755_v40 = vpack.c.bf16 %v3941_v21, %v3939_v26 }
 0x222   :  { %1802 = vst [vmem:[#allocation2 + $0x100] sm:$0xff] %v1754_v9 }
 0x223   :  { %1803 = vst [vmem:[#allocation2 + $0x108] sm:$0xff] %v1755_v40  ;;  %v1477_v46 = vpop.f32.mrb[56].mxu1 }
 0x224   :  { %v1479_v38 = vpop.f32.mrb[57].mxu1  ;;  %v3942_v47 = vadd.f32 %v1477_v46, %v5221_v62 }
 0x225   :  { %v1481_v48 = vpop.f32.mrb[58].mxu1  ;;  %v3943_v56 = vadd.f32 %v1479_v38, %v5226_v28 }
 0x226   :  { %v3944_v3 = vadd.f32 %v1481_v48, %v5221_v62  ;;  %v1483_v39 = vpop.f32.mrb[59].mxu1 }
 0x227   :  { %v3945_v27 = vadd.f32 %v1483_v39, %v5226_v28 }
 0x228   :  { %v1760_v57 = vpack.c.bf16 %v3944_v3, %v3942_v47 }
 0x229   :  { %v1761_v35 = vpack.c.bf16 %v3945_v27, %v3943_v56 }
 0x22a   :  { %1808 = vst [vmem:[#allocation2 + $0x130] sm:$0xff] %v1760_v57 }
 0x22b   :  { %1809 = vst [vmem:[#allocation2 + $0x138] sm:$0xff] %v1761_v35  ;;  %v1487_v58 = vpop.f32.mrb[60].mxu1 }
 0x22c   :  { %v1489_v30 = vpop.f32.mrb[61].mxu1  ;;  %v3946_v41 = vadd.f32 %v1487_v58, %v5221_v62 }
 0x22d   :  { %v1491_v44 = vpop.f32.mrb[62].mxu1  ;;  %v3947_v20 = vadd.f32 %v1489_v30, %v5226_v28 }
 0x22e   :  { %v3948_v59 = vadd.f32 %v1491_v44, %v5221_v62  ;;  %v1493_v60 = vpop.f32.mrb[63].mxu1 }
 0x22f   :  { %v3949_v61 = vadd.f32 %v1493_v60, %v5226_v28 }
 0x230   :  { %v1766_v5 = vpack.c.bf16 %v3948_v59, %v3946_v41 }
 0x231   :  { %v1767_v43 = vpack.c.bf16 %v3949_v61, %v3947_v20 }
 0x232   :  { %1814 = vst [vmem:[#allocation2 + $0x160] sm:$0xff] %v1766_v5 }
 0x233   :  { %1815 = vst [vmem:[#allocation2 + $0x168] sm:$0xff] %v1767_v43 }
 0x234 PF:  { %v5267_v45 = vld [vmem:[%s6104_s1] sm:$0xff]  ;;  %v5272_v0 = vld [vmem:[%s6104_s1 + $0x8] sm:$0xff]  ;;  %v5274_v62 = vld [vmem:[#allocation11] sm:$0xff] }
 0x235   :  { %6241 = vst [vmem:[#allocation24_spill] sm:$0xff] %v5272_v0  ;;  %v5276_v7 = vld [vmem:[#allocation11 + $0x8] sm:$0xff]  ;;  %v5278_v28 = vld [vmem:[#allocation11 + $0x10] sm:$0xff]  ;;  %v5280_v1 = vld [vmem:[#allocation11 + $0x18] sm:$0xff] }
 0x236   :  { %6242 = vst [vmem:[#allocation25_spill] sm:$0xff] %v5276_v7  ;;  %6243 = vst [vmem:[#allocation26_spill] sm:$0xff] %v5278_v28  ;;  %v5282_v2 = vld [vmem:[#allocation11 + $0x20] sm:$0xff]  ;;  %v5284_v31 = vld [vmem:[#allocation11 + $0x28] sm:$0xff] }
 0x237   :  { %6244 = vst [vmem:[#allocation27_spill] sm:$0xff] %v5280_v1  ;;  %6245 = vst [vmem:[#allocation28_spill] sm:$0xff] %v5282_v2  ;;  %v5286_v4 = vld [vmem:[#allocation11 + $0x30] sm:$0xff]  ;;  %v5288_v6 = vld [vmem:[#allocation11 + $0x38] sm:$0xff] }
 0x238   :  { %6246 = vst [vmem:[#allocation29_spill] sm:$0xff] %v5284_v31  ;;  %6247 = vst [vmem:[#allocation30_spill] sm:$0xff] %v5286_v4  ;;  %v5290_v53 = vld [vmem:[#allocation11 + $0x40] sm:$0xff]  ;;  %v5292_v49 = vld [vmem:[#allocation11 + $0x48] sm:$0xff] }
 0x239   :  { %6248 = vst [vmem:[#allocation31_spill] sm:$0xff] %v5288_v6  ;;  %6249 = vst [vmem:[#allocation32_spill] sm:$0xff] %v5290_v53  ;;  %v5294_v8 = vld [vmem:[#allocation11 + $0x50] sm:$0xff]  ;;  %v5296_v32 = vld [vmem:[#allocation11 + $0x58] sm:$0xff] }
 0x23a   :  { %6250 = vst [vmem:[#allocation33_spill] sm:$0xff] %v5294_v8  ;;  %6251 = vst [vmem:[#allocation34_spill] sm:$0xff] %v5296_v32  ;;  %v5298_v51 = vld [vmem:[#allocation11 + $0x60] sm:$0xff]  ;;  %v5300_v33 = vld [vmem:[#allocation11 + $0x68] sm:$0xff] }
 0x23b   :  { %6252 = vst [vmem:[#allocation35_spill] sm:$0xff] %v5300_v33  ;;  %v5302_v54 = vld [vmem:[#allocation11 + $0x70] sm:$0xff]  ;;  %v5304_v55 = vld [vmem:[#allocation11 + $0x78] sm:$0xff]  ;;  %v5306_v11 = vld [vmem:[#allocation11 + $0x80] sm:$0xff] }
 0x23c   :  { %6253 = vst [vmem:[#allocation36_spill] sm:$0xff] %v5302_v54  ;;  %6254 = vst [vmem:[#allocation37_spill] sm:$0xff] %v5306_v11  ;;  %v5308_v13 = vld [vmem:[#allocation11 + $0x88] sm:$0xff]  ;;  %v5310_v15 = vld [vmem:[#allocation11 + $0x90] sm:$0xff] }
 0x23d   :  { %6255 = vst [vmem:[#allocation38_spill] sm:$0xff] %v5308_v13  ;;  %6256 = vst [vmem:[#allocation39_spill] sm:$0xff] %v5310_v15  ;;  %v5312_v17 = vld [vmem:[#allocation11 + $0x98] sm:$0xff]  ;;  %v5314_v18 = vld [vmem:[#allocation11 + $0xa0] sm:$0xff] }
 0x23e   :  { %6257 = vst [vmem:[#allocation40_spill] sm:$0xff] %v5312_v17  ;;  %6258 = vst [vmem:[#allocation41_spill] sm:$0xff] %v5314_v18  ;;  %v5316_v19 = vld [vmem:[#allocation11 + $0xa8] sm:$0xff]  ;;  %v5318_v50 = vld [vmem:[#allocation11 + $0xb0] sm:$0xff] }
 0x23f   :  { %6259 = vst [vmem:[#allocation42_spill] sm:$0xff] %v5316_v19  ;;  %v5320_v52 = vld [vmem:[#allocation11 + $0xb8] sm:$0xff]  ;;  %v5322_v22 = vld [vmem:[#allocation11 + $0xc0] sm:$0xff]  ;;  %v5324_v10 = vld [vmem:[#allocation11 + $0xc8] sm:$0xff] }
 0x240   :  { %6260 = vst [vmem:[#allocation43_spill] sm:$0xff] %v5320_v52  ;;  %6261 = vst [vmem:[#allocation44_spill] sm:$0xff] %v5322_v22  ;;  %v5326_v12 = vld [vmem:[#allocation11 + $0xd0] sm:$0xff]  ;;  %v5328_v34 = vld [vmem:[#allocation11 + $0xd8] sm:$0xff] }
 0x241   :  { %6262 = vst [vmem:[#allocation45_spill] sm:$0xff] %v5324_v10  ;;  %6263 = vst [vmem:[#allocation46_spill] sm:$0xff] %v5326_v12  ;;  %v5330_v23 = vld [vmem:[#allocation11 + $0xe0] sm:$0xff]  ;;  %v5332_v24 = vld [vmem:[#allocation11 + $0xe8] sm:$0xff] }
 0x242   :  { %6264 = vst [vmem:[#allocation47_spill] sm:$0xff] %v5328_v34  ;;  %6265 = vst [vmem:[#allocation48_spill] sm:$0xff] %v5330_v23  ;;  %v5334_v25 = vld [vmem:[#allocation11 + $0xf0] sm:$0xff]  ;;  %v5336_v36 = vld [vmem:[#allocation11 + $0xf8] sm:$0xff] }
 0x243   :  { %6266 = vst [vmem:[#allocation49_spill] sm:$0xff] %v5332_v24  ;;  %6267 = vst [vmem:[#allocation50_spill] sm:$0xff] %v5334_v25  ;;  %v5338_v37 = vld [vmem:[#allocation11 + $0x100] sm:$0xff]  ;;  %v5340_v29 = vld [vmem:[#allocation11 + $0x108] sm:$0xff] }
 0x244   :  { %6268 = vst [vmem:[#allocation51_spill] sm:$0xff] %v5338_v37  ;;  %6269 = vst [vmem:[#allocation52_spill] sm:$0xff] %v5340_v29  ;;  %v5342_v42 = vld [vmem:[#allocation11 + $0x110] sm:$0xff]  ;;  %v5344_v63 = vld [vmem:[#allocation11 + $0x118] sm:$0xff] }
 0x245   :  { %6270 = vst [vmem:[#allocation53_spill] sm:$0xff] %v5344_v63  ;;  %v5346_v16 = vld [vmem:[#allocation11 + $0x120] sm:$0xff]  ;;  %v5348_v14 = vld [vmem:[#allocation11 + $0x128] sm:$0xff]  ;;  %v5350_v26 = vld [vmem:[#allocation11 + $0x130] sm:$0xff] }
 0x246   :  { %6271 = vst [vmem:[#allocation54_spill] sm:$0xff] %v5346_v16  ;;  %6272 = vst [vmem:[#allocation55_spill] sm:$0xff] %v5348_v14  ;;  %v5352_v21 = vld [vmem:[#allocation11 + $0x138] sm:$0xff]  ;;  %v5354_v9 = vld [vmem:[#allocation11 + $0x140] sm:$0xff] }
 0x247   :  { %6273 = vst [vmem:[#allocation56_spill] sm:$0xff] %v5350_v26  ;;  %6274 = vst [vmem:[#allocation57_spill] sm:$0xff] %v5352_v21  ;;  %v5356_v40 = vld [vmem:[#allocation11 + $0x148] sm:$0xff]  ;;  %v5358_v46 = vld [vmem:[#allocation11 + $0x150] sm:$0xff] }
 0x248   :  { %6275 = vst [vmem:[#allocation58_spill] sm:$0xff] %v5354_v9  ;;  %6276 = vst [vmem:[#allocation59_spill] sm:$0xff] %v5356_v40  ;;  %v5360_v38 = vld [vmem:[#allocation11 + $0x158] sm:$0xff]  ;;  %v5362_v48 = vld [vmem:[#allocation11 + $0x160] sm:$0xff] }
 0x249   :  { %6277 = vst [vmem:[#allocation60_spill] sm:$0xff] %v5362_v48  ;;  %v5364_v47 = vld [vmem:[#allocation11 + $0x168] sm:$0xff]  ;;  %v5366_v3 = vld [vmem:[#allocation11 + $0x170] sm:$0xff]  ;;  %v5368_v39 = vld [vmem:[#allocation11 + $0x178] sm:$0xff] }
 0x24a   :  { %6278 = vst [vmem:[#allocation61_spill] sm:$0xff] %v5366_v3  ;;  %6279 = vst [vmem:[#allocation62_spill] sm:$0xff] %v5368_v39  ;;  %v5370_v56 = vld [vmem:[#allocation11 + $0x180] sm:$0xff]  ;;  %v5372_v27 = vld [vmem:[#allocation11 + $0x188] sm:$0xff] }
 0x24b   :  { %6280 = vst [vmem:[#allocation63_spill] sm:$0xff] %v5372_v27  ;;  %v5374_v57 = vld [vmem:[#allocation11 + $0x190] sm:$0xff]  ;;  %v5376_v35 = vld [vmem:[#allocation11 + $0x198] sm:$0xff]  ;;  %v5378_v58 = vld [vmem:[#allocation11 + $0x1a0] sm:$0xff] }
 0x24c   :  { %6281 = vst [vmem:[#allocation64_spill] sm:$0xff] %v5374_v57  ;;  %6282 = vst [vmem:[#allocation65_spill] sm:$0xff] %v5376_v35  ;;  %v5380_v30 = vld [vmem:[#allocation11 + $0x1a8] sm:$0xff]  ;;  %v5382_v44 = vld [vmem:[#allocation11 + $0x1b0] sm:$0xff] }
 0x24d   :  { %6283 = vst [vmem:[#allocation66_spill] sm:$0xff] %v5380_v30  ;;  %v5384_v41 = vld [vmem:[#allocation11 + $0x1b8] sm:$0xff]  ;;  %v5386_v59 = vld [vmem:[#allocation11 + $0x1c0] sm:$0xff]  ;;  %v5388_v60 = vld [vmem:[#allocation11 + $0x1c8] sm:$0xff] }
 0x24e   :  { %6284 = vst [vmem:[#allocation67_spill] sm:$0xff] %v5386_v59  ;;  %v5390_v20 = vld [vmem:[#allocation11 + $0x1d0] sm:$0xff]  ;;  %v5392_v61 = vld [vmem:[#allocation11 + $0x1d8] sm:$0xff]  ;;  %v5394_v5 = vld [vmem:[#allocation11 + $0x1e0] sm:$0xff] }
 0x24f   :  { %6285 = vst [vmem:[#allocation68_spill] sm:$0xff] %v5390_v20  ;;  %6286 = vst [vmem:[#allocation69_spill] sm:$0xff] %v5392_v61  ;;  %v5396_v43 = vld [vmem:[#allocation11 + $0x1e8] sm:$0xff]  ;;  %v5398_v57 = vld [vmem:[#allocation11 + $0x1f0] sm:$0xff] }
 0x250   :  { %6287 = vst [vmem:[#allocation70_spill] sm:$0xff] %v5394_v5  ;;  %6288 = vst [vmem:[#allocation71_spill] sm:$0xff] %v5398_v57  ;;  %v5400_v48 = vld [vmem:[#allocation11 + $0x1f8] sm:$0xff]  ;;  %v5402_v30 = vld [vmem:[#allocation11 + $0x200] sm:$0xff] }
 0x251   :  { %6289 = vst [vmem:[#allocation72_spill] sm:$0xff] %v5402_v30  ;;  %v5404_v39 = vld [vmem:[#allocation11 + $0x208] sm:$0xff]  ;;  %v5406_v26 = vld [vmem:[#allocation11 + $0x210] sm:$0xff]  ;;  %v5408_v59 = vld [vmem:[#allocation11 + $0x218] sm:$0xff] }
 0x252   :  { %6290 = vst [vmem:[#allocation73_spill] sm:$0xff] %v5404_v39  ;;  %6291 = vst [vmem:[#allocation74_spill] sm:$0xff] %v5406_v26  ;;  %v5410_v40 = vld [vmem:[#allocation11 + $0x220] sm:$0xff]  ;;  %v5412_v37 = vld [vmem:[#allocation11 + $0x228] sm:$0xff] }
 0x253   :  { %6292 = vst [vmem:[#allocation75_spill] sm:$0xff] %v5410_v40  ;;  %v5414_v61 = vld [vmem:[#allocation11 + $0x230] sm:$0xff]  ;;  %v5416_v63 = vld [vmem:[#allocation11 + $0x238] sm:$0xff]  ;;  %v5418_v12 = vld [vmem:[#allocation11 + $0x240] sm:$0xff] }
 0x254   :  { %6293 = vst [vmem:[#allocation76_spill] sm:$0xff] %v5416_v63  ;;  %6294 = vst [vmem:[#allocation77_spill] sm:$0xff] %v5418_v12  ;;  %v5420_v57 = vld [vmem:[#allocation11 + $0x248] sm:$0xff]  ;;  %v5422_v24 = vld [vmem:[#allocation11 + $0x250] sm:$0xff] }
 0x255   :  { %6295 = vst [vmem:[#allocation78_spill] sm:$0xff] %v5420_v57  ;;  %6296 = vst [vmem:[#allocation79_spill] sm:$0xff] %v5422_v24  ;;  %v5424_v18 = vld [vmem:[#allocation11 + $0x258] sm:$0xff]  ;;  %v5426_v39 = vld [vmem:[#allocation11 + $0x260] sm:$0xff] }
 0x256   :  { %6297 = vst [vmem:[#allocation80_spill] sm:$0xff] %v5424_v18  ;;  %6298 = vst [vmem:[#allocation81_spill] sm:$0xff] %v5426_v39  ;;  %v5428_v52 = vld [vmem:[#allocation11 + $0x268] sm:$0xff]  ;;  %v5430_v54 = vld [vmem:[#allocation11 + $0x270] sm:$0xff] }
 0x257   :  { %6299 = vst [vmem:[#allocation82_spill] sm:$0xff] %v5428_v52  ;;  %6300 = vst [vmem:[#allocation83_spill] sm:$0xff] %v5430_v54  ;;  %v5432_v40 = vld [vmem:[#allocation11 + $0x278] sm:$0xff]  ;;  %v5434_v13 = vld [vmem:[#allocation11 + $0x280] sm:$0xff] }
 0x258   :  { %6301 = vst [vmem:[#allocation84_spill] sm:$0xff] %v5432_v40  ;;  %6302 = vst [vmem:[#allocation85_spill] sm:$0xff] %v5434_v13  ;;  %v5436_v53 = vld [vmem:[#allocation11 + $0x288] sm:$0xff]  ;;  %v5438_v63 = vld [vmem:[#allocation11 + $0x290] sm:$0xff] }
 0x259   :  { %6303 = vst [vmem:[#allocation86_spill] sm:$0xff] %v5438_v63  ;;  %v5440_v32 = vld [vmem:[#allocation11 + $0x298] sm:$0xff]  ;;  %v5442_v28 = vld [vmem:[#allocation11 + $0x2a0] sm:$0xff]  ;;  %v5444_v24 = vld [vmem:[#allocation11 + $0x2a8] sm:$0xff] }
 0x25a   :  { %6304 = vst [vmem:[#allocation87_spill] sm:$0xff] %v5440_v32  ;;  %6305 = vst [vmem:[#allocation88_spill] sm:$0xff] %v5442_v28  ;;  %v5446_v31 = vld [vmem:[#allocation11 + $0x2b0] sm:$0xff]  ;;  %v5448_v57 = vld [vmem:[#allocation11 + $0x2b8] sm:$0xff]  ;;  %3445 = sbr.rel (%p3456_p12) target bundleno = 991 (0x3df), region = 111 }
 0x25b   :  { %6306 = vst [vmem:[#allocation89_spill] sm:$0xff] %v5444_v24  ;;  %6307 = vst [vmem:[#allocation90_spill] sm:$0xff] %v5446_v31  ;;  %v5450_v52 = vld [vmem:[#allocation11 + $0x2c0] sm:$0xff]  ;;  %v5452_v39 = vld [vmem:[#allocation11 + $0x2c8] sm:$0xff]  ;;  %v5471_v24 = vmov 0.0  }
 0x25c   :  { %6308 = vst [vmem:[#allocation91_spill] sm:$0xff] %v5450_v52  ;;  %6309 = vst [vmem:[#allocation92_spill] sm:$0xff] %v5452_v39  ;;  %v5454_v40 = vld [vmem:[#allocation11 + $0x2d0] sm:$0xff]  ;;  %v5456_v13 = vld [vmem:[#allocation11 + $0x2d8] sm:$0xff]  ;;  %v5473_v39 = vmov 0.0   ;;  %v5475_v52 = vmov 0.0  }
 0x25d   :  { %6310 = vst [vmem:[#allocation93_spill] sm:$0xff] %v5454_v40  ;;  %6311 = vst [vmem:[#allocation94_spill] sm:$0xff] %v5456_v13  ;;  %v5458_v54 = vld [vmem:[#allocation11 + $0x2e0] sm:$0xff]  ;;  %v5460_v63 = vld [vmem:[#allocation11 + $0x2e8] sm:$0xff]  ;;  %v5477_v13 = vmov 0.0  }
 0x25e   :  { %6312 = vst [vmem:[#allocation95_spill] sm:$0xff] %v5458_v54  ;;  %v5462_v32 = vld [vmem:[#allocation11 + $0x2f0] sm:$0xff]  ;;  %v5464_v28 = vld [vmem:[#allocation11 + $0x2f8] sm:$0xff]  ;;  %v5483_v54 = vmov (!%p3456_p12), 0.0  }
 0x25f   :  { %6313 = vst [vmem:[#allocation96_spill] sm:$0xff] %v5462_v32  ;;  %6314 = vst [vmem:[#allocation97_spill] sm:$0xff] %v5464_v28  ;;  %v5469_v31 = vld [vmem:[%s6109_s6] sm:$0x3f]  ;;  %v5485_v28 = vmov (!%p3456_p12), 0.0   ;;  %v5487_v32 = vmov (!%p3456_p12), 0.0  }
 0x260   :  { %6315 = vst [vmem:[#allocation98_spill] sm:$0xff] %v5469_v31  ;;  %v5489_v31 = vmov (!%p3456_p12), 0.0   ;;  %s5491_s6 = smov (!%p3456_p12), 0  }
 0x261 LB: > { %v6316_v35 = vld [vmem:[#allocation65_spill] sm:$0xff]  ;;  %v6317_v34 = vld [vmem:[#allocation47_spill] sm:$0xff]  ;;  %v6319_v30 = vld [vmem:[#allocation72_spill] sm:$0xff]  ;;  %6346 = vst [vmem:[#allocation99_spill] sm:$0xff] %v4691_v28  ;;  %v3637_v28 = vcombine.high %v5298_v51, %v5304_v55  ;;  %s3766_s17 = smul.u32 48, %s4703_s6  ;;  %s3767_s24 = sshll.u32 %s4703_s6, 4  ;;  %s4703_s6 = sphi %s5491_s6, %s1920_s6   ;;  %v4699_v31 = vphi %v5489_v31, %v6406_v31   ;;  %v4695_v32 = vphi %v5487_v32, %v6405_v32   ;;  %v4691_v28 = vphi %v5485_v28, %v6404_v28   ;;  %v4687_v54 = vphi %v5483_v54, %v6403_v54  }
 0x262   : > { %v6318_v33 = vld [vmem:[#allocation35_spill] sm:$0xff]  ;;  %v6320_v29 = vld [vmem:[#allocation52_spill] sm:$0xff]  ;;  %v6322_v26 = vld [vmem:[#allocation74_spill] sm:$0xff]  ;;  %6347 = vst [vmem:[#allocation100_spill] sm:$0xff] %v4699_v31  ;;  %s2691_s25 = scalar_lea.vmem [#allocation3], %s3767_s24 }
 0x263   : > { %v6321_v27 = vld [vmem:[#allocation63_spill] sm:$0xff]  ;;  %v6323_v25 = vld [vmem:[#allocation50_spill] sm:$0xff]  ;;  %v6324_v23 = vld [vmem:[#allocation48_spill] sm:$0xff]  ;;  %s5722_s22 = scalar_lea.vmem [#allocation2], %s3766_s17 }
 0x264   : > { %v6325_v22 = vld [vmem:[#allocation44_spill] sm:$0xff]  ;;  %v6326_v21 = vld [vmem:[#allocation57_spill] sm:$0xff]  ;;  %v6328_v19 = vld [vmem:[#allocation42_spill] sm:$0xff] }
 0x265   : > { %v6327_v20 = vld [vmem:[#allocation68_spill] sm:$0xff]  ;;  %v6331_v16 = vld [vmem:[#allocation54_spill] sm:$0xff]  ;;  %v6332_v15 = vld [vmem:[#allocation39_spill] sm:$0xff] }
 0x266   : > { %v6329_v18 = vld [vmem:[#allocation80_spill] sm:$0xff]  ;;  %v6333_v14 = vld [vmem:[#allocation55_spill] sm:$0xff]  ;;  %v6334_v12 = vld [vmem:[#allocation77_spill] sm:$0xff] }
 0x267   : > { %v6330_v17 = vld [vmem:[#allocation40_spill] sm:$0xff]  ;;  %v6335_v11 = vld [vmem:[#allocation37_spill] sm:$0xff]  ;;  %v6337_v9 = vld [vmem:[#allocation58_spill] sm:$0xff] }
 0x268   : > { %v6336_v10 = vld [vmem:[#allocation45_spill] sm:$0xff]  ;;  %v6338_v5 = vld [vmem:[#allocation70_spill] sm:$0xff]  ;;  %v6342_v6 = vld [vmem:[#allocation31_spill] sm:$0xff] }
 0x269   : > { %v6339_v3 = vld [vmem:[#allocation61_spill] sm:$0xff]  ;;  %v6343_v4 = vld [vmem:[#allocation30_spill] sm:$0xff]  ;;  %v6344_v2 = vld [vmem:[#allocation28_spill] sm:$0xff] }
 0x26a   : > { %v6340_v8 = vld [vmem:[#allocation33_spill] sm:$0xff]  ;;  %v6345_v1 = vld [vmem:[#allocation27_spill] sm:$0xff]  ;;  %v3631_v24 = vcombine.high %v6343_v4, %v5292_v49  ;;  %v3630_v39 = vcombine.low %v6343_v4, %v5292_v49  ;;  %v5538_v4 = vpack.c.bf16 %v4687_v54, %v4695_v32  ;;  %v6348_v0 = vld [vmem:[#allocation24_spill] sm:$0xff] }
 0x26b   : > { %v6341_v7 = vld [vmem:[#allocation25_spill] sm:$0xff]  ;;  %v3625_v13 = vcombine.high %v5274_v62, %v6345_v1  ;;  %v3624_v52 = vcombine.low %v5274_v62, %v6345_v1  ;;  %v3636_v1 = vcombine.low %v5298_v51, %v5304_v55 }
 0x26c   : > { %v3627_v31 = vcombine.high %v6341_v7, %v6344_v2  ;;  %v3626_v40 = vcombine.low %v6341_v7, %v6344_v2  ;;  %v3639_v2 = vcombine.high %v6318_v33, %v6335_v11  ;;  %2481 = vmatprep.mubr.bf16.mxu0 %v5538_v4  ;;  %2524 = vmatprep.mubr.bf16.mxu1 %v5538_v4 }
 0x26d   : > { %2449 = vmatprep.subr.bf16.mxu0 %v3625_v13  ;;  %v3633_v13 = vcombine.high %v6342_v6, %v6340_v8 }
 0x26e   : > { %2450 = vmatpush1.bf16.msra.mxu0 %v3624_v52  ;;  %v3643_v52 = vcombine.high %v6332_v15, %v6328_v19  ;;  %2492 = vmatprep.subr.bf16.mxu1 %v3627_v31  ;;  %v3638_v31 = vcombine.low %v6318_v33, %v6335_v11  ;;  %v6360_v11 = vld [vmem:[#allocation26_spill] sm:$0xff] }
 0x26f   : > { %2451 = vmatprep.subr.bf16.mxu0 %v3631_v24  ;;  %2493 = vmatpush1.bf16.msra.mxu1 %v3626_v40  ;;  %v3632_v24 = vcombine.low %v6342_v6, %v6340_v8  ;;  %v3645_v40 = vcombine.high %v6330_v17, %v5318_v50  ;;  %v4734_v6 = vmov 0   ;;  %v3672_v8 = vcombine.low %v5370_v56, %v6316_v35 }
 0x270   : > { %2494 = vmatprep.subr.bf16.mxu1 %v3633_v13  ;;  %v3655_v13 = vcombine.high %v6323_v25, %v6320_v29  ;;  %4358 = vset.pattern.permute.xlu0 %v4734_v6 }
 0x272   : > { %2452 = vmatpush1.bf16.msra.mxu0 %v3630_v39  ;;  %v3642_v39 = vcombine.low %v6332_v15, %v6328_v19  ;;  %v1932_v19 = vld [vmem:[%s5722_s22 + $0x10] sm:$0xff] }
 0x273   : > { %2453 = vmatprep.subr.bf16.mxu0 %v3637_v28  ;;  %v3649_v28 = vcombine.high %v6325_v22, %v6317_v34  ;;  %2495 = vmatpush1.bf16.msra.mxu1 %v3632_v24  ;;  %v3654_v24 = vcombine.low %v6323_v25, %v6320_v29  ;;  %v2612_v33 = vunpack.c.h.bf16 %v1932_v19 }
 0x274   : > { %2496 = vmatprep.subr.bf16.mxu1 %v3639_v2  ;;  %v3651_v2 = vcombine.high %v6336_v10, %v6324_v23 }
 0x276   : > { %2454 = vmatpush1.bf16.msra.mxu0 %v3636_v1  ;;  %v3648_v1 = vcombine.low %v6325_v22, %v6317_v34  ;;  %v1933_v22 = vld [vmem:[%s5722_s22 + $0x18] sm:$0xff] }
 0x277   : > { %2455 = vmatprep.subr.bf16.mxu0 %v3643_v52  ;;  %2497 = vmatpush1.bf16.msra.mxu1 %v3638_v31  ;;  %v3644_v52 = vcombine.low %v6330_v17, %v5318_v50  ;;  %v3657_v31 = vcombine.high %v5336_v36, %v5342_v42 }
 0x278   : > { %2498 = vmatprep.subr.bf16.mxu1 %v3645_v40  ;;  %v3660_v40 = vcombine.low %v6331_v16, %v6326_v21 }
 0x27a   : > { %2456 = vmatpush1.bf16.msra.mxu0 %v3642_v39  ;;  %v3661_v39 = vcombine.high %v6331_v16, %v6326_v21  ;;  %v6393_v16 = vld [vmem:[#allocation79_spill] sm:$0xff] }
 0x27b   : > { %2457 = vmatprep.subr.bf16.mxu0 %v3649_v28  ;;  %2499 = vmatpush1.bf16.msra.mxu1 %v3644_v52  ;;  %v3650_v28 = vcombine.low %v6336_v10, %v6324_v23  ;;  %v2670_v52 = vstv %s4703_s6  ;;  %s1920_s6 = sadd.s32 1, %s4703_s6  }
 0x27c   : > { %2500 = vmatprep.subr.bf16.mxu1 %v3651_v2  ;;  %v3663_v2 = vcombine.high %v6333_v14, %v6337_v9  ;;  %vm2671_vm2 = vcmp.gt.s32.totalorder %v5267_v45, %v2670_v52  ;;  %vm2672_vm3 = vcmp.gt.s32.totalorder %v6348_v0, %v2670_v52  ;;  %v3675_v52 = vcombine.high %v6321_v27, %v5378_v58  ;;  %p1919_p13 = scmp.ge.s32.totalorder %s1920_s6, %s6103_s0 }
 0x27d   : > { %v2674_v7 = vsel %vm2672_vm3, 1, %v4734_v6 }
 0x27e   : > { %2458 = vmatpush1.bf16.msra.mxu0 %v3648_v1  ;;  %v3667_v1 = vcombine.high %v5358_v46, %v5364_v47 }
 0x27f   : > { %2459 = vmatprep.subr.bf16.mxu0 %v3655_v13  ;;  %2501 = vmatpush1.bf16.msra.mxu1 %v3650_v28  ;;  %v3656_v13 = vcombine.low %v5336_v36, %v5342_v42  ;;  %v2673_v28 = vsel %vm2671_vm2, 1, %v4734_v6  ;;  %v3678_v6 = vcombine.low %v5382_v44, %v5388_v60 }
 0x280   : > { %2502 = vmatprep.subr.bf16.mxu1 %v3657_v31  ;;  %v3662_v31 = vcombine.low %v6333_v14, %v6337_v9  ;;  %2676 = vperm.xlu0 %4358, %v2673_v28   ;;  %v3680_v28 = vcombine.low %v5384_v41, %v6327_v20  ;;  %v6357_v9 = vld [vmem:[#allocation89_spill] sm:$0xff]  ;;  %v6362_v14 = vld [vmem:[#allocation99_spill] sm:$0xff] }
 0x282   : > { %2460 = vmatpush1.bf16.msra.mxu0 %v3654_v24  ;;  %v3666_v24 = vcombine.low %v5358_v46, %v5364_v47 }
 0x283   : > { %2461 = vmatprep.subr.bf16.mxu0 %v3661_v39  ;;  %v3673_v39 = vcombine.high %v5370_v56, %v6316_v35  ;;  %2503 = vmatpush1.bf16.msra.mxu1 %v3656_v13  ;;  %v3668_v13 = vcombine.low %v5360_v38, %v6339_v3 }
 0x284   : > { %2504 = vmatprep.subr.bf16.mxu1 %v3663_v2  ;;  %2679 = vperm.xlu0 %4358, %v2674_v7   ;;  %v3685_v2 = vcombine.high %v6338_v5, %v5400_v48  ;;  %v3681_v7 = vcombine.high %v5384_v41, %v6327_v20 }
 0x286   : > { %2462 = vmatpush1.bf16.msra.mxu0 %v3660_v40  ;;  %v3669_v40 = vcombine.high %v5360_v38, %v6339_v3  ;;  %v6354_v3 = vld [vmem:[#allocation84_spill] sm:$0xff] }
 0x287   : > { %2463 = vmatprep.subr.bf16.mxu0 %v3667_v1  ;;  %v3679_v1 = vcombine.high %v5382_v44, %v5388_v60  ;;  %2505 = vmatpush1.bf16.msra.mxu1 %v3662_v31  ;;  %v3687_v31 = vcombine.high %v5396_v43, %v6319_v30 }
 0x288   : > { %2506 = vmatprep.subr.bf16.mxu1 %v3669_v40  ;;  %v3690_v40 = vcombine.low %v6322_v26, %v5412_v37 }
 0x28a   : > { %2464 = vmatpush1.bf16.msra.mxu0 %v3666_v24  ;;  %v3674_v24 = vcombine.low %v6321_v27, %v5378_v58  ;;  %v2610_v27 = vunpack.c.l.bf16 %v1932_v19 }
 0x28b   : > { %2465 = vmatprep.subr.bf16.mxu0 %v3673_v39  ;;  %2507 = vmatpush1.bf16.msra.mxu1 %v3668_v13  ;;  %v3684_v39 = vcombine.low %v6338_v5, %v5400_v48  ;;  %v3686_v13 = vcombine.low %v5396_v43, %v6319_v30  ;;  %v2611_v30 = vunpack.c.l.bf16 %v1933_v22 }
 0x28c   : > { %2508 = vmatprep.subr.bf16.mxu1 %v3675_v52  ;;  %v3693_v52 = vcombine.high %v5408_v59, %v5414_v61 }
 0x28e   : > { %2466 = vmatpush1.bf16.msra.mxu0 %v3672_v8  ;;  %v3691_v8 = vcombine.high %v6322_v26, %v5412_v37 }
 0x28f   : > { %2467 = vmatprep.subr.bf16.mxu0 %v3679_v1  ;;  %2509 = vmatpush1.bf16.msra.mxu1 %v3674_v24  ;;  %v3697_v1 = vcombine.high %v6334_v12, %v6329_v18 }
 0x290   : > { %2510 = vmatprep.subr.bf16.mxu1 %v3681_v7  ;;  %v3692_v7 = vcombine.low %v5408_v59, %v5414_v61 }
 0x292   : > { %2468 = vmatpush1.bf16.msra.mxu0 %v3678_v6  ;;  %v3696_v6 = vcombine.low %v6334_v12, %v6329_v18 }
 0x293   : > { %2469 = vmatprep.subr.bf16.mxu0 %v3685_v2  ;;  %2511 = vmatpush1.bf16.msra.mxu1 %v3680_v28  ;;  %v6349_v2 = vld [vmem:[#allocation83_spill] sm:$0xff] }
 0x294   : > { %2512 = vmatprep.subr.bf16.mxu1 %v3687_v31  ;;  %v3703_v24 = vcombine.high %v6349_v2, %v5436_v53  ;;  %v3702_v31 = vcombine.low %v6349_v2, %v5436_v53 }
 0x296   : > { %2470 = vmatpush1.bf16.msra.mxu0 %v3684_v39  ;;  %v6350_v39 = vld [vmem:[#allocation81_spill] sm:$0xff] }
 0x297   : > { %2471 = vmatprep.subr.bf16.mxu0 %v3691_v8  ;;  %2513 = vmatpush1.bf16.msra.mxu1 %v3686_v13  ;;  %v6351_v8 = vld [vmem:[#allocation78_spill] sm:$0xff] }
 0x298   : > { %2514 = vmatprep.subr.bf16.mxu1 %v3693_v52  ;;  %v3699_v28 = vcombine.high %v6351_v8, %v6350_v39  ;;  %v6353_v13 = vld [vmem:[#allocation86_spill] sm:$0xff] }
 0x299   : > { %v3705_v5 = vcombine.high %v6354_v3, %v6353_v13 }
 0x29a   : > { %2472 = vmatpush1.bf16.msra.mxu0 %v3690_v40  ;;  %v6352_v40 = vld [vmem:[#allocation88_spill] sm:$0xff] }
 0x29b   : > { %2473 = vmatprep.subr.bf16.mxu0 %v3697_v1  ;;  %v3709_v0 = vcombine.high %v6352_v40, %v5448_v57  ;;  %2515 = vmatpush1.bf16.msra.mxu1 %v3692_v7  ;;  %v3698_v1 = vcombine.low %v6351_v8, %v6350_v39  ;;  %v3708_v52 = vcombine.low %v6352_v40, %v5448_v57  ;;  %v6356_v7 = vld [vmem:[#allocation91_spill] sm:$0xff] }
 0x29c   : > { %2516 = vmatprep.subr.bf16.mxu1 %v3699_v28  ;;  %v3711_v8 = vcombine.high %v6357_v9, %v6356_v7 }
 0x29e   : > { %2474 = vmatpush1.bf16.msra.mxu0 %v3696_v6  ;;  %v6355_v6 = vld [vmem:[#allocation93_spill] sm:$0xff] }
 0x29f   : > { %2475 = vmatprep.subr.bf16.mxu0 %v3703_v24  ;;  %v3715_v2 = vcombine.high %v6355_v6, %v5460_v63  ;;  %2517 = vmatpush1.bf16.msra.mxu1 %v3698_v1  ;;  %v3704_v24 = vcombine.low %v6354_v3, %v6353_v13  ;;  %v3714_v28 = vcombine.low %v6355_v6, %v5460_v63  ;;  %v6361_v1 = vld [vmem:[#allocation100_spill] sm:$0xff]  ;;  %v6364_v3 = vld [vmem:[#allocation94_spill] sm:$0xff] }
 0x2a0   : > { %2518 = vmatprep.subr.bf16.mxu1 %v3705_v5  ;;  %v5645_v15 = vpack.c.bf16 %v6362_v14, %v6361_v1  ;;  %v6363_v5 = vld [vmem:[#allocation96_spill] sm:$0xff] }
 0x2a1   : > { %v3717_v13 = vcombine.high %v6364_v3, %v6363_v5  ;;  %v6366_v6 = vld [vmem:[#allocation32_spill] sm:$0xff] }
 0x2a2   : > { %2476 = vmatpush1.bf16.msra.mxu0 %v3702_v31  ;;  %v6358_v31 = vld [vmem:[#allocation29_spill] sm:$0xff] }
 0x2a3   : > { %2477 = vmatprep.subr.bf16.mxu0 %v3709_v0  ;;  %v6359_v10 = vmov %v6358_v31  ;;  %v3629_v12 = vcombine.high %v6360_v11, %v6358_v31  ;;  %2519 = vmatpush1.bf16.msra.mxu1 %v3704_v24  ;;  %v3710_v0 = vcombine.low %v6357_v9, %v6356_v7  ;;  %v3716_v24 = vcombine.low %v6364_v3, %v6363_v5  ;;  %v6369_v9 = vld [vmem:[#allocation36_spill] sm:$0xff]  ;;  %v6370_v3 = vld [vmem:[#allocation43_spill] sm:$0xff]  ;;  %v6371_v5 = vld [vmem:[#allocation41_spill] sm:$0xff] }
 0x2a4   : > { %2520 = vmatprep.subr.bf16.mxu1 %v3711_v8 }
 0x2a6   : > { %2478 = vmatpush1.bf16.msra.mxu0 %v3708_v52  ;;  %v3628_v52 = vcombine.low %v6360_v11, %v6359_v10  ;;  %v3647_v10 = vcombine.high %v6371_v5, %v6370_v3  ;;  %v6385_v11 = vld [vmem:[#allocation67_spill] sm:$0xff] }
 0x2a7   : > { %2479 = vmatprep.subr.bf16.mxu0 %v3715_v2  ;;  %v6365_v2 = vld [vmem:[#allocation34_spill] sm:$0xff]  ;;  %2521 = vmatpush1.bf16.msra.mxu1 %v3710_v0 }
 0x2a8   : > { %v3635_v31 = vcombine.high %v6366_v6, %v6365_v2  ;;  %2522 = vmatprep.subr.bf16.mxu1 %v3717_v13  ;;  %v3634_v8 = vcombine.low %v6366_v6, %v6365_v2  ;;  %v3646_v13 = vcombine.low %v6371_v5, %v6370_v3  ;;  %v6380_v5 = vld [vmem:[#allocation60_spill] sm:$0xff] }
 0x2aa   : > { %2480 = vmatpush1.bf16.msra.mxu0 %v3714_v28  ;;  %v6367_v28 = vld [vmem:[#allocation38_spill] sm:$0xff] }
 0x2ab   : > { %2535 = vmatprep.subr.bf16.mxu0 %v3629_v12  ;;  %v6368_v7 = vmov %v6367_v28  ;;  %v3641_v12 = vcombine.high %v6369_v9, %v6367_v28  ;;  %2523 = vmatpush1.bf16.msra.mxu1 %v3716_v24  ;;  %v6375_v28 = vld [vmem:[#allocation51_spill] sm:$0xff] }
 0x2ac   : > { %v3640_v0 = vcombine.low %v6369_v9, %v6368_v7  ;;  %v6378_v7 = vld [vmem:[#allocation56_spill] sm:$0xff] }
 0x2ad   : > { %2482 = vmatmul.mubr.bf16.vlgmr.msra.gmra.mrb[0].mxu0 %v5645_v15 }
 0x2ae   : > { %2536 = vmatpush1.bf16.msra.mxu0 %v3628_v52  ;;  %2567 = vmatprep.mubr.bf16.mxu0 %v5538_v4  ;;  %v6372_v4 = vld [vmem:[#allocation49_spill] sm:$0xff]  ;;  %v6373_v52 = vld [vmem:[#allocation46_spill] sm:$0xff] }
 0x2af   : > { %2537 = vmatprep.subr.bf16.mxu0 %v3635_v31  ;;  %2525 = vmatmul.mubr.bf16.vlgmr.msra.gmra.mrb[0].mxu1 %v5645_v15  ;;  %v3653_v31 = vcombine.high %v6373_v52, %v6372_v4  ;;  %v3652_v24 = vcombine.low %v6373_v52, %v6372_v4 }
 0x2b2   : > { %2538 = vmatpush1.bf16.msra.mxu0 %v3634_v8  ;;  %v6374_v8 = vld [vmem:[#allocation53_spill] sm:$0xff] }
 0x2b3   : > { %2539 = vmatprep.subr.bf16.mxu0 %v3641_v12  ;;  %v6376_v12 = vmov %v6375_v28  ;;  %v3659_v2 = vcombine.high %v6375_v28, %v6374_v8  ;;  %v6382_v28 = vld [vmem:[#allocation64_spill] sm:$0xff] }
 0x2b4   : > { %v3658_v6 = vcombine.low %v6376_v12, %v6374_v8  ;;  %v6383_v9 = vmov %v6382_v28 }
 0x2b6   : > { %2540 = vmatpush1.bf16.msra.mxu0 %v3640_v0  ;;  %v6377_v0 = vld [vmem:[#allocation59_spill] sm:$0xff] }
 0x2b7   : > { %2541 = vmatprep.subr.bf16.mxu0 %v3647_v10  ;;  %v3665_v3 = vcombine.high %v6378_v7, %v6377_v0  ;;  %v3664_v10 = vcombine.low %v6378_v7, %v6377_v0  ;;  %v6387_v7 = vld [vmem:[#allocation71_spill] sm:$0xff] }
 0x2ba   : > { %2542 = vmatpush1.bf16.msra.mxu0 %v3646_v13  ;;  %v6379_v13 = vld [vmem:[#allocation62_spill] sm:$0xff] }
 0x2bb   : > { %2543 = vmatprep.subr.bf16.mxu0 %v3653_v31  ;;  %v3671_v4 = vcombine.high %v6380_v5, %v6379_v13  ;;  %v3670_v31 = vcombine.low %v6380_v5, %v6379_v13 }
 0x2be   : > { %2544 = vmatpush1.bf16.msra.mxu0 %v3652_v24  ;;  %v6381_v24 = vld [vmem:[#allocation66_spill] sm:$0xff] }
 0x2bf   : > { %2545 = vmatprep.subr.bf16.mxu0 %v3659_v2  ;;  %v3677_v8 = vcombine.high %v6382_v28, %v6381_v24  ;;  %v3676_v2 = vcombine.low %v6383_v9, %v6381_v24  ;;  %v6390_v28 = vld [vmem:[#allocation75_spill] sm:$0xff] }
 0x2c0   : > { %v6391_v13 = vmov %v6390_v28 }
 0x2c2   : > { %2546 = vmatpush1.bf16.msra.mxu0 %v3658_v6  ;;  %v6384_v6 = vld [vmem:[#allocation69_spill] sm:$0xff] }
 0x2c3   : > { %2547 = vmatprep.subr.bf16.mxu0 %v3665_v3  ;;  %v3683_v0 = vcombine.high %v6385_v11, %v6384_v6  ;;  %v3682_v3 = vcombine.low %v6385_v11, %v6384_v6  ;;  %v6395_v11 = vld [vmem:[#allocation85_spill] sm:$0xff] }
 0x2c6   : > { %2548 = vmatpush1.bf16.msra.mxu0 %v3664_v10  ;;  %v6386_v10 = vld [vmem:[#allocation73_spill] sm:$0xff] }
 0x2c7   : > { %2549 = vmatprep.subr.bf16.mxu0 %v3671_v4  ;;  %v3689_v5 = vcombine.high %v6387_v7, %v6386_v10  ;;  %v3688_v4 = vcombine.low %v6387_v7, %v6386_v10 }
 0x2ca   : > { %2550 = vmatpush1.bf16.msra.mxu0 %v3670_v31  ;;  %v6388_v31 = vld [vmem:[#allocation76_spill] sm:$0xff] }
 0x2cb   : > { %2551 = vmatprep.subr.bf16.mxu0 %v3677_v8  ;;  %v6389_v12 = vmov %v6388_v31  ;;  %v3695_v9 = vcombine.high %v6390_v28, %v6388_v31  ;;  %v6396_v31 = vld [vmem:[#allocation92_spill] sm:$0xff]  ;;  %v6398_v28 = vld [vmem:[#allocation90_spill] sm:$0xff] }
 0x2cc   : > { %v3694_v8 = vcombine.low %v6391_v13, %v6389_v12  ;;  %v6397_v7 = vmov %v6396_v31  ;;  %v6399_v10 = vmov %v6398_v28  ;;  %v6400_v12 = vld [vmem:[#allocation97_spill] sm:$0xff] }
 0x2ce   : > { %2552 = vmatpush1.bf16.msra.mxu0 %v3676_v2  ;;  %v6392_v2 = vld [vmem:[#allocation82_spill] sm:$0xff] }
 0x2cf   : > { %2553 = vmatprep.subr.bf16.mxu0 %v3683_v0  ;;  %v3701_v6 = vcombine.high %v6393_v16, %v6392_v2  ;;  %v3700_v0 = vcombine.low %v6393_v16, %v6392_v2  ;;  %v6401_v2 = vld [vmem:[#allocation95_spill] sm:$0xff] }
 0x2d0   : > { %v3718_v13 = vcombine.low %v6401_v2, %v6400_v12 }
 0x2d2   : > { %2554 = vmatpush1.bf16.msra.mxu0 %v3682_v3  ;;  %v6394_v3 = vld [vmem:[#allocation87_spill] sm:$0xff] }
 0x2d3   : > { %2555 = vmatprep.subr.bf16.mxu0 %v3689_v5  ;;  %v3707_v5 = vcombine.high %v6395_v11, %v6394_v3 }
 0x2d6   : > { %2556 = vmatpush1.bf16.msra.mxu0 %v3688_v4  ;;  %v3706_v4 = vcombine.low %v6395_v11, %v6394_v3 }
 0x2d7   : > { %2557 = vmatprep.subr.bf16.mxu0 %v3695_v9  ;;  %v3713_v9 = vcombine.high %v6398_v28, %v6396_v31  ;;  %v1930_v28 = vld [vmem:[%s5722_s22] sm:$0xff] }
 0x2da   : > { %2558 = vmatpush1.bf16.msra.mxu0 %v3694_v8  ;;  %v3712_v8 = vcombine.low %v6399_v10, %v6397_v7 }
 0x2db   : > { %2559 = vmatprep.subr.bf16.mxu0 %v3701_v6  ;;  %v3719_v6 = vcombine.high %v6401_v2, %v6400_v12  ;;  %v2580_v12 = vunpack.c.h.bf16 %v1930_v28 }
 0x2de   : > { %2560 = vmatpush1.bf16.msra.mxu0 %v3700_v0  ;;  %v1939_v0 = vlaneseq }
 0x2df   : > { %2561 = vmatprep.subr.bf16.mxu0 %v3707_v5 }
 0x2e0   : > { %v5718_v5 = vshrl.u32 %v1939_v0, 7 }
 0x2e2   : > { %2562 = vmatpush1.bf16.msra.mxu0 %v3706_v4  ;;  %v1941_v4 = vsub.s32 0, %v5718_v5  ;;  %v1945_v31 = vsub.s32 1, %v5718_v5  ;;  %v1949_v0 = vsub.s32 2, %v5718_v5  ;;  %v1953_v7 = vsub.s32 3, %v5718_v5 }
 0x2e3   : > { %2563 = vmatprep.subr.bf16.mxu0 %v3713_v9  ;;  %v6402_v9 = vld [vmem:[#allocation98_spill] sm:$0xff] }
 0x2e4   : > { %v1954_v25 = vrot.slane %v6402_v9, %v1953_v7 }
 0x2e6   : > { %2564 = vmatpush1.bf16.msra.mxu0 %v3712_v8  ;;  %v1942_v8 = vrot.slane %v6402_v9, %v1941_v4 }
 0x2e7   : > { %2565 = vmatprep.subr.bf16.mxu0 %v3719_v6  ;;  %v1931_v6 = vld [vmem:[%s5722_s22 + $0x8] sm:$0xff] }
 0x2e8   : > { %v2579_v3 = vunpack.c.l.bf16 %v1931_v6  ;;  %v2581_v18 = vunpack.c.h.bf16 %v1931_v6 }
 0x2ea   : > { %2566 = vmatpush1.bf16.msra.mxu0 %v3718_v13  ;;  %v1946_v13 = vrot.slane %v6402_v9, %v1945_v31  ;;  %v1950_v31 = vrot.slane %v6402_v9, %v1949_v0 }
 0x2ed   : > { %2568 = vmatmul.mubr.bf16.vlgmr.msra.gmra.mrb[4].mxu0 %v5645_v15  ;;  %v2578_v15 = vunpack.c.l.bf16 %v1930_v28 }
 0x380   : > { %v2483_v2 = vpop.f32.mrb[0].mxu0 }
 0x381   : > { %v2484_v10 = vadd.f32 %v2483_v2, %v1942_v8  ;;  %v2485_v11 = vpop.f32.mrb[1].mxu0 }
 0x382   : > { %v2486_v16 = vadd.f32 %v2485_v11, %v1946_v13  ;;  %v2487_v17 = vpop.f32.mrb[2].mxu0  ;;  %v2526_v2 = vpop.f32.mrb[0].mxu1 }
 0x383   : > { %v2582_v20 = vadd.f32 %v2578_v15, %v2484_v10  ;;  %v2488_v4 = vadd.f32 %v2487_v17, %v1942_v8  ;;  %v2489_v21 = vpop.f32.mrb[3].mxu0  ;;  %v2527_v28 = vadd.f32 %v2526_v2, %v1950_v31  ;;  %v2528_v11 = vpop.f32.mrb[1].mxu1  ;;  %v2613_v10 = vunpack.c.h.bf16 %v1933_v22  ;;  %v1934_v2 = vld [vmem:[%s5722_s22 + $0x20] sm:$0xff] }
 0x384   : > { %v2583_v23 = vadd.f32 %v2579_v3, %v2486_v16  ;;  %v2490_v24 = vadd.f32 %v2489_v21, %v1946_v13  ;;  %v2529_v6 = vadd.f32 %v2528_v11, %v1954_v25  ;;  %v2530_v34 = vpop.f32.mrb[2].mxu1 }
 0x385   : > { %v2584_v26 = vadd.f32 %v2580_v12, %v2488_v4  ;;  %v2614_v17 = vadd.f32 %v2610_v27, %v2527_v28  ;;  %v2531_v8 = vadd.f32 %v2530_v34, %v1950_v31  ;;  %v2532_v15 = vpop.f32.mrb[3].mxu1  ;;  %v3720_v3 = vmul.f32 -1.442695, %v2582_v20 }
 0x386   : > { %v2585_v29 = vadd.f32 %v2581_v18, %v2490_v24  ;;  %v2615_v0 = vadd.f32 %v2611_v30, %v2529_v6  ;;  %v2533_v35 = vadd.f32 %v2532_v15, %v1954_v25  ;;  %v3721_v7 = vmul.f32 -1.442695, %v2583_v23  ;;  %v1935_v6 = vld [vmem:[%s5722_s22 + $0x28] sm:$0xff] }
 0x387   : > { %v2616_v16 = vadd.f32 %v2612_v33, %v2531_v8  ;;  %v3722_v12 = vmul.f32 -1.442695, %v2584_v26  ;;  %4359 = vpow2.f32 %v3720_v3  ;;  %v3724_v18 = vmul.f32 -1.442695, %v2614_v17 }
 0x388   : > { %v2617_v21 = vadd.f32 %v2613_v10, %v2533_v35  ;;  %v3723_v13 = vmul.f32 -1.442695, %v2585_v29  ;;  %4361 = vpow2.f32 %v3721_v7  ;;  %v3725_v24 = vmul.f32 -1.442695, %v2615_v0 }
 0x389   : > { %4363 = vpow2.f32 %v3722_v12  ;;  %v3726_v22 = vmul.f32 -1.442695, %v2616_v16  ;;  %v1957_v29 = vsub.s32 4, %v5718_v5  ;;  %v1961_v26 = vsub.s32 5, %v5718_v5 }
 0x38a   : > { %4365 = vpow2.f32 %v3723_v13  ;;  %v3727_v34 = vmul.f32 -1.442695, %v2617_v21  ;;  %v2646_v16 = vunpack.c.l.bf16 %v1934_v2  ;;  %v2647_v5 = vunpack.c.l.bf16 %v1935_v6 }
 0x38b   : > { %4367 = vpow2.f32 %v3724_v18  ;;  %v1958_v35 = vrot.slane %v6402_v9, %v1957_v29  ;;  %v1962_v28 = vrot.slane %v6402_v9, %v1961_v26 }
 0x38c   : > { %4369 = vpow2.f32 %v3725_v24 }
 0x38d   : > { %4371 = vpow2.f32 %v3726_v22 }
 0x38e   : > { %4373 = vpow2.f32 %v3727_v34 }
 0x391   : > { %v4360_v19 = vpop.eup %4359 }
 0x392   : > { %v4362_v4 = vpop.eup %4361  ;;  %v2598_v30 = vadd.f32 1.0, %v4360_v19 }
 0x393   : > { %v4364_v27 = vpop.eup %4363  ;;  %v2599_v33 = vadd.f32 1.0, %v4362_v4  ;;  %v2648_v4 = vunpack.c.h.bf16 %v1934_v2 }
 0x394   : > { %v4366_v31 = vpop.eup %4365  ;;  %v2600_v23 = vadd.f32 1.0, %v4364_v27  ;;  %4375 = vrcp.f32 %v2598_v30  ;;  %v2649_v30 = vunpack.c.h.bf16 %v1935_v6 }
 0x395   : > { %v2601_v25 = vadd.f32 1.0, %v4366_v31  ;;  %4377 = vrcp.f32 %v2599_v33  ;;  %v4368_v20 = vpop.eup %4367 }
 0x396   : > { %4379 = vrcp.f32 %v2600_v23  ;;  %v4370_v11 = vpop.eup %4369  ;;  %v2630_v15 = vadd.f32 1.0, %v4368_v20 }
 0x397   : > { %4381 = vrcp.f32 %v2601_v25  ;;  %v4372_v10 = vpop.eup %4371  ;;  %v2631_v7 = vadd.f32 1.0, %v4370_v11 }
 0x398   : > { %v4374_v8 = vpop.eup %4373  ;;  %4383 = vrcp.f32 %v2630_v15  ;;  %v2632_v20 = vadd.f32 1.0, %v4372_v10 }
 0x399   : > { %4385 = vrcp.f32 %v2631_v7 }
 0x39e   : > { %v4376_v3 = vpop.eup %4375 }
 0x39f   : > { %v4378_v18 = vpop.eup %4377 }
 0x3a0   : > { %v4380_v27 = vpop.eup %4379 }
 0x3a1   : > { %v4382_v33 = vpop.eup %4381 }
 0x3c0   : > { %v2569_v17 = vpop.f32.mrb[4].mxu0 }
 0x3c1   : > { %v2570_v0 = vadd.f32 %v2569_v17, %v1958_v35  ;;  %v2571_v21 = vpop.f32.mrb[5].mxu0  ;;  %v2633_v17 = vadd.f32 1.0, %v4374_v8 }
 0x3c2   : > { %v2572_v12 = vadd.f32 %v2571_v21, %v1962_v28  ;;  %v2573_v13 = vpop.f32.mrb[6].mxu0 }
 0x3c3   : > { %v2642_v19 = vmul.f32 %v4376_v3, %v2570_v0  ;;  %v2574_v24 = vadd.f32 %v2573_v13, %v1958_v35  ;;  %v2575_v22 = vpop.f32.mrb[7].mxu0  ;;  %v4384_v35 = vpop.eup %4383 }
 0x3c4   : > { %v2643_v34 = vmul.f32 %v4378_v18, %v2572_v12  ;;  %v2576_v31 = vadd.f32 %v2575_v22, %v1962_v28  ;;  %v4386_v2 = vpop.eup %4385  ;;  %v2677_v28 = vpop.permute.xlu0 %2676 }
 0x3c5   : > { %v2650_v23 = vadd.f32 %v2646_v16, %v2642_v19  ;;  %v2644_v25 = vmul.f32 %v4380_v27, %v2574_v24  ;;  %vm2681_vm4 = vcmp.eq.s32.totalorder %v2677_v28, 1 }
 0x3c6   : > { %v2651_v29 = vadd.f32 %v2647_v5, %v2643_v34  ;;  %v2645_v26 = vmul.f32 %v4382_v33, %v2576_v31 }
 0x3c7   : > { %4387 = vtanh.f32 %v2650_v23  ;;  %v2652_v11 = vadd.f32 %v2648_v4, %v2644_v25 }
 0x3c8   : > { %4389 = vtanh.f32 %v2651_v29  ;;  %v2653_v0 = vadd.f32 %v2649_v30, %v2645_v26  ;;  %v2680_v24 = vpop.permute.xlu0 %2679 }
 0x3c9   : > { %4391 = vtanh.f32 %v2652_v11  ;;  %vm2682_vm5 = vcmp.eq.s32.totalorder %v2680_v24, 1 }
 0x3ca   : > { %4393 = vtanh.f32 %v2653_v0 }
 0x3cb   : > { %4395 = vrcp.f32 %v2632_v20 }
 0x3cc   : > { %4397 = vrcp.f32 %v2633_v17 }
 0x3d1   : > { %v4388_v6 = vpop.eup %4387 }
 0x3d2   : > { %v4390_v15 = vpop.eup %4389  ;;  %v2658_v16 = vsub.f32 %v6361_v1, %v4388_v6 }
 0x3d3   : > { %v4392_v21 = vpop.eup %4391  ;;  %v2659_v10 = vsub.f32 %v4695_v32, %v4390_v15 }
 0x3d4   : > { %v4394_v3 = vpop.eup %4393  ;;  %v2662_v7 = vmul.f32 %v4384_v35, %v2658_v16  ;;  %v2660_v8 = vsub.f32 %v6362_v14, %v4392_v21 }
 0x3d5   : > { %v4396_v12 = vpop.eup %4395  ;;  %v2663_v5 = vmul.f32 %v4386_v2, %v2659_v10  ;;  %v2661_v13 = vsub.f32 %v4687_v54, %v4394_v3 }
 0x3d6   : > { %v4398_v18 = vpop.eup %4397  ;;  %v2666_v19 = vadd.f32 %v4388_v6, %v2662_v7  ;;  %v2664_v4 = vmul.f32 %v4396_v12, %v2660_v8 }
 0x3d7   : > { %v2667_v22 = vadd.f32 %v4390_v15, %v2663_v5  ;;  %v2665_v27 = vmul.f32 %v4398_v18, %v2661_v13 }
 0x3d8   : > { %v2694_v34 = vsel %vm2681_vm4, %v2666_v19, %v6361_v1   ;;  %v2668_v31 = vadd.f32 %v4392_v21, %v2664_v4  ;;  %v2683_v23 = vsel %vm2681_vm4, %v2666_v19, 0.0  ;;  %1922 = sbr.rel (!%p1919_p13) target bundleno = 609 (0x261), region = 117 }
 0x3d9   : > { %v2695_v30 = vsel %vm2681_vm4, %v2667_v22, %v4695_v32   ;;  %v2669_v33 = vadd.f32 %v4394_v3, %v2665_v27  ;;  %v2684_v26 = vsel %vm2681_vm4, %v2667_v22, 0.0  ;;  %v6410_v13 = vmov (%p1919_p13), %v2694_v34 }
 0x3da   : > { %v2685_v25 = vsel %vm2682_vm5, %v2668_v31, 0.0  ;;  %v2696_v29 = vsel %vm2682_vm5, %v2668_v31, %v6362_v14   ;;  %v6405_v32 = vmov %v2695_v30  ;;  %v6406_v31 = vmov %v2694_v34 }
 0x3db   : > { %v2686_v20 = vsel %vm2682_vm5, %v2669_v33, 0.0  ;;  %v2687_v11 = vpack.c.bf16 %v2685_v25, %v2683_v23  ;;  %v2697_v17 = vsel %vm2682_vm5, %v2669_v33, %v4687_v54   ;;  %v6404_v28 = vmov %v2696_v29 }
 0x3dc   : > { %v2688_v0 = vpack.c.bf16 %v2686_v20, %v2684_v26  ;;  %v6403_v54 = vmov %v2697_v17  ;;  %v6407_v24 = vmov (%p1919_p13), %v2697_v17  ;;  %v6408_v39 = vmov (%p1919_p13), %v2696_v29 }
 0x3dd   : > { %2692 = vst [vmem:[%s2691_s25] sm:$0xff] %v2687_v11  ;;  %v6409_v52 = vmov (%p1919_p13), %v2695_v30 }
 0x3de   : > { %2693 = vst [vmem:[%s2691_s25 + $0x8] sm:$0xff] %v2688_v0 }
 0x3df PF:  { %v4399_v45 = vld [vmem:[#allocation14 + $0x40] sm:$0xff]   ;;  %v2703_v62 = vpack.c.bf16 %v4707_v24, %v4715_v52  ;;  %2698 = vst [vmem:[#allocation16] sm:$0xff] %v4719_v13  ;;  %2699 = vst [vmem:[#allocation16 + $0x8] sm:$0xff] %v4715_v52  ;;  %v4403_v51 = vld [vmem:[#allocation14 + $0x48] sm:$0xff]   ;;  %v2702_v28 = vpack.c.bf16 %v4711_v39, %v4719_v13  ;;  %v4719_v13 = vphi %v5477_v13, %v6410_v13   ;;  %v4715_v52 = vphi %v5475_v52, %v6409_v52   ;;  %v4711_v39 = vphi %v5473_v39, %v6408_v39   ;;  %v4707_v24 = vphi %v5471_v24, %v6407_v24  }
 0x3e0   :  { %2700 = vst [vmem:[#allocation16 + $0x10] sm:$0xff] %v4711_v39  ;;  %2701 = vst [vmem:[#allocation16 + $0x18] sm:$0xff] %v4707_v24  ;;  %v5785_v53 = vld [vmem:[#allocation12 + $0x40] sm:$0xff]   ;;  %3768 = vmatprep.subr.bf16.mxu0 %v4399_v45  ;;  %v5791_v54 = vld [vmem:[#allocation12 + $0x48] sm:$0xff]  }
 0x3e1   :  { %v4401_v49 = vld [vmem:[#allocation14] sm:$0xff]   ;;  %2871 = vmatprep.mubr.bf16.mxu0 %v2703_v62  ;;  %4046 = vmatprep.subr.bf16.mxu1 %v5785_v53  ;;  %v4405_v55 = vld [vmem:[#allocation14 + $0x8] sm:$0xff]   ;;  %v4407_v36 = vld [vmem:[#allocation14 + $0x50] sm:$0xff]  }
 0x3e2   :  { %v5788_v32 = vld [vmem:[#allocation12] sm:$0xff]   ;;  %3769 = vmatpush3.bf16.msra.mxu0 %v4401_v49  ;;  %v5794_v50 = vld [vmem:[#allocation12 + $0x8] sm:$0xff]   ;;  %v4408_v37 = vld [vmem:[#allocation12 + $0x50] sm:$0xff]  }
 0x3e3   :  { %4054 = vmatpush3.bf16.msra.mxu1 %v5788_v32  ;;  %3770 = vmatprep.subr.bf16.mxu0 %v4403_v51  ;;  %v4409_v42 = vld [vmem:[#allocation14 + $0x10] sm:$0xff]   ;;  %v4411_v14 = vld [vmem:[#allocation14 + $0x58] sm:$0xff]   ;;  %v4415_v47 = vld [vmem:[#allocation14 + $0x60] sm:$0xff]  }
 0x3e4   :  { %4047 = vmatprep.subr.bf16.mxu1 %v5791_v54  ;;  %v4410_v63 = vld [vmem:[#allocation12 + $0x10] sm:$0xff]   ;;  %v4412_v46 = vld [vmem:[#allocation12 + $0x58] sm:$0xff]   ;;  %v4416_v56 = vld [vmem:[#allocation12 + $0x60] sm:$0xff]  }
 0x3e5   :  { %v4413_v38 = vld [vmem:[#allocation14 + $0x18] sm:$0xff]   ;;  %v4417_v57 = vld [vmem:[#allocation14 + $0x20] sm:$0xff]   ;;  %v4419_v44 = vld [vmem:[#allocation14 + $0x68] sm:$0xff]  }
 0x3e6   :  { %3771 = vmatpush3.bf16.msra.mxu0 %v4405_v55  ;;  %v4414_v48 = vld [vmem:[#allocation12 + $0x18] sm:$0xff]   ;;  %v4418_v58 = vld [vmem:[#allocation12 + $0x20] sm:$0xff]   ;;  %v4420_v41 = vld [vmem:[#allocation12 + $0x68] sm:$0xff]  }
 0x3e7   :  { %4055 = vmatpush3.bf16.msra.mxu1 %v5794_v50  ;;  %3772 = vmatprep.subr.bf16.mxu0 %v4407_v36  ;;  %v4421_v59 = vld [vmem:[#allocation14 + $0x28] sm:$0xff]   ;;  %v4423_v61 = vld [vmem:[#allocation14 + $0x70] sm:$0xff]   ;;  %v4427_v52 = vld [vmem:[#allocation14 + $0x78] sm:$0xff]  }
 0x3e8   :  { %4048 = vmatprep.subr.bf16.mxu1 %v4408_v37  ;;  %v4422_v60 = vld [vmem:[#allocation12 + $0x28] sm:$0xff]   ;;  %v4424_v43 = vld [vmem:[#allocation12 + $0x70] sm:$0xff]   ;;  %v4428_v9 = vld [vmem:[#allocation12 + $0x78] sm:$0xff]  }
 0x3e9   :  { %v4425_v40 = vld [vmem:[#allocation14 + $0x30] sm:$0xff]   ;;  %v4429_v35 = vld [vmem:[#allocation14 + $0x38] sm:$0xff]   ;;  %v2889_v16 = vld [vmem:[#allocation3 + $0x38] sm:$0xff] }
 0x3ea   :  { %3773 = vmatpush3.bf16.msra.mxu0 %v4409_v42  ;;  %v4426_v1 = vld [vmem:[#allocation12 + $0x30] sm:$0xff]   ;;  %v4430_v2 = vld [vmem:[#allocation12 + $0x38] sm:$0xff]   ;;  %v2888_v39 = vld [vmem:[#allocation3 + $0x30] sm:$0xff] }
 0x3eb   :  { %4056 = vmatpush3.bf16.msra.mxu1 %v4410_v63  ;;  %3774 = vmatprep.subr.bf16.mxu0 %v4411_v14  ;;  %v2887_v6 = vld [vmem:[#allocation3 + $0x28] sm:$0xff]  ;;  %v2886_v15 = vld [vmem:[#allocation3 + $0x20] sm:$0xff]  ;;  %v2893_v7 = vld [vmem:[#allocation3 + $0x58] sm:$0xff] }
 0x3ec   :  { %4049 = vmatprep.subr.bf16.mxu1 %v4412_v46  ;;  %3081 = vmatprep.mubr.bf16.mxu1 %v2887_v6  ;;  %v2883_v21 = vld [vmem:[#allocation3 + $0x8] sm:$0xff]  ;;  %v2890_v3 = vld [vmem:[#allocation3 + $0x40] sm:$0xff]  ;;  %v2892_v8 = vld [vmem:[#allocation3 + $0x50] sm:$0xff] }
 0x3ed   :  { %v2891_v10 = vld [vmem:[#allocation3 + $0x48] sm:$0xff]  ;;  %v2882_v5 = vld [vmem:[#allocation3] sm:$0xff]  ;;  %v2885_v18 = vld [vmem:[#allocation3 + $0x18] sm:$0xff] }
 0x3ee   :  { %3775 = vmatpush3.bf16.msra.mxu0 %v4413_v38  ;;  %v2895_v12 = vld [vmem:[#allocation3 + $0x68] sm:$0xff]  ;;  %v2894_v13 = vld [vmem:[#allocation3 + $0x60] sm:$0xff]  ;;  %v2897_v19 = vld [vmem:[#allocation3 + $0x78] sm:$0xff] }
 0x3ef   :  { %4057 = vmatpush3.bf16.msra.mxu1 %v4414_v48  ;;  %3776 = vmatprep.subr.bf16.mxu0 %v4415_v47  ;;  %v2884_v24 = vld [vmem:[#allocation3 + $0x10] sm:$0xff]  ;;  %v3730_v34 = vld [vmem:[%s6115_s12] ss:$0 sm:$0xff] }
 0x3f0   :  { %4050 = vmatprep.subr.bf16.mxu1 %v4416_v56  ;;  %v2896_v4 = vld [vmem:[#allocation3 + $0x70] sm:$0xff]  ;;  %v5809_v25 = vld [vmem:[%s6111_s8] ss:$0 sm:$0xff]  ;;  %s4735_s8 = smov [#allocation16]  }
 0x3f1   :  { %s3402_s12 = sshll.u32 %s4735_s8, 4  ;;  %s3403_s12 = int_to_ptr.vmem [resolvable:$true] %s3402_s12 }
 0x3f2   :  { %3777 = vmatpush3.bf16.msra.mxu0 %v4417_v57  ;;  %s4573_s23 = scalar_lea.vmem %s3403_s12, 512  ;;  %p4578_p1 = scmp.lt.s32.totalorder %s3403_s12, %s3403_s12 }
 0x3f3   :  { %4058 = vmatpush3.bf16.msra.mxu1 %v4418_v58  ;;  %3778 = vmatprep.subr.bf16.mxu0 %v4419_v44  ;;  %p4574_p0 = scmp.ne.s32.totalorder %s3403_s12, %s4573_s23  ;;  %p4579_p2 = scmp.lt.s32.totalorder %s4573_s23, %s4573_s23 }
 0x3f4   :  { %4051 = vmatprep.subr.bf16.mxu1 %v4420_v41 }
 0x3f5   :  { %p4580_p3 = por %p4579_p2, %p4578_p1 }
 0x3f6   :  { %3779 = vmatpush3.bf16.msra.mxu0 %v4421_v59 }
 0x3f7   :  { %4059 = vmatpush3.bf16.msra.mxu1 %v4422_v60  ;;  %3780 = vmatprep.subr.bf16.mxu0 %v4423_v61  ;;  %p4581_p4 = pnand %p4580_p3, %p4574_p0 }
 0x3f8   :  { %4052 = vmatprep.subr.bf16.mxu1 %v4424_v43 }
 0x3fa   :  { %3781 = vmatpush3.bf16.msra.mxu0 %v4425_v40 }
 0x3fb   :  { %4060 = vmatpush3.bf16.msra.mxu1 %v4426_v1  ;;  %3782 = vmatprep.subr.bf16.mxu0 %v4427_v52 }
 0x3fc   :  { %4053 = vmatprep.subr.bf16.mxu1 %v4428_v9 }
 0x3fe   :  { %3783 = vmatpush3.bf16.msra.mxu0 %v4429_v35 }
 0x3ff   :  { %4061 = vmatpush3.bf16.msra.mxu1 %v4430_v2  ;;  %3790 = vmatprep.subr.bf16.mxu0 %v5785_v53 }
 0x401   :  { %2872 = vmatmul.mubr.bf16.vlgmr.msra.gmra.mrb[0].mxu0 %v2702_v28 }
 0x402   :  { %3082 = vmatmul.mubr.bf16.vlgmr.msra.gmra.mrb[0].mxu1 %v2886_v15  ;;  %3791 = vmatpush3.bf16.msra.mxu0 %v5788_v32 }
 0x403   :  { %3792 = vmatprep.subr.bf16.mxu0 %v5791_v54  ;;  %3089 = vmatprep.mubr.bf16.mxu1 %v2889_v16 }
 0x404   :  { %3065 = vmatprep.mubr.bf16.mxu0 %v2883_v21 }
 0x406   :  { %3793 = vmatpush3.bf16.msra.mxu0 %v5794_v50 }
 0x407   :  { %3794 = vmatprep.subr.bf16.mxu0 %v4408_v37 }
 0x40a   :  { %3090 = vmatmul.mubr.bf16.gmra.mrb[4].mxu1 %v2888_v39  ;;  %3795 = vmatpush3.bf16.msra.mxu0 %v4410_v63 }
 0x40b   :  { %3796 = vmatprep.subr.bf16.mxu0 %v4412_v46  ;;  %3097 = vmatprep.mubr.bf16.mxu1 %v2891_v10 }
 0x40e   :  { %3797 = vmatpush3.bf16.msra.mxu0 %v4414_v48 }
 0x40f   :  { %3798 = vmatprep.subr.bf16.mxu0 %v4416_v56 }
 0x412   :  { %3098 = vmatmul.mubr.bf16.gmra.mrb[8].mxu1 %v2890_v3  ;;  %3799 = vmatpush3.bf16.msra.mxu0 %v4418_v58 }
 0x413   :  { %3800 = vmatprep.subr.bf16.mxu0 %v4420_v41  ;;  %3105 = vmatprep.mubr.bf16.mxu1 %v2893_v7 }
 0x416   :  { %3801 = vmatpush3.bf16.msra.mxu0 %v4422_v60 }
 0x417   :  { %3802 = vmatprep.subr.bf16.mxu0 %v4424_v43 }
 0x41a   :  { %3106 = vmatmul.mubr.bf16.gmra.mrb[12].mxu1 %v2892_v8  ;;  %3803 = vmatpush3.bf16.msra.mxu0 %v4426_v1 }
 0x41b   :  { %3804 = vmatprep.subr.bf16.mxu0 %v4428_v9  ;;  %3113 = vmatprep.mubr.bf16.mxu1 %v2895_v12 }
 0x41e   :  { %3805 = vmatpush3.bf16.msra.mxu0 %v4430_v2 }
 0x421   :  { %3066 = vmatmul.mubr.bf16.vlgmr.msra.gmra.mrb[4].mxu0 %v2882_v5 }
 0x422   :  { %3114 = vmatmul.mubr.bf16.gmra.mrb[16].mxu1 %v2894_v13  ;;  %3073 = vmatprep.mubr.bf16.mxu0 %v2885_v18 }
 0x423   :  { %3121 = vmatprep.mubr.bf16.mxu1 %v2897_v19 }
 0x429   :  { %3074 = vmatmul.mubr.bf16.gmra.mrb[8].mxu0 %v2884_v24 }
 0x42a   :  { %3122 = vmatmul.mubr.bf16.gmra.mrb[20].mxu1 %v2896_v4 }
 0x4d4   :  { %v3784_v22 = vpop.f32.mrb[0].mxu0 }
 0x4d5   :  { %v3818_v27 = vpop.f32.mrb[0].mxu1  ;;  %v3785_v31 = vpop.f32.mrb[1].mxu0 }
 0x4d6   :  { %v3786_v30 = vadd.f32 %v3785_v31, %v3784_v22  ;;  %v3819_v33 = vpop.f32.mrb[1].mxu1  ;;  %v3787_v23 = vpop.f32.mrb[2].mxu0 }
 0x4d7   :  { %v3820_v29 = vadd.f32 %v3819_v33, %v3818_v27  ;;  %v3821_v26 = vpop.f32.mrb[2].mxu1  ;;  %v3788_v20 = vpop.f32.mrb[3].mxu0 }
 0x4d8   :  { %v2874_v11 = vadd.f32 %v3786_v30, %v3730_v34  ;;  %v3789_v17 = vadd.f32 %v3788_v20, %v3787_v23  ;;  %v3822_v0 = vpop.f32.mrb[3].mxu1 }
 0x4d9   :  { %v3823_v45 = vadd.f32 %v3822_v0, %v3821_v26  ;;  %v5812_v62 = vadd.f32 %v3820_v29, %v5809_v25 }
 0x4da   :  { %2880 = vst [vmem:[#allocation18] sm:$0xff] %v2874_v11  ;;  %v2877_v53 = vadd.f32 %v3789_v17, %v3730_v34 }
 0x4db   :  { %v3134_v49 = vmax.f32 %v5812_v62, 0.0  ;;  %v5816_v32 = vadd.f32 %v3823_v45, %v5809_v25 }
 0x4dc   :  { %2881 = vst [vmem:[#allocation18 + $0x8] sm:$0xff] %v2877_v53 }
 0x4dd   :  { %v3824_v51 = vpop.f32.mrb[4].mxu1  ;;  %3154 = vadd.xlane.f32.xlu0 %v3134_v49  ;;  %v3135_v54 = vmax.f32 %v5816_v32, 0.0 }
 0x4de   :  { %v3825_v55 = vpop.f32.mrb[5].mxu1 }
 0x4df   :  { %v3826_v50 = vadd.f32 %v3825_v55, %v3824_v51  ;;  %v3827_v36 = vpop.f32.mrb[6].mxu1  ;;  %3156 = vadd.xlane.f32.xlu1 %v3135_v54 }
 0x4e0   :  { %v3828_v37 = vpop.f32.mrb[7].mxu1 }
 0x4e1   :  { %v3829_v42 = vadd.f32 %v3828_v37, %v3827_v36  ;;  %v5824_v63 = vadd.f32 %v3826_v50, %v5809_v25 }
 0x4e3   :  { %v3136_v14 = vmax.f32 %v5824_v63, 0.0  ;;  %v5828_v46 = vadd.f32 %v3829_v42, %v5809_v25 }
 0x4e5   :  { %v3830_v38 = vpop.f32.mrb[8].mxu1  ;;  %3158 = vadd.xlane.f32.xlu0 %v3136_v14  ;;  %v3137_v48 = vmax.f32 %v5828_v46, 0.0 }
 0x4e6   :  { %v3831_v47 = vpop.f32.mrb[9].mxu1 }
 0x4e7   :  { %v3832_v56 = vadd.f32 %v3831_v47, %v3830_v38  ;;  %v3833_v57 = vpop.f32.mrb[10].mxu1  ;;  %3160 = vadd.xlane.f32.xlu1 %v3137_v48 }
 0x4e8   :  { %v3834_v58 = vpop.f32.mrb[11].mxu1 }
 0x4e9   :  { %v3835_v44 = vadd.f32 %v3834_v58, %v3833_v57  ;;  %v5836_v41 = vadd.f32 %v3832_v56, %v5809_v25 }
 0x4eb   :  { %v3138_v59 = vmax.f32 %v5836_v41, 0.0  ;;  %v5840_v60 = vadd.f32 %v3835_v44, %v5809_v25 }
 0x4ed   :  { %v3836_v61 = vpop.f32.mrb[12].mxu1  ;;  %3162 = vadd.xlane.f32.xlu0 %v3138_v59  ;;  %v3139_v43 = vmax.f32 %v5840_v60, 0.0 }
 0x4ee   :  { %v3837_v40 = vpop.f32.mrb[13].mxu1 }
 0x4ef   :  { %v3838_v1 = vadd.f32 %v3837_v40, %v3836_v61  ;;  %v3839_v52 = vpop.f32.mrb[14].mxu1  ;;  %3164 = vadd.xlane.f32.xlu1 %v3139_v43 }
 0x4f0   :  { %v3840_v9 = vpop.f32.mrb[15].mxu1 }
 0x4f1   :  { %v3841_v35 = vadd.f32 %v3840_v9, %v3839_v52  ;;  %v5848_v2 = vadd.f32 %v3838_v1, %v5809_v25 }
 0x4f3   :  { %v3140_v28 = vmax.f32 %v5848_v2, 0.0  ;;  %v5852_v6 = vadd.f32 %v3841_v35, %v5809_v25 }
 0x4f4   :  { %v3806_v15 = vpop.f32.mrb[4].mxu0 }
 0x4f5   :  { %v3842_v16 = vpop.f32.mrb[16].mxu1  ;;  %3166 = vadd.xlane.f32.xlu0 %v3140_v28  ;;  %v3807_v21 = vpop.f32.mrb[5].mxu0  ;;  %v3141_v39 = vmax.f32 %v5852_v6, 0.0 }
 0x4f6   :  { %v3808_v10 = vadd.f32 %v3807_v21, %v3806_v15  ;;  %v3843_v3 = vpop.f32.mrb[17].mxu1  ;;  %v3809_v7 = vpop.f32.mrb[6].mxu0 }
 0x4f7   :  { %v3844_v8 = vadd.f32 %v3843_v3, %v3842_v16  ;;  %v3845_v12 = vpop.f32.mrb[18].mxu1  ;;  %3168 = vadd.xlane.f32.xlu1 %v3141_v39  ;;  %v3810_v5 = vpop.f32.mrb[7].mxu0 }
 0x4f8   :  { %v3811_v13 = vadd.f32 %v3810_v5, %v3809_v7  ;;  %v3846_v18 = vpop.f32.mrb[19].mxu1  ;;  %v5860_v19 = vadd.f32 %v3808_v10, %v5809_v25 }
 0x4f9   :  { %v3847_v24 = vadd.f32 %v3846_v18, %v3845_v12  ;;  %v5863_v4 = vadd.f32 %v3844_v8, %v5809_v25 }
 0x4fa   :  { %v3130_v22 = vmax.f32 %v5860_v19, 0.0  ;;  %v5874_v11 = vadd.f32 %v3811_v13, %v5809_v25 }
 0x4fb   :  { %v5867_v27 = vadd.f32 %v3847_v24, %v5809_v25  ;;  %v3142_v31 = vmax.f32 %v5863_v4, 0.0 }
 0x4fc   :  { %v3812_v34 = vpop.f32.mrb[8].mxu0  ;;  %3146 = vadd.xlane.f32.xlu0 %v3130_v22  ;;  %v3131_v42 = vmax.f32 %v5874_v11, 0.0 }
 0x4fd   :  { %v3813_v30 = vpop.f32.mrb[9].mxu0  ;;  %v3143_v33 = vmax.f32 %v5867_v27, 0.0  ;;  %v3848_v23 = vpop.f32.mrb[20].mxu1 }
 0x4fe   :  { %v3814_v29 = vadd.f32 %v3813_v30, %v3812_v34  ;;  %v3815_v26 = vpop.f32.mrb[10].mxu0  ;;  %v3849_v20 = vpop.f32.mrb[21].mxu1 }
 0x4ff   :  { %3172 = vadd.xlane.f32.xlu1 %v3143_v33  ;;  %v3816_v17 = vpop.f32.mrb[11].mxu0  ;;  %v3850_v0 = vadd.f32 %v3849_v20, %v3848_v23  ;;  %v3851_v45 = vpop.f32.mrb[22].mxu1 }
 0x500   :  { %v3817_v53 = vadd.f32 %v3816_v17, %v3815_v26  ;;  %3170 = vadd.xlane.f32.xlu0 %v3142_v31  ;;  %v5881_v51 = vadd.f32 %v3814_v29, %v5809_v25  ;;  %v3852_v55 = vpop.f32.mrb[23].mxu1 }
 0x501   :  { %v3853_v50 = vadd.f32 %v3852_v55, %v3851_v45  ;;  %v5884_v36 = vadd.f32 %v3850_v0, %v5809_v25 }
 0x502   :  { %v3132_v37 = vmax.f32 %v5881_v51, 0.0  ;;  %v5889_v38 = vadd.f32 %v3817_v53, %v5809_v25 }
 0x503   :  { %v3144_v56 = vmax.f32 %v5884_v36, 0.0  ;;  %v5898_v57 = vadd.f32 %v3853_v50, %v5809_v25 }
 0x504   :  { %3150 = vadd.xlane.f32.xlu1 %v3132_v37  ;;  %3148 = vadd.xlane.f32.xlu0 %v3131_v42  ;;  %v3133_v47 = vmax.f32 %v5889_v38, 0.0 }
 0x505   :  { %v3145_v58 = vmax.f32 %v5898_v57, 0.0 }
 0x508   :  { %3152 = vadd.xlane.f32.xlu1 %v3133_v47  ;;  %3174 = vadd.xlane.f32.xlu0 %v3144_v56 }
 0x50c   :  { %3176 = vadd.xlane.f32.xlu1 %v3145_v58 }
 0x56a   :  { %v3155_v44 = vpop.xlane.xlu0 %3154 }
 0x56b   :  { %v3183_v61 = vmul.f32 0.0078125, %v3155_v44 }
 0x56c   :  { %v3157_v40 = vpop.xlane.xlu1 %3156 }
 0x56d   :  { %v5909_v1 = vsub.f32 %v3134_v49, %v3183_v61  ;;  %v3184_v25 = vmul.f32 0.0078125, %v3157_v40 }
 0x56f   :  { %v5913_v52 = vsub.f32 %v3135_v54, %v3184_v25  ;;  %v3215_v9 = vmul.f32 %v5909_v1, %v5909_v1 }
 0x571   :  { %3235 = vadd.xlane.f32.xlu0 %v3215_v9  ;;  %v3216_v35 = vmul.f32 %v5913_v52, %v5913_v52 }
 0x572   :  { %v3159_v15 = vpop.xlane.xlu0 %3158 }
 0x573   :  { %v3185_v16 = vmul.f32 0.0078125, %v3159_v15  ;;  %3237 = vadd.xlane.f32.xlu1 %v3216_v35 }
 0x574   :  { %v3161_v21 = vpop.xlane.xlu1 %3160 }
 0x575   :  { %v5921_v62 = vsub.f32 %v3136_v14, %v3185_v16  ;;  %v3186_v49 = vmul.f32 0.0078125, %v3161_v21 }
 0x577   :  { %v5925_v32 = vsub.f32 %v3137_v48, %v3186_v49  ;;  %v3217_v54 = vmul.f32 %v5921_v62, %v5921_v62 }
 0x579   :  { %3239 = vadd.xlane.f32.xlu0 %v3217_v54  ;;  %v3218_v10 = vmul.f32 %v5925_v32, %v5925_v32 }
 0x57a   :  { %v3163_v3 = vpop.xlane.xlu0 %3162 }
 0x57b   :  { %v3187_v7 = vmul.f32 0.0078125, %v3163_v3  ;;  %3241 = vadd.xlane.f32.xlu1 %v3218_v10 }
 0x57c   :  { %v3165_v8 = vpop.xlane.xlu1 %3164 }
 0x57d   :  { %v5933_v63 = vsub.f32 %v3138_v59, %v3187_v7  ;;  %v3188_v14 = vmul.f32 0.0078125, %v3165_v8 }
 0x57f   :  { %v5937_v46 = vsub.f32 %v3139_v43, %v3188_v14  ;;  %v3219_v48 = vmul.f32 %v5933_v63, %v5933_v63 }
 0x581   :  { %3243 = vadd.xlane.f32.xlu0 %v3219_v48  ;;  %v3220_v12 = vmul.f32 %v5937_v46, %v5937_v46 }
 0x582   :  { %v3167_v5 = vpop.xlane.xlu0 %3166 }
 0x583   :  { %v3189_v13 = vmul.f32 0.0078125, %v3167_v5  ;;  %3245 = vadd.xlane.f32.xlu1 %v3220_v12 }
 0x584   :  { %v3169_v18 = vpop.xlane.xlu1 %3168 }
 0x585   :  { %v5945_v41 = vsub.f32 %v3140_v28, %v3189_v13  ;;  %v3190_v59 = vmul.f32 0.0078125, %v3169_v18 }
 0x587   :  { %v5949_v60 = vsub.f32 %v3141_v39, %v3190_v59  ;;  %v3221_v43 = vmul.f32 %v5945_v41, %v5945_v41 }
 0x589   :  { %3247 = vadd.xlane.f32.xlu0 %v3221_v43  ;;  %v3147_v24 = vpop.xlane.xlu0 %3146  ;;  %v3222_v34 = vmul.f32 %v5949_v60, %v5949_v60 }
 0x58a   :  { %v3179_v30 = vmul.f32 0.0078125, %v3147_v24 }
 0x58b   :  { %3249 = vadd.xlane.f32.xlu1 %v3222_v34 }
 0x58c   :  { %v5957_v2 = vsub.f32 %v3130_v22, %v3179_v30  ;;  %v3173_v28 = vpop.xlane.xlu1 %3172 }
 0x58d   :  { %v3171_v23 = vpop.xlane.xlu0 %3170  ;;  %v3192_v26 = vmul.f32 0.0078125, %v3173_v28 }
 0x58e   :  { %v3191_v29 = vmul.f32 0.0078125, %v3171_v23  ;;  %v3211_v6 = vmul.f32 %v5957_v2, %v5957_v2 }
 0x58f   :  { %v5977_v4 = vsub.f32 %v3143_v33, %v3192_v26 }
 0x590   :  { %v5963_v39 = vsub.f32 %v3142_v31, %v3191_v29  ;;  %3227 = vadd.xlane.f32.xlu0 %v3211_v6 }
 0x591   :  { %v3151_v20 = vpop.xlane.xlu1 %3150  ;;  %v3149_v17 = vpop.xlane.xlu0 %3148 }
 0x592   :  { %v3181_v0 = vmul.f32 0.0078125, %v3151_v20  ;;  %v3180_v45 = vmul.f32 0.0078125, %v3149_v17  ;;  %v3223_v19 = vmul.f32 %v5963_v39, %v5963_v39 }
 0x594   :  { %v5969_v22 = vsub.f32 %v3132_v37, %v3181_v0  ;;  %v5973_v53 = vsub.f32 %v3131_v42, %v3180_v45  ;;  %3251 = vadd.xlane.f32.xlu0 %v3223_v19  ;;  %v3224_v42 = vmul.f32 %v5977_v4, %v5977_v4 }
 0x595   :  { %v3153_v31 = vpop.xlane.xlu1 %3152  ;;  %v3175_v55 = vpop.xlane.xlu0 %3174 }
 0x596   :  { %v3182_v50 = vmul.f32 0.0078125, %v3153_v31  ;;  %v3193_v44 = vmul.f32 0.0078125, %v3175_v55  ;;  %v3213_v61 = vmul.f32 %v5969_v22, %v5969_v22  ;;  %v3212_v51 = vmul.f32 %v5973_v53, %v5973_v53 }
 0x598   :  { %v5985_v11 = vsub.f32 %v3144_v56, %v3193_v44  ;;  %3231 = vadd.xlane.f32.xlu0 %v3213_v61  ;;  %3229 = vadd.xlane.f32.xlu1 %v3212_v51  ;;  %v5989_v27 = vsub.f32 %v3133_v47, %v3182_v50 }
 0x599   :  { %v3177_v37 = vpop.xlane.xlu1 %3176 }
 0x59a   :  { %v3194_v33 = vmul.f32 0.0078125, %v3177_v37  ;;  %v3225_v40 = vmul.f32 %v5985_v11, %v5985_v11  ;;  %v3214_v56 = vmul.f32 %v5989_v27, %v5989_v27 }
 0x59c   :  { %3253 = vadd.xlane.f32.xlu1 %v3224_v42  ;;  %3255 = vadd.xlane.f32.xlu0 %v3225_v40  ;;  %v5997_v36 = vsub.f32 %v3145_v58, %v3194_v33 }
 0x59e   :  { %v3226_v38 = vmul.f32 %v5997_v36, %v5997_v36 }
 0x5a0   :  { %3233 = vadd.xlane.f32.xlu1 %v3214_v56 }
 0x5a4   :  { %3257 = vadd.xlane.f32.xlu1 %v3226_v38 }
 0x5a5   :  { %4584 = shalt.err (!%p4581_p4)
}
 0x5a6   :  { %s4585_s2 = scalar_lea.hbm %s6117_s14, 512 }
 0x5a7   :  { %p4586_p5 = scmp.ne.s32.totalorder %s6117_s14, %s4585_s2  ;;  %p4589_p6 = scmp.lt.u32.totalorder %s4585_s2, %s6117_s14 }
 0x5a9   :  { %p4591_p7 = pnand %p4589_p6, %p4586_p5 }
 0x5ab   :  { %4594 = shalt.err (!%p4591_p7)
}
 0x5ac   :  { %s4736_s30 = smov 256   ;;  %s4737_s1 = smov 16  }
 0x5ad   :  { %3408 = dma.vmem_to_hbm [thread:$0]  %s3403_s12, 512, %s6117_s14, [#allocation17], %s4736_s30, %s4736_s30, %s4737_s1  }
 0x5ae   :  { %s4738_s16 = smov [#allocation18]  }
 0x5af   :  { %s3414_s6 = sshll.u32 %s4738_s16, 4  ;;  %s3415_s6 = int_to_ptr.vmem [resolvable:$true] %s3414_s6 }
 0x5b0   :  { %s4595_s17 = scalar_lea.vmem %s3415_s6, 256  ;;  %p4600_p9 = scmp.lt.s32.totalorder %s3415_s6, %s3415_s6 }
 0x5b1   :  { %p4596_p8 = scmp.ne.s32.totalorder %s3415_s6, %s4595_s17  ;;  %p4601_p10 = scmp.lt.s32.totalorder %s4595_s17, %s4595_s17 }
 0x5b3   :  { %p4602_p11 = por %p4601_p10, %p4600_p9 }
 0x5b5   :  { %p4603_p12 = pnand %p4602_p11, %p4596_p8 }
 0x5b7   :  { %4606 = shalt.err (!%p4603_p12)
}
 0x5b8   :  { %s4607_s25 = scalar_lea.hbm %s6118_s15, 256 }
 0x5b9   :  { %p4608_p13 = scmp.ne.s32.totalorder %s6118_s15, %s4607_s25  ;;  %p4611_p0 = scmp.lt.u32.totalorder %s4607_s25, %s6118_s15 }
 0x5bb   :  { %p4613_p1 = pnand %p4611_p0, %p4608_p13 }
 0x5bd   :  { %4616 = shalt.err (!%p4613_p1)
}
 0x5be   :  { %s4739_s21 = smov 128   ;;  %s4740_s26 = smov 8   ;;  %v6033_v7 = vld [vmem:[%s6112_s9] ss:$0 sm:$0xff] }
 0x5bf   :  { %3420 = dma.vmem_to_hbm [thread:$0]  %s3415_s6, 256, %s6118_s15, [#allocation17], %s4739_s21, %s4739_s21, %s4740_s26  }
 0x5c0   :  { %v6039_v12 = vld [vmem:[%s6113_s10] ss:$0 sm:$0xff]  ;;  %s4741_s9 = smov [#allocation15]  }
 0x5c1   :  { %s3390_s10 = sshll.u32 %s4741_s9, 4  ;;  %s3391_s10 = int_to_ptr.vmem [resolvable:$true] %s3390_s10 }
 0x5c2   :  { %s4617_s28 = scalar_lea.vmem %s3391_s10, 2048  ;;  %p4622_p3 = scmp.lt.s32.totalorder %s3391_s10, %s3391_s10 }
 0x5c3   :  { %p4618_p2 = scmp.ne.s32.totalorder %s3391_s10, %s4617_s28  ;;  %p4623_p4 = scmp.lt.s32.totalorder %s4617_s28, %s4617_s28 }
 0x5c5   :  { %p4624_p5 = por %p4623_p4, %p4622_p3 }
 0x5c7   :  { %p4625_p6 = pnand %p4624_p5, %p4618_p2 }
 0x5fe   :  { %v3236_v47 = vpop.xlane.xlu0 %3235 }
 0x5ff   :  { %v3263_v57 = vmul.f32 0.0078125, %v3236_v47 }
 0x600   :  { %v3238_v58 = vpop.xlane.xlu1 %3237 }
 0x601   :  { %v3279_v25 = vadd.f32 1e-05, %v3263_v57  ;;  %v3264_v9 = vmul.f32 0.0078125, %v3238_v58 }
 0x603   :  { %4431 = vrsqrt.f32 %v3279_v25  ;;  %v3280_v35 = vadd.f32 1e-05, %v3264_v9 }
 0x605   :  { %4433 = vrsqrt.f32 %v3280_v35 }
 0x606   :  { %v3240_v15 = vpop.xlane.xlu0 %3239 }
 0x607   :  { %v3265_v16 = vmul.f32 0.0078125, %v3240_v15 }
 0x608   :  { %v3242_v21 = vpop.xlane.xlu1 %3241 }
 0x609   :  { %v3281_v49 = vadd.f32 1e-05, %v3265_v16  ;;  %v3266_v54 = vmul.f32 0.0078125, %v3242_v21 }
 0x60b   :  { %4435 = vrsqrt.f32 %v3281_v49  ;;  %v3282_v10 = vadd.f32 1e-05, %v3266_v54 }
 0x60d   :  { %v4432_v3 = vpop.eup %4431  ;;  %4437 = vrsqrt.f32 %v3282_v10 }
 0x60e   :  { %v3311_v8 = vmul.f32 %v4432_v3, %v5909_v1  ;;  %v3244_v14 = vpop.xlane.xlu0 %3243 }
 0x60f   :  { %v4434_v48 = vpop.eup %4433  ;;  %v3267_v5 = vmul.f32 0.0078125, %v3244_v14 }
 0x610   :  { %v3334_v13 = vmul.f32 %v6033_v7, %v3311_v8  ;;  %v3312_v18 = vmul.f32 %v4434_v48, %v5913_v52  ;;  %v3246_v59 = vpop.xlane.xlu1 %3245 }
 0x611   :  { %v3283_v43 = vadd.f32 1e-05, %v3267_v5  ;;  %v3268_v24 = vmul.f32 0.0078125, %v3246_v59 }
 0x612   :  { %v3357_v34 = vadd.f32 %v6039_v12, %v3334_v13  ;;  %v3335_v30 = vmul.f32 %v6033_v7, %v3312_v18 }
 0x613   :  { %4439 = vrsqrt.f32 %v3283_v43  ;;  %v3284_v1 = vadd.f32 1e-05, %v3268_v24 }
 0x614   :  { %3373 = vst [vmem:[#allocation15 + $0x20] sm:$0xff] %v3357_v34  ;;  %v3358_v28 = vadd.f32 %v6039_v12, %v3335_v30 }
 0x615   :  { %v4436_v23 = vpop.eup %4435  ;;  %4441 = vrsqrt.f32 %v3284_v1 }
 0x616   :  { %3374 = vst [vmem:[#allocation15 + $0x28] sm:$0xff] %v3358_v28  ;;  %v3313_v29 = vmul.f32 %v4436_v23, %v5921_v62  ;;  %v3248_v6 = vpop.xlane.xlu0 %3247 }
 0x617   :  { %v4438_v26 = vpop.eup %4437  ;;  %v3269_v52 = vmul.f32 0.0078125, %v3248_v6 }
 0x618   :  { %v3336_v20 = vmul.f32 %v6033_v7, %v3313_v29  ;;  %v3314_v17 = vmul.f32 %v4438_v26, %v5925_v32  ;;  %v3250_v0 = vpop.xlane.xlu1 %3249 }
 0x619   :  { %v3285_v45 = vadd.f32 1e-05, %v3269_v52  ;;  %v3270_v19 = vmul.f32 0.0078125, %v3250_v0 }
 0x61a   :  { %v3359_v31 = vadd.f32 %v6039_v12, %v3336_v20  ;;  %v3337_v55 = vmul.f32 %v6033_v7, %v3314_v17 }
 0x61b   :  { %4443 = vrsqrt.f32 %v3285_v45  ;;  %v3286_v50 = vadd.f32 1e-05, %v3270_v19 }
 0x61c   :  { %3375 = vst [vmem:[#allocation15 + $0x30] sm:$0xff] %v3359_v31  ;;  %v3360_v44 = vadd.f32 %v6039_v12, %v3337_v55 }
 0x61d   :  { %v4440_v62 = vpop.eup %4439  ;;  %4445 = vrsqrt.f32 %v3286_v50  ;;  %v3228_v61 = vpop.xlane.xlu0 %3227 }
 0x61e   :  { %3376 = vst [vmem:[#allocation15 + $0x38] sm:$0xff] %v3360_v44  ;;  %v3315_v51 = vmul.f32 %v4440_v62, %v5933_v63  ;;  %v3259_v37 = vmul.f32 0.0078125, %v3228_v61 }
 0x61f   :  { %v4442_v32 = vpop.eup %4441 }
 0x620   :  { %v3338_v33 = vmul.f32 %v6033_v7, %v3315_v51  ;;  %v3316_v42 = vmul.f32 %v4442_v32, %v5937_v46  ;;  %v3275_v40 = vadd.f32 1e-05, %v3259_v37 }
 0x621   :  { %v3252_v56 = vpop.xlane.xlu0 %3251 }
 0x622   :  { %v3361_v38 = vadd.f32 %v6039_v12, %v3338_v33  ;;  %v3339_v47 = vmul.f32 %v6033_v7, %v3316_v42  ;;  %4447 = vrsqrt.f32 %v3275_v40  ;;  %v3271_v57 = vmul.f32 0.0078125, %v3252_v56 }
 0x624   :  { %3377 = vst [vmem:[#allocation15 + $0x40] sm:$0xff] %v3361_v38  ;;  %v3362_v58 = vadd.f32 %v6039_v12, %v3339_v47  ;;  %v3287_v25 = vadd.f32 1e-05, %v3271_v57 }
 0x625   :  { %v4444_v9 = vpop.eup %4443  ;;  %v3230_v63 = vpop.xlane.xlu1 %3229 }
 0x626   :  { %v3232_v35 = vpop.xlane.xlu0 %3231  ;;  %3378 = vst [vmem:[#allocation15 + $0x48] sm:$0xff] %v3362_v58  ;;  %v3317_v15 = vmul.f32 %v4444_v9, %v5945_v41  ;;  %4449 = vrsqrt.f32 %v3287_v25  ;;  %v3260_v46 = vmul.f32 0.0078125, %v3230_v63 }
 0x627   :  { %v3261_v16 = vmul.f32 0.0078125, %v3232_v35  ;;  %v4446_v21 = vpop.eup %4445 }
 0x628   :  { %v3340_v49 = vmul.f32 %v6033_v7, %v3317_v15  ;;  %v3318_v54 = vmul.f32 %v4446_v21, %v5949_v60  ;;  %v3276_v10 = vadd.f32 1e-05, %v3260_v46 }
 0x629   :  { %v3277_v3 = vadd.f32 1e-05, %v3261_v16  ;;  %v3254_v8 = vpop.xlane.xlu1 %3253 }
 0x62a   :  { %v3256_v14 = vpop.xlane.xlu0 %3255  ;;  %v3363_v48 = vadd.f32 %v6039_v12, %v3340_v49  ;;  %v3341_v5 = vmul.f32 %v6033_v7, %v3318_v54  ;;  %4451 = vrsqrt.f32 %v3276_v10  ;;  %v3272_v13 = vmul.f32 0.0078125, %v3254_v8 }
 0x62b   :  { %4453 = vrsqrt.f32 %v3277_v3  ;;  %v3273_v41 = vmul.f32 0.0078125, %v3256_v14 }
 0x62c   :  { %v4448_v18 = vpop.eup %4447  ;;  %3379 = vst [vmem:[#allocation15 + $0x50] sm:$0xff] %v3363_v48  ;;  %v3364_v59 = vadd.f32 %v6039_v12, %v3341_v5  ;;  %v3288_v43 = vadd.f32 1e-05, %v3272_v13 }
 0x62d   :  { %v3307_v24 = vmul.f32 %v4448_v18, %v5957_v2  ;;  %v3289_v60 = vadd.f32 1e-05, %v3273_v41  ;;  %v3234_v34 = vpop.xlane.xlu1 %3233 }
 0x62e   :  { %3380 = vst [vmem:[#allocation15 + $0x58] sm:$0xff] %v3364_v59  ;;  %4455 = vrsqrt.f32 %v3288_v43  ;;  %v3262_v30 = vmul.f32 0.0078125, %v3234_v34 }
 0x62f   :  { %v3330_v1 = vmul.f32 %v6033_v7, %v3307_v24  ;;  %4457 = vrsqrt.f32 %v3289_v60 }
 0x630   :  { %v4450_v28 = vpop.eup %4449  ;;  %v3278_v23 = vadd.f32 1e-05, %v3262_v30 }
 0x631   :  { %v3353_v29 = vadd.f32 %v6039_v12, %v3330_v1  ;;  %v3319_v6 = vmul.f32 %v4450_v28, %v5963_v39  ;;  %v3258_v26 = vpop.xlane.xlu1 %3257 }
 0x632   :  { %4459 = vrsqrt.f32 %v3278_v23  ;;  %v3274_v52 = vmul.f32 0.0078125, %v3258_v26 }
 0x633   :  { %3369 = vst [vmem:[#allocation15] sm:$0xff] %v3353_v29  ;;  %v3342_v2 = vmul.f32 %v6033_v7, %v3319_v6 }
 0x634   :  { %v4452_v20 = vpop.eup %4451  ;;  %v3290_v17 = vadd.f32 1e-05, %v3274_v52 }
 0x635   :  { %v4454_v0 = vpop.eup %4453  ;;  %v3365_v45 = vadd.f32 %v6039_v12, %v3342_v2  ;;  %v3308_v19 = vmul.f32 %v4452_v20, %v5973_v53 }
 0x636   :  { %v3309_v31 = vmul.f32 %v4454_v0, %v5969_v22  ;;  %4461 = vrsqrt.f32 %v3290_v17 }
 0x637   :  { %3381 = vst [vmem:[#allocation15 + $0x60] sm:$0xff] %v3365_v45  ;;  %v3331_v55 = vmul.f32 %v6033_v7, %v3308_v19 }
 0x638   :  { %v4456_v39 = vpop.eup %4455  ;;  %v3332_v50 = vmul.f32 %v6033_v7, %v3309_v31 }
 0x639   :  { %v4458_v44 = vpop.eup %4457  ;;  %v3354_v62 = vadd.f32 %v6039_v12, %v3331_v55  ;;  %v3320_v61 = vmul.f32 %v4456_v39, %v5977_v4 }
 0x63a   :  { %v3355_v51 = vadd.f32 %v6039_v12, %v3332_v50  ;;  %v3321_v37 = vmul.f32 %v4458_v44, %v5985_v11 }
 0x63b   :  { %3370 = vst [vmem:[#allocation15 + $0x8] sm:$0xff] %v3354_v62  ;;  %v3343_v53 = vmul.f32 %v6033_v7, %v3320_v61 }
 0x63c   :  { %v4460_v22 = vpop.eup %4459  ;;  %3371 = vst [vmem:[#allocation15 + $0x10] sm:$0xff] %v3355_v51  ;;  %v3344_v32 = vmul.f32 %v6033_v7, %v3321_v37 }
 0x63d   :  { %v3366_v33 = vadd.f32 %v6039_v12, %v3343_v53  ;;  %v3310_v42 = vmul.f32 %v4460_v22, %v5989_v27 }
 0x63e   :  { %v3367_v40 = vadd.f32 %v6039_v12, %v3344_v32 }
 0x63f   :  { %3382 = vst [vmem:[#allocation15 + $0x68] sm:$0xff] %v3366_v33  ;;  %v3333_v4 = vmul.f32 %v6033_v7, %v3310_v42 }
 0x640   :  { %v4462_v56 = vpop.eup %4461  ;;  %3383 = vst [vmem:[#allocation15 + $0x70] sm:$0xff] %v3367_v40 }
 0x641   :  { %v3356_v11 = vadd.f32 %v6039_v12, %v3333_v4  ;;  %v3322_v38 = vmul.f32 %v4462_v56, %v5997_v36 }
 0x643   :  { %3372 = vst [vmem:[#allocation15 + $0x18] sm:$0xff] %v3356_v11  ;;  %v3345_v47 = vmul.f32 %v6033_v7, %v3322_v38 }
 0x645   :  { %v3368_v57 = vadd.f32 %v6039_v12, %v3345_v47 }
 0x647   :  { %3384 = vst [vmem:[#allocation15 + $0x78] sm:$0xff] %v3368_v57 }
 0x648   :  { %4628 = shalt.err (!%p4625_p6)
}
 0x649   :  { %s4629_s4 = scalar_lea.hbm %s6116_s13, 2048 }
 0x64a   :  { %p4630_p7 = scmp.ne.s32.totalorder %s6116_s13, %s4629_s4  ;;  %p4633_p8 = scmp.lt.u32.totalorder %s4629_s4, %s6116_s13 }
 0x64c   :  { %p4635_p9 = pnand %p4633_p8, %p4630_p7 }
 0x64e   :  { %4638 = shalt.err (!%p4635_p9)
}
 0x64f   :  { %3396 = dma.vmem_to_hbm [thread:$0]  %s3391_s10, 2048, %s6116_s13, [#allocation8], %s4739_s21, %s4739_s21, %s4740_s26  }
 0x650   :  { %4681 = dma.done.wait [#allocation8], 2048  }
 0x651   :  { %4682 = vsyncadd [#allocation8], 4294965248 }
 0x652   :  { %4683 = dma.done.wait [#allocation17], 768  }
 0x653   :  { %4684 = vsyncadd [#allocation17], 4294966528 }
 0x654   :  { %3430 = vsyncpa [#allocation7], 1 }
 0x655   :  { %3431 = vsyncpa [#allocation10], 1 }
 0x656   :  { %3432 = vsyncpa [#allocation13], 1 }
 0x657   :  { %3433 = vsyncpa [#allocation8], 1 }
 0x658   :  { %3434 = vsyncpa [#allocation17], 1 }

</bundles_post_ra>
